<compile_context>
chip_gen: v7x
topology: tpu7x:2x2x1
jax: 0.10.0
libtpu: 0.0.40
codegen_flags: <defaults>
</compile_context>

<pallas_src>
import functools

import jax
import jax.numpy as jnp
from jax import lax
from jax.experimental import pallas as pl
from jax.experimental.pallas import tpu as pltpu

K = 7    # conv kernel size fixed by the module
PAD = 3  # ReflectionPad2d(3)


def _round_up(x, m):
    return (x + m - 1) // m * m


def _pick_images_per_step(n, per_image_bytes, budget_bytes=8 * 2**20):
    divisors = [d for d in range(1, n + 1)
                if n % d == 0 and d * per_image_bytes <= budget_bytes]
    if not divisors:
        return 1
    # Prefer keeping >= 2 grid steps so the "parallel" axis can still be split.
    multi = [d for d in divisors if n // d >= 2]
    return max(multi) if multi else max(divisors)


# --------------------------------------------------------------------------------------
# Kernel: per tap, one contiguous lane slice of the flat padded image -> small MXU dot,
# accumulated in f32; bias + tanh epilogue in f32; lane-dense (Cout_p, H*Wp) store.
# --------------------------------------------------------------------------------------
def _outconv_kernel(x_ref, w_ref, b_ref, o_ref, *, Nb, Cin, Cout_p, Wp, L):
    # x_ref : (Nb, Cin, Lxp)     flat reflection-padded images (row stride Wp)
    # w_ref : (Cout_p, K*K*Cin)  flattened weights, column order (kh, kw, cin)
    # b_ref : (Cout_p, 1)        bias (padded rows are zero)
    # o_ref : (Nb, Cout_p, L)    L = H*Wp padded-width flat output (cols >= W are junk)
    bias = b_ref[...]                                        # (Cout_p, 1), f32
    for b in range(Nb):
        acc = jnp.zeros((Cout_p, L), dtype=jnp.float32)
        for kh in range(K):
            for kw in range(K):
                t = kh * K + kw
                start = kh * Wp + kw                          # static offset
                x_tap = x_ref[b, :, start:start + L]          # (Cin, L) contiguous lanes
                w_tap = w_ref[:, t * Cin:(t + 1) * Cin]       # (Cout_p, Cin)
                acc = acc + jnp.dot(w_tap, x_tap,
                                    preferred_element_type=jnp.float32)
        o_ref[b] = jnp.tanh(acc + bias).astype(o_ref.dtype)


def outconv_forward(x_nchw, weight_oihw, bias, *,
                    compute_dtype=jnp.float32, images_per_step=None):
    """Pallas implementation of Outconv.forward.

    x_nchw:      (N, Cin, H, W)    float32
    weight_oihw: (Cout, Cin, 7, 7) float32 (PyTorch conv layout)
    bias:        (Cout,)           float32
    returns:     (N, Cout, H, W)   float32
    """
    N, Cin, H, W = x_nchw.shape
    Cout, Cin_w, KH, KW = weight_oihw.shape
    assert (KH, KW) == (K, K) and Cin_w == Cin
    assert H >= PAD + 1 and W >= PAD + 1, "ReflectionPad2d(3) requires H, W >= 4"

    Hp, Wp = H + 2 * PAD, W + 2 * PAD
    L = H * Wp                                    # flat padded-width output length
    Lxp = _round_up(Hp * Wp + 2 * PAD, 128)       # tap slices reach Hp*Wp + 6
    Cout_p = _round_up(Cout, 8)                   # sublane-aligned output rows
    KKC = K * K * Cin

    # Reflection pad (single cheap XLA op on the smallest tensor) + free flatten.
    # A small zero tail keeps the last tap slices in-bounds.
    xp = jnp.pad(x_nchw, ((0, 0), (0, 0), (PAD, PAD), (PAD, PAD)), mode="reflect")
    xp = xp.reshape(N, Cin, Hp * Wp)
    xp = jnp.pad(xp, ((0, 0), (0, 0), (0, Lxp - Hp * Wp))).astype(compute_dtype)

    # OIHW -> (Cout_p, K*K*Cin), column order (kh, kw, cin).
    w_flat = jnp.transpose(weight_oihw, (0, 2, 3, 1)).reshape(Cout, KKC)
    w_flat = jnp.pad(w_flat, ((0, Cout_p - Cout), (0, 0))).astype(compute_dtype)
    b2d = jnp.pad(bias, (0, Cout_p - Cout)).reshape(Cout_p, 1).astype(jnp.float32)

    in_itemsize = jnp.dtype(compute_dtype).itemsize
    per_image = 2 * (Cin * Lxp * in_itemsize + Cout_p * L * 4)   # double-buffered blocks
    Nb = images_per_step or _pick_images_per_step(N, per_image)
    assert N % Nb == 0
    grid = (N // Nb,)

    vmem_est = Nb * per_image + 2 * Cout_p * KKC * in_itemsize + (1 << 20)
    vmem_limit = int(min(64 * 2**20, max(32 * 2**20, 2 * vmem_est)))

    cost = pl.CostEstimate(
        flops=2 * N * H * W * K * K * Cin * Cout,
        transcendentals=N * Cout * H * W,
        bytes_accessed=(x_nchw.size * x_nchw.dtype.itemsize
                        + weight_oihw.size * weight_oihw.dtype.itemsize
                        + bias.size * bias.dtype.itemsize
                        + N * Cout * H * W * 4))

    kernel = functools.partial(_outconv_kernel,
                               Nb=Nb, Cin=Cin, Cout_p=Cout_p, Wp=Wp, L=L)

    out_flat = pl.pallas_call(
        kernel,
        out_shape=jax.ShapeDtypeStruct((N, Cout_p, L), jnp.float32),
        grid_spec=pltpu.PrefetchScalarGridSpec(
            num_scalar_prefetch=0,
            grid=grid,
            in_specs=[
                pl.BlockSpec((Nb, Cin, Lxp), lambda n: (n, 0, 0)),
                pl.BlockSpec((Cout_p, KKC), lambda n: (0, 0)),    # resident weights
                pl.BlockSpec((Cout_p, 1), lambda n: (0, 0)),      # resident bias
            ],
            out_specs=pl.BlockSpec((Nb, Cout_p, L), lambda n: (n, 0, 0)),
        ),
        compiler_params=pltpu.CompilerParams(
            dimension_semantics=("parallel",),
            vmem_limit_bytes=vmem_limit),
        cost_estimate=cost,
    )(xp, w_flat, b2d)

    # (N, Cout_p, H*Wp) -> (N, Cout_p, H, Wp): free reshape; then drop the padded-width
    # columns and padded channels (tiny slice over a Cout-channel tensor).
    return out_flat.reshape(N, Cout_p, H, Wp)[:, :Cout, :, :W]


# --------------------------------------------------------------------------------------
# Pure-JAX reference (lax conv) for correctness checking.
# --------------------------------------------------------------------------------------
def _reference_forward(x_nchw, weight_oihw, bias):
    x_pad = jnp.pad(x_nchw, ((0, 0), (0, 0), (PAD, PAD), (PAD, PAD)), mode="reflect")
    out = lax.conv_general_dilated(
        x_pad, weight_oihw, window_strides=(1, 1), padding="VALID",
        dimension_numbers=("NCHW", "OIHW", "NCHW"),
        precision=lax.Precision.HIGHEST)
    return jnp.tanh(out + bias.reshape(1, -1, 1, 1))


if __name__ == "__main__":
    key = jax.random.PRNGKey(0)
    k_x, k_w, k_b = jax.random.split(key, 3)

    N, Cin, H, W = 2, 4, 16, 16
    Cout = 3

    fan_in = Cin * K * K
    bound = 1.0 / (fan_in ** 0.5)
    x = jax.random.normal(k_x, (N, Cin, H, W), dtype=jnp.float32)
    weight = jax.random.uniform(k_w, (Cout, Cin, K, K), jnp.float32, -bound, bound)
    bias = jax.random.uniform(k_b, (Cout,), jnp.float32, -bound, bound)

    # Quantize test inputs to the bf16 grid so the check is insensitive to whether the
    # MXU executes the f32 matmul via bf16 passes (products are then exact either way).
    x = x.astype(jnp.bfloat16).astype(jnp.float32)
    weight = weight.astype(jnp.bfloat16).astype(jnp.float32)

    out = jax.block_until_ready(outconv_forward(x, weight, bias))
    ref = _reference_forward(x, weight, bias)

    assert out.shape == (N, Cout, H, W), out.shape
    max_err = float(jnp.max(jnp.abs(out - ref)))
    assert jnp.allclose(out, ref, atol=1e-4, rtol=1e-4), f"mismatch, max abs err {max_err}"
    print("KERNEL_OK")
</pallas_src>

<mosaic_0001>
module attributes {stable_mosaic.version = 11 : i64} {
  func.func @_outconv_kernel(%arg0: i32, %arg1: memref<1x4x512xf32, #tpu.memory_space<vmem>>, %arg2: memref<8x196xf32, #tpu.memory_space<vmem>>, %arg3: memref<8x1xf32, #tpu.memory_space<vmem>>, %arg4: memref<1x8x352xf32, #tpu.memory_space<vmem>>) attributes {dimension_semantics = [#tpu.dimension_semantics<parallel>], iteration_bounds = array<i64: 2>, scalar_prefetch = 0 : i64, scratch_operands = 0 : i64, tpu.core_type = #tpu.core_type<tc>, window_params = [{transform_indices = @transform_0, window_bounds = array<i64: 1, 4, 512>}, {pipeline_mode = #tpu.pipeline_mode<synchronous>, transform_indices = @transform_1, window_bounds = array<i64: 8, 196>}, {pipeline_mode = #tpu.pipeline_mode<synchronous>, transform_indices = @transform_2, window_bounds = array<i64: 8, 1>}, {transform_indices = @transform_3, window_bounds = array<i64: 1, 8, 352>}]} {
    %c0 = arith.constant 0 : index
    %c0_0 = arith.constant 0 : index
    %0 = vector.load %arg3[%c0, %c0_0] : memref<8x1xf32, #tpu.memory_space<vmem>>, vector<8x1xf32>
    %cst = arith.constant 0.000000e+00 : f32
    %1 = vector.broadcast %cst : f32 to vector<8x352xf32>
    %c0_1 = arith.constant 0 : index
    %c0_2 = arith.constant 0 : index
    %c0_3 = arith.constant 0 : index
    %2 = vector.load %arg1[%c0_1, %c0_2, %c0_3] : memref<1x4x512xf32, #tpu.memory_space<vmem>>, vector<1x4x352xf32>
    %3 = vector.shape_cast %2 : vector<1x4x352xf32> to vector<4x352xf32>
    %c0_4 = arith.constant 0 : index
    %c0_5 = arith.constant 0 : index
    %4 = vector.load %arg2[%c0_4, %c0_5] : memref<8x196xf32, #tpu.memory_space<vmem>>, vector<8x4xf32>
    %cst_6 = arith.constant dense<0.000000e+00> : vector<8x352xf32>
    %5 = tpu.matmul %4, %3, %cst_6 {dimension_numbers = #tpu.dot_dimension_numbers<[1], [0], [0], [1], [0, 0, 1, 1], [], []>} : vector<8x4xf32>, vector<4x352xf32>, vector<8x352xf32> -> vector<8x352xf32>
    %6 = arith.addf %1, %5 : vector<8x352xf32>
    %c0_7 = arith.constant 0 : index
    %c0_8 = arith.constant 0 : index
    %c1 = arith.constant 1 : index
    %7 = vector.load %arg1[%c0_7, %c0_8, %c1] : memref<1x4x512xf32, #tpu.memory_space<vmem>>, vector<1x4x352xf32>
    %8 = vector.shape_cast %7 : vector<1x4x352xf32> to vector<4x352xf32>
    %c0_9 = arith.constant 0 : index
    %c4 = arith.constant 4 : index
    %9 = vector.load %arg2[%c0_9, %c4] : memref<8x196xf32, #tpu.memory_space<vmem>>, vector<8x4xf32>
    %cst_10 = arith.constant dense<0.000000e+00> : vector<8x352xf32>
    %10 = tpu.matmul %9, %8, %cst_10 {dimension_numbers = #tpu.dot_dimension_numbers<[1], [0], [0], [1], [0, 0, 1, 1], [], []>} : vector<8x4xf32>, vector<4x352xf32>, vector<8x352xf32> -> vector<8x352xf32>
    %11 = arith.addf %6, %10 : vector<8x352xf32>
    %c0_11 = arith.constant 0 : index
    %c0_12 = arith.constant 0 : index
    %c2 = arith.constant 2 : index
    %12 = vector.load %arg1[%c0_11, %c0_12, %c2] : memref<1x4x512xf32, #tpu.memory_space<vmem>>, vector<1x4x352xf32>
    %13 = vector.shape_cast %12 : vector<1x4x352xf32> to vector<4x352xf32>
    %c0_13 = arith.constant 0 : index
    %c8 = arith.constant 8 : index
    %14 = vector.load %arg2[%c0_13, %c8] : memref<8x196xf32, #tpu.memory_space<vmem>>, vector<8x4xf32>
    %cst_14 = arith.constant dense<0.000000e+00> : vector<8x352xf32>
    %15 = tpu.matmul %14, %13, %cst_14 {dimension_numbers = #tpu.dot_dimension_numbers<[1], [0], [0], [1], [0, 0, 1, 1], [], []>} : vector<8x4xf32>, vector<4x352xf32>, vector<8x352xf32> -> vector<8x352xf32>
    %16 = arith.addf %11, %15 : vector<8x352xf32>
    %c0_15 = arith.constant 0 : index
    %c0_16 = arith.constant 0 : index
    %c3 = arith.constant 3 : index
    %17 = vector.load %arg1[%c0_15, %c0_16, %c3] : memref<1x4x512xf32, #tpu.memory_space<vmem>>, vector<1x4x352xf32>
    %18 = vector.shape_cast %17 : vector<1x4x352xf32> to vector<4x352xf32>
    %c0_17 = arith.constant 0 : index
    %c12 = arith.constant 12 : index
    %19 = vector.load %arg2[%c0_17, %c12] : memref<8x196xf32, #tpu.memory_space<vmem>>, vector<8x4xf32>
    %cst_18 = arith.constant dense<0.000000e+00> : vector<8x352xf32>
    %20 = tpu.matmul %19, %18, %cst_18 {dimension_numbers = #tpu.dot_dimension_numbers<[1], [0], [0], [1], [0, 0, 1, 1], [], []>} : vector<8x4xf32>, vector<4x352xf32>, vector<8x352xf32> -> vector<8x352xf32>
    %21 = arith.addf %16, %20 : vector<8x352xf32>
    %c0_19 = arith.constant 0 : index
    %c0_20 = arith.constant 0 : index
    %c4_21 = arith.constant 4 : index
    %22 = vector.load %arg1[%c0_19, %c0_20, %c4_21] : memref<1x4x512xf32, #tpu.memory_space<vmem>>, vector<1x4x352xf32>
    %23 = vector.shape_cast %22 : vector<1x4x352xf32> to vector<4x352xf32>
    %c0_22 = arith.constant 0 : index
    %c16 = arith.constant 16 : index
    %24 = vector.load %arg2[%c0_22, %c16] : memref<8x196xf32, #tpu.memory_space<vmem>>, vector<8x4xf32>
    %cst_23 = arith.constant dense<0.000000e+00> : vector<8x352xf32>
    %25 = tpu.matmul %24, %23, %cst_23 {dimension_numbers = #tpu.dot_dimension_numbers<[1], [0], [0], [1], [0, 0, 1, 1], [], []>} : vector<8x4xf32>, vector<4x352xf32>, vector<8x352xf32> -> vector<8x352xf32>
    %26 = arith.addf %21, %25 : vector<8x352xf32>
    %c0_24 = arith.constant 0 : index
    %c0_25 = arith.constant 0 : index
    %c5 = arith.constant 5 : index
    %27 = vector.load %arg1[%c0_24, %c0_25, %c5] : memref<1x4x512xf32, #tpu.memory_space<vmem>>, vector<1x4x352xf32>
    %28 = vector.shape_cast %27 : vector<1x4x352xf32> to vector<4x352xf32>
    %c0_26 = arith.constant 0 : index
    %c20 = arith.constant 20 : index
    %29 = vector.load %arg2[%c0_26, %c20] : memref<8x196xf32, #tpu.memory_space<vmem>>, vector<8x4xf32>
    %cst_27 = arith.constant dense<0.000000e+00> : vector<8x352xf32>
    %30 = tpu.matmul %29, %28, %cst_27 {dimension_numbers = #tpu.dot_dimension_numbers<[1], [0], [0], [1], [0, 0, 1, 1], [], []>} : vector<8x4xf32>, vector<4x352xf32>, vector<8x352xf32> -> vector<8x352xf32>
    %31 = arith.addf %26, %30 : vector<8x352xf32>
    %c0_28 = arith.constant 0 : index
    %c0_29 = arith.constant 0 : index
    %c6 = arith.constant 6 : index
    %32 = vector.load %arg1[%c0_28, %c0_29, %c6] : memref<1x4x512xf32, #tpu.memory_space<vmem>>, vector<1x4x352xf32>
    %33 = vector.shape_cast %32 : vector<1x4x352xf32> to vector<4x352xf32>
    %c0_30 = arith.constant 0 : index
    %c24 = arith.constant 24 : index
    %34 = vector.load %arg2[%c0_30, %c24] : memref<8x196xf32, #tpu.memory_space<vmem>>, vector<8x4xf32>
    %cst_31 = arith.constant dense<0.000000e+00> : vector<8x352xf32>
    %35 = tpu.matmul %34, %33, %cst_31 {dimension_numbers = #tpu.dot_dimension_numbers<[1], [0], [0], [1], [0, 0, 1, 1], [], []>} : vector<8x4xf32>, vector<4x352xf32>, vector<8x352xf32> -> vector<8x352xf32>
    %36 = arith.addf %31, %35 : vector<8x352xf32>
    %c0_32 = arith.constant 0 : index
    %c0_33 = arith.constant 0 : index
    %c22 = arith.constant 22 : index
    %37 = vector.load %arg1[%c0_32, %c0_33, %c22] : memref<1x4x512xf32, #tpu.memory_space<vmem>>, vector<1x4x352xf32>
    %38 = vector.shape_cast %37 : vector<1x4x352xf32> to vector<4x352xf32>
    %c0_34 = arith.constant 0 : index
    %c28 = arith.constant 28 : index
    %39 = vector.load %arg2[%c0_34, %c28] : memref<8x196xf32, #tpu.memory_space<vmem>>, vector<8x4xf32>
    %cst_35 = arith.constant dense<0.000000e+00> : vector<8x352xf32>
    %40 = tpu.matmul %39, %38, %cst_35 {dimension_numbers = #tpu.dot_dimension_numbers<[1], [0], [0], [1], [0, 0, 1, 1], [], []>} : vector<8x4xf32>, vector<4x352xf32>, vector<8x352xf32> -> vector<8x352xf32>
    %41 = arith.addf %36, %40 : vector<8x352xf32>
    %c0_36 = arith.constant 0 : index
    %c0_37 = arith.constant 0 : index
    %c23 = arith.constant 23 : index
    %42 = vector.load %arg1[%c0_36, %c0_37, %c23] : memref<1x4x512xf32, #tpu.memory_space<vmem>>, vector<1x4x352xf32>
    %43 = vector.shape_cast %42 : vector<1x4x352xf32> to vector<4x352xf32>
    %c0_38 = arith.constant 0 : index
    %c32 = arith.constant 32 : index
    %44 = vector.load %arg2[%c0_38, %c32] : memref<8x196xf32, #tpu.memory_space<vmem>>, vector<8x4xf32>
    %cst_39 = arith.constant dense<0.000000e+00> : vector<8x352xf32>
    %45 = tpu.matmul %44, %43, %cst_39 {dimension_numbers = #tpu.dot_dimension_numbers<[1], [0], [0], [1], [0, 0, 1, 1], [], []>} : vector<8x4xf32>, vector<4x352xf32>, vector<8x352xf32> -> vector<8x352xf32>
    %46 = arith.addf %41, %45 : vector<8x352xf32>
    %c0_40 = arith.constant 0 : index
    %c0_41 = arith.constant 0 : index
    %c24_42 = arith.constant 24 : index
    %47 = vector.load %arg1[%c0_40, %c0_41, %c24_42] : memref<1x4x512xf32, #tpu.memory_space<vmem>>, vector<1x4x352xf32>
    %48 = vector.shape_cast %47 : vector<1x4x352xf32> to vector<4x352xf32>
    %c0_43 = arith.constant 0 : index
    %c36 = arith.constant 36 : index
    %49 = vector.load %arg2[%c0_43, %c36] : memref<8x196xf32, #tpu.memory_space<vmem>>, vector<8x4xf32>
    %cst_44 = arith.constant dense<0.000000e+00> : vector<8x352xf32>
    %50 = tpu.matmul %49, %48, %cst_44 {dimension_numbers = #tpu.dot_dimension_numbers<[1], [0], [0], [1], [0, 0, 1, 1], [], []>} : vector<8x4xf32>, vector<4x352xf32>, vector<8x352xf32> -> vector<8x352xf32>
    %51 = arith.addf %46, %50 : vector<8x352xf32>
    %c0_45 = arith.constant 0 : index
    %c0_46 = arith.constant 0 : index
    %c25 = arith.constant 25 : index
    %52 = vector.load %arg1[%c0_45, %c0_46, %c25] : memref<1x4x512xf32, #tpu.memory_space<vmem>>, vector<1x4x352xf32>
    %53 = vector.shape_cast %52 : vector<1x4x352xf32> to vector<4x352xf32>
    %c0_47 = arith.constant 0 : index
    %c40 = arith.constant 40 : index
    %54 = vector.load %arg2[%c0_47, %c40] : memref<8x196xf32, #tpu.memory_space<vmem>>, vector<8x4xf32>
    %cst_48 = arith.constant dense<0.000000e+00> : vector<8x352xf32>
    %55 = tpu.matmul %54, %53, %cst_48 {dimension_numbers = #tpu.dot_dimension_numbers<[1], [0], [0], [1], [0, 0, 1, 1], [], []>} : vector<8x4xf32>, vector<4x352xf32>, vector<8x352xf32> -> vector<8x352xf32>
    %56 = arith.addf %51, %55 : vector<8x352xf32>
    %c0_49 = arith.constant 0 : index
    %c0_50 = arith.constant 0 : index
    %c26 = arith.constant 26 : index
    %57 = vector.load %arg1[%c0_49, %c0_50, %c26] : memref<1x4x512xf32, #tpu.memory_space<vmem>>, vector<1x4x352xf32>
    %58 = vector.shape_cast %57 : vector<1x4x352xf32> to vector<4x352xf32>
    %c0_51 = arith.constant 0 : index
    %c44 = arith.constant 44 : index
    %59 = vector.load %arg2[%c0_51, %c44] : memref<8x196xf32, #tpu.memory_space<vmem>>, vector<8x4xf32>
    %cst_52 = arith.constant dense<0.000000e+00> : vector<8x352xf32>
    %60 = tpu.matmul %59, %58, %cst_52 {dimension_numbers = #tpu.dot_dimension_numbers<[1], [0], [0], [1], [0, 0, 1, 1], [], []>} : vector<8x4xf32>, vector<4x352xf32>, vector<8x352xf32> -> vector<8x352xf32>
    %61 = arith.addf %56, %60 : vector<8x352xf32>
    %c0_53 = arith.constant 0 : index
    %c0_54 = arith.constant 0 : index
    %c27 = arith.constant 27 : index
    %62 = vector.load %arg1[%c0_53, %c0_54, %c27] : memref<1x4x512xf32, #tpu.memory_space<vmem>>, vector<1x4x352xf32>
    %63 = vector.shape_cast %62 : vector<1x4x352xf32> to vector<4x352xf32>
    %c0_55 = arith.constant 0 : index
    %c48 = arith.constant 48 : index
    %64 = vector.load %arg2[%c0_55, %c48] : memref<8x196xf32, #tpu.memory_space<vmem>>, vector<8x4xf32>
    %cst_56 = arith.constant dense<0.000000e+00> : vector<8x352xf32>
    %65 = tpu.matmul %64, %63, %cst_56 {dimension_numbers = #tpu.dot_dimension_numbers<[1], [0], [0], [1], [0, 0, 1, 1], [], []>} : vector<8x4xf32>, vector<4x352xf32>, vector<8x352xf32> -> vector<8x352xf32>
    %66 = arith.addf %61, %65 : vector<8x352xf32>
    %c0_57 = arith.constant 0 : index
    %c0_58 = arith.constant 0 : index
    %c28_59 = arith.constant 28 : index
    %67 = vector.load %arg1[%c0_57, %c0_58, %c28_59] : memref<1x4x512xf32, #tpu.memory_space<vmem>>, vector<1x4x352xf32>
    %68 = vector.shape_cast %67 : vector<1x4x352xf32> to vector<4x352xf32>
    %c0_60 = arith.constant 0 : index
    %c52 = arith.constant 52 : index
    %69 = vector.load %arg2[%c0_60, %c52] : memref<8x196xf32, #tpu.memory_space<vmem>>, vector<8x4xf32>
    %cst_61 = arith.constant dense<0.000000e+00> : vector<8x352xf32>
    %70 = tpu.matmul %69, %68, %cst_61 {dimension_numbers = #tpu.dot_dimension_numbers<[1], [0], [0], [1], [0, 0, 1, 1], [], []>} : vector<8x4xf32>, vector<4x352xf32>, vector<8x352xf32> -> vector<8x352xf32>
    %71 = arith.addf %66, %70 : vector<8x352xf32>
    %c0_62 = arith.constant 0 : index
    %c0_63 = arith.constant 0 : index
    %c44_64 = arith.constant 44 : index
    %72 = vector.load %arg1[%c0_62, %c0_63, %c44_64] : memref<1x4x512xf32, #tpu.memory_space<vmem>>, vector<1x4x352xf32>
    %73 = vector.shape_cast %72 : vector<1x4x352xf32> to vector<4x352xf32>
    %c0_65 = arith.constant 0 : index
    %c56 = arith.constant 56 : index
    %74 = vector.load %arg2[%c0_65, %c56] : memref<8x196xf32, #tpu.memory_space<vmem>>, vector<8x4xf32>
    %cst_66 = arith.constant dense<0.000000e+00> : vector<8x352xf32>
    %75 = tpu.matmul %74, %73, %cst_66 {dimension_numbers = #tpu.dot_dimension_numbers<[1], [0], [0], [1], [0, 0, 1, 1], [], []>} : vector<8x4xf32>, vector<4x352xf32>, vector<8x352xf32> -> vector<8x352xf32>
    %76 = arith.addf %71, %75 : vector<8x352xf32>
    %c0_67 = arith.constant 0 : index
    %c0_68 = arith.constant 0 : index
    %c45 = arith.constant 45 : index
    %77 = vector.load %arg1[%c0_67, %c0_68, %c45] : memref<1x4x512xf32, #tpu.memory_space<vmem>>, vector<1x4x352xf32>
    %78 = vector.shape_cast %77 : vector<1x4x352xf32> to vector<4x352xf32>
    %c0_69 = arith.constant 0 : index
    %c60 = arith.constant 60 : index
    %79 = vector.load %arg2[%c0_69, %c60] : memref<8x196xf32, #tpu.memory_space<vmem>>, vector<8x4xf32>
    %cst_70 = arith.constant dense<0.000000e+00> : vector<8x352xf32>
    %80 = tpu.matmul %79, %78, %cst_70 {dimension_numbers = #tpu.dot_dimension_numbers<[1], [0], [0], [1], [0, 0, 1, 1], [], []>} : vector<8x4xf32>, vector<4x352xf32>, vector<8x352xf32> -> vector<8x352xf32>
    %81 = arith.addf %76, %80 : vector<8x352xf32>
    %c0_71 = arith.constant 0 : index
    %c0_72 = arith.constant 0 : index
    %c46 = arith.constant 46 : index
    %82 = vector.load %arg1[%c0_71, %c0_72, %c46] : memref<1x4x512xf32, #tpu.memory_space<vmem>>, vector<1x4x352xf32>
    %83 = vector.shape_cast %82 : vector<1x4x352xf32> to vector<4x352xf32>
    %c0_73 = arith.constant 0 : index
    %c64 = arith.constant 64 : index
    %84 = vector.load %arg2[%c0_73, %c64] : memref<8x196xf32, #tpu.memory_space<vmem>>, vector<8x4xf32>
    %cst_74 = arith.constant dense<0.000000e+00> : vector<8x352xf32>
    %85 = tpu.matmul %84, %83, %cst_74 {dimension_numbers = #tpu.dot_dimension_numbers<[1], [0], [0], [1], [0, 0, 1, 1], [], []>} : vector<8x4xf32>, vector<4x352xf32>, vector<8x352xf32> -> vector<8x352xf32>
    %86 = arith.addf %81, %85 : vector<8x352xf32>
    %c0_75 = arith.constant 0 : index
    %c0_76 = arith.constant 0 : index
    %c47 = arith.constant 47 : index
    %87 = vector.load %arg1[%c0_75, %c0_76, %c47] : memref<1x4x512xf32, #tpu.memory_space<vmem>>, vector<1x4x352xf32>
    %88 = vector.shape_cast %87 : vector<1x4x352xf32> to vector<4x352xf32>
    %c0_77 = arith.constant 0 : index
    %c68 = arith.constant 68 : index
    %89 = vector.load %arg2[%c0_77, %c68] : memref<8x196xf32, #tpu.memory_space<vmem>>, vector<8x4xf32>
    %cst_78 = arith.constant dense<0.000000e+00> : vector<8x352xf32>
    %90 = tpu.matmul %89, %88, %cst_78 {dimension_numbers = #tpu.dot_dimension_numbers<[1], [0], [0], [1], [0, 0, 1, 1], [], []>} : vector<8x4xf32>, vector<4x352xf32>, vector<8x352xf32> -> vector<8x352xf32>
    %91 = arith.addf %86, %90 : vector<8x352xf32>
    %c0_79 = arith.constant 0 : index
    %c0_80 = arith.constant 0 : index
    %c48_81 = arith.constant 48 : index
    %92 = vector.load %arg1[%c0_79, %c0_80, %c48_81] : memref<1x4x512xf32, #tpu.memory_space<vmem>>, vector<1x4x352xf32>
    %93 = vector.shape_cast %92 : vector<1x4x352xf32> to vector<4x352xf32>
    %c0_82 = arith.constant 0 : index
    %c72 = arith.constant 72 : index
    %94 = vector.load %arg2[%c0_82, %c72] : memref<8x196xf32, #tpu.memory_space<vmem>>, vector<8x4xf32>
    %cst_83 = arith.constant dense<0.000000e+00> : vector<8x352xf32>
    %95 = tpu.matmul %94, %93, %cst_83 {dimension_numbers = #tpu.dot_dimension_numbers<[1], [0], [0], [1], [0, 0, 1, 1], [], []>} : vector<8x4xf32>, vector<4x352xf32>, vector<8x352xf32> -> vector<8x352xf32>
    %96 = arith.addf %91, %95 : vector<8x352xf32>
    %c0_84 = arith.constant 0 : index
    %c0_85 = arith.constant 0 : index
    %c49 = arith.constant 49 : index
    %97 = vector.load %arg1[%c0_84, %c0_85, %c49] : memref<1x4x512xf32, #tpu.memory_space<vmem>>, vector<1x4x352xf32>
    %98 = vector.shape_cast %97 : vector<1x4x352xf32> to vector<4x352xf32>
    %c0_86 = arith.constant 0 : index
    %c76 = arith.constant 76 : index
    %99 = vector.load %arg2[%c0_86, %c76] : memref<8x196xf32, #tpu.memory_space<vmem>>, vector<8x4xf32>
    %cst_87 = arith.constant dense<0.000000e+00> : vector<8x352xf32>
    %100 = tpu.matmul %99, %98, %cst_87 {dimension_numbers = #tpu.dot_dimension_numbers<[1], [0], [0], [1], [0, 0, 1, 1], [], []>} : vector<8x4xf32>, vector<4x352xf32>, vector<8x352xf32> -> vector<8x352xf32>
    %101 = arith.addf %96, %100 : vector<8x352xf32>
    %c0_88 = arith.constant 0 : index
    %c0_89 = arith.constant 0 : index
    %c50 = arith.constant 50 : index
    %102 = vector.load %arg1[%c0_88, %c0_89, %c50] : memref<1x4x512xf32, #tpu.memory_space<vmem>>, vector<1x4x352xf32>
    %103 = vector.shape_cast %102 : vector<1x4x352xf32> to vector<4x352xf32>
    %c0_90 = arith.constant 0 : index
    %c80 = arith.constant 80 : index
    %104 = vector.load %arg2[%c0_90, %c80] : memref<8x196xf32, #tpu.memory_space<vmem>>, vector<8x4xf32>
    %cst_91 = arith.constant dense<0.000000e+00> : vector<8x352xf32>
    %105 = tpu.matmul %104, %103, %cst_91 {dimension_numbers = #tpu.dot_dimension_numbers<[1], [0], [0], [1], [0, 0, 1, 1], [], []>} : vector<8x4xf32>, vector<4x352xf32>, vector<8x352xf32> -> vector<8x352xf32>
    %106 = arith.addf %101, %105 : vector<8x352xf32>
    %c0_92 = arith.constant 0 : index
    %c0_93 = arith.constant 0 : index
    %c66 = arith.constant 66 : index
    %107 = vector.load %arg1[%c0_92, %c0_93, %c66] : memref<1x4x512xf32, #tpu.memory_space<vmem>>, vector<1x4x352xf32>
    %108 = vector.shape_cast %107 : vector<1x4x352xf32> to vector<4x352xf32>
    %c0_94 = arith.constant 0 : index
    %c84 = arith.constant 84 : index
    %109 = vector.load %arg2[%c0_94, %c84] : memref<8x196xf32, #tpu.memory_space<vmem>>, vector<8x4xf32>
    %cst_95 = arith.constant dense<0.000000e+00> : vector<8x352xf32>
    %110 = tpu.matmul %109, %108, %cst_95 {dimension_numbers = #tpu.dot_dimension_numbers<[1], [0], [0], [1], [0, 0, 1, 1], [], []>} : vector<8x4xf32>, vector<4x352xf32>, vector<8x352xf32> -> vector<8x352xf32>
    %111 = arith.addf %106, %110 : vector<8x352xf32>
    %c0_96 = arith.constant 0 : index
    %c0_97 = arith.constant 0 : index
    %c67 = arith.constant 67 : index
    %112 = vector.load %arg1[%c0_96, %c0_97, %c67] : memref<1x4x512xf32, #tpu.memory_space<vmem>>, vector<1x4x352xf32>
    %113 = vector.shape_cast %112 : vector<1x4x352xf32> to vector<4x352xf32>
    %c0_98 = arith.constant 0 : index
    %c88 = arith.constant 88 : index
    %114 = vector.load %arg2[%c0_98, %c88] : memref<8x196xf32, #tpu.memory_space<vmem>>, vector<8x4xf32>
    %cst_99 = arith.constant dense<0.000000e+00> : vector<8x352xf32>
    %115 = tpu.matmul %114, %113, %cst_99 {dimension_numbers = #tpu.dot_dimension_numbers<[1], [0], [0], [1], [0, 0, 1, 1], [], []>} : vector<8x4xf32>, vector<4x352xf32>, vector<8x352xf32> -> vector<8x352xf32>
    %116 = arith.addf %111, %115 : vector<8x352xf32>
    %c0_100 = arith.constant 0 : index
    %c0_101 = arith.constant 0 : index
    %c68_102 = arith.constant 68 : index
    %117 = vector.load %arg1[%c0_100, %c0_101, %c68_102] : memref<1x4x512xf32, #tpu.memory_space<vmem>>, vector<1x4x352xf32>
    %118 = vector.shape_cast %117 : vector<1x4x352xf32> to vector<4x352xf32>
    %c0_103 = arith.constant 0 : index
    %c92 = arith.constant 92 : index
    %119 = vector.load %arg2[%c0_103, %c92] : memref<8x196xf32, #tpu.memory_space<vmem>>, vector<8x4xf32>
    %cst_104 = arith.constant dense<0.000000e+00> : vector<8x352xf32>
    %120 = tpu.matmul %119, %118, %cst_104 {dimension_numbers = #tpu.dot_dimension_numbers<[1], [0], [0], [1], [0, 0, 1, 1], [], []>} : vector<8x4xf32>, vector<4x352xf32>, vector<8x352xf32> -> vector<8x352xf32>
    %121 = arith.addf %116, %120 : vector<8x352xf32>
    %c0_105 = arith.constant 0 : index
    %c0_106 = arith.constant 0 : index
    %c69 = arith.constant 69 : index
    %122 = vector.load %arg1[%c0_105, %c0_106, %c69] : memref<1x4x512xf32, #tpu.memory_space<vmem>>, vector<1x4x352xf32>
    %123 = vector.shape_cast %122 : vector<1x4x352xf32> to vector<4x352xf32>
    %c0_107 = arith.constant 0 : index
    %c96 = arith.constant 96 : index
    %124 = vector.load %arg2[%c0_107, %c96] : memref<8x196xf32, #tpu.memory_space<vmem>>, vector<8x4xf32>
    %cst_108 = arith.constant dense<0.000000e+00> : vector<8x352xf32>
    %125 = tpu.matmul %124, %123, %cst_108 {dimension_numbers = #tpu.dot_dimension_numbers<[1], [0], [0], [1], [0, 0, 1, 1], [], []>} : vector<8x4xf32>, vector<4x352xf32>, vector<8x352xf32> -> vector<8x352xf32>
    %126 = arith.addf %121, %125 : vector<8x352xf32>
    %c0_109 = arith.constant 0 : index
    %c0_110 = arith.constant 0 : index
    %c70 = arith.constant 70 : index
    %127 = vector.load %arg1[%c0_109, %c0_110, %c70] : memref<1x4x512xf32, #tpu.memory_space<vmem>>, vector<1x4x352xf32>
    %128 = vector.shape_cast %127 : vector<1x4x352xf32> to vector<4x352xf32>
    %c0_111 = arith.constant 0 : index
    %c100 = arith.constant 100 : index
    %129 = vector.load %arg2[%c0_111, %c100] : memref<8x196xf32, #tpu.memory_space<vmem>>, vector<8x4xf32>
    %cst_112 = arith.constant dense<0.000000e+00> : vector<8x352xf32>
    %130 = tpu.matmul %129, %128, %cst_112 {dimension_numbers = #tpu.dot_dimension_numbers<[1], [0], [0], [1], [0, 0, 1, 1], [], []>} : vector<8x4xf32>, vector<4x352xf32>, vector<8x352xf32> -> vector<8x352xf32>
    %131 = arith.addf %126, %130 : vector<8x352xf32>
    %c0_113 = arith.constant 0 : index
    %c0_114 = arith.constant 0 : index
    %c71 = arith.constant 71 : index
    %132 = vector.load %arg1[%c0_113, %c0_114, %c71] : memref<1x4x512xf32, #tpu.memory_space<vmem>>, vector<1x4x352xf32>
    %133 = vector.shape_cast %132 : vector<1x4x352xf32> to vector<4x352xf32>
    %c0_115 = arith.constant 0 : index
    %c104 = arith.constant 104 : index
    %134 = vector.load %arg2[%c0_115, %c104] : memref<8x196xf32, #tpu.memory_space<vmem>>, vector<8x4xf32>
    %cst_116 = arith.constant dense<0.000000e+00> : vector<8x352xf32>
    %135 = tpu.matmul %134, %133, %cst_116 {dimension_numbers = #tpu.dot_dimension_numbers<[1], [0], [0], [1], [0, 0, 1, 1], [], []>} : vector<8x4xf32>, vector<4x352xf32>, vector<8x352xf32> -> vector<8x352xf32>
    %136 = arith.addf %131, %135 : vector<8x352xf32>
    %c0_117 = arith.constant 0 : index
    %c0_118 = arith.constant 0 : index
    %c72_119 = arith.constant 72 : index
    %137 = vector.load %arg1[%c0_117, %c0_118, %c72_119] : memref<1x4x512xf32, #tpu.memory_space<vmem>>, vector<1x4x352xf32>
    %138 = vector.shape_cast %137 : vector<1x4x352xf32> to vector<4x352xf32>
    %c0_120 = arith.constant 0 : index
    %c108 = arith.constant 108 : index
    %139 = vector.load %arg2[%c0_120, %c108] : memref<8x196xf32, #tpu.memory_space<vmem>>, vector<8x4xf32>
    %cst_121 = arith.constant dense<0.000000e+00> : vector<8x352xf32>
    %140 = tpu.matmul %139, %138, %cst_121 {dimension_numbers = #tpu.dot_dimension_numbers<[1], [0], [0], [1], [0, 0, 1, 1], [], []>} : vector<8x4xf32>, vector<4x352xf32>, vector<8x352xf32> -> vector<8x352xf32>
    %141 = arith.addf %136, %140 : vector<8x352xf32>
    %c0_122 = arith.constant 0 : index
    %c0_123 = arith.constant 0 : index
    %c88_124 = arith.constant 88 : index
    %142 = vector.load %arg1[%c0_122, %c0_123, %c88_124] : memref<1x4x512xf32, #tpu.memory_space<vmem>>, vector<1x4x352xf32>
    %143 = vector.shape_cast %142 : vector<1x4x352xf32> to vector<4x352xf32>
    %c0_125 = arith.constant 0 : index
    %c112 = arith.constant 112 : index
    %144 = vector.load %arg2[%c0_125, %c112] : memref<8x196xf32, #tpu.memory_space<vmem>>, vector<8x4xf32>
    %cst_126 = arith.constant dense<0.000000e+00> : vector<8x352xf32>
    %145 = tpu.matmul %144, %143, %cst_126 {dimension_numbers = #tpu.dot_dimension_numbers<[1], [0], [0], [1], [0, 0, 1, 1], [], []>} : vector<8x4xf32>, vector<4x352xf32>, vector<8x352xf32> -> vector<8x352xf32>
    %146 = arith.addf %141, %145 : vector<8x352xf32>
    %c0_127 = arith.constant 0 : index
    %c0_128 = arith.constant 0 : index
    %c89 = arith.constant 89 : index
    %147 = vector.load %arg1[%c0_127, %c0_128, %c89] : memref<1x4x512xf32, #tpu.memory_space<vmem>>, vector<1x4x352xf32>
    %148 = vector.shape_cast %147 : vector<1x4x352xf32> to vector<4x352xf32>
    %c0_129 = arith.constant 0 : index
    %c116 = arith.constant 116 : index
    %149 = vector.load %arg2[%c0_129, %c116] : memref<8x196xf32, #tpu.memory_space<vmem>>, vector<8x4xf32>
    %cst_130 = arith.constant dense<0.000000e+00> : vector<8x352xf32>
    %150 = tpu.matmul %149, %148, %cst_130 {dimension_numbers = #tpu.dot_dimension_numbers<[1], [0], [0], [1], [0, 0, 1, 1], [], []>} : vector<8x4xf32>, vector<4x352xf32>, vector<8x352xf32> -> vector<8x352xf32>
    %151 = arith.addf %146, %150 : vector<8x352xf32>
    %c0_131 = arith.constant 0 : index
    %c0_132 = arith.constant 0 : index
    %c90 = arith.constant 90 : index
    %152 = vector.load %arg1[%c0_131, %c0_132, %c90] : memref<1x4x512xf32, #tpu.memory_space<vmem>>, vector<1x4x352xf32>
    %153 = vector.shape_cast %152 : vector<1x4x352xf32> to vector<4x352xf32>
    %c0_133 = arith.constant 0 : index
    %c120 = arith.constant 120 : index
    %154 = vector.load %arg2[%c0_133, %c120] : memref<8x196xf32, #tpu.memory_space<vmem>>, vector<8x4xf32>
    %cst_134 = arith.constant dense<0.000000e+00> : vector<8x352xf32>
    %155 = tpu.matmul %154, %153, %cst_134 {dimension_numbers = #tpu.dot_dimension_numbers<[1], [0], [0], [1], [0, 0, 1, 1], [], []>} : vector<8x4xf32>, vector<4x352xf32>, vector<8x352xf32> -> vector<8x352xf32>
    %156 = arith.addf %151, %155 : vector<8x352xf32>
    %c0_135 = arith.constant 0 : index
    %c0_136 = arith.constant 0 : index
    %c91 = arith.constant 91 : index
    %157 = vector.load %arg1[%c0_135, %c0_136, %c91] : memref<1x4x512xf32, #tpu.memory_space<vmem>>, vector<1x4x352xf32>
    %158 = vector.shape_cast %157 : vector<1x4x352xf32> to vector<4x352xf32>
    %c0_137 = arith.constant 0 : index
    %c124 = arith.constant 124 : index
    %159 = vector.load %arg2[%c0_137, %c124] : memref<8x196xf32, #tpu.memory_space<vmem>>, vector<8x4xf32>
    %cst_138 = arith.constant dense<0.000000e+00> : vector<8x352xf32>
    %160 = tpu.matmul %159, %158, %cst_138 {dimension_numbers = #tpu.dot_dimension_numbers<[1], [0], [0], [1], [0, 0, 1, 1], [], []>} : vector<8x4xf32>, vector<4x352xf32>, vector<8x352xf32> -> vector<8x352xf32>
    %161 = arith.addf %156, %160 : vector<8x352xf32>
    %c0_139 = arith.constant 0 : index
    %c0_140 = arith.constant 0 : index
    %c92_141 = arith.constant 92 : index
    %162 = vector.load %arg1[%c0_139, %c0_140, %c92_141] : memref<1x4x512xf32, #tpu.memory_space<vmem>>, vector<1x4x352xf32>
    %163 = vector.shape_cast %162 : vector<1x4x352xf32> to vector<4x352xf32>
    %c0_142 = arith.constant 0 : index
    %c128 = arith.constant 128 : index
    %164 = vector.load %arg2[%c0_142, %c128] : memref<8x196xf32, #tpu.memory_space<vmem>>, vector<8x4xf32>
    %cst_143 = arith.constant dense<0.000000e+00> : vector<8x352xf32>
    %165 = tpu.matmul %164, %163, %cst_143 {dimension_numbers = #tpu.dot_dimension_numbers<[1], [0], [0], [1], [0, 0, 1, 1], [], []>} : vector<8x4xf32>, vector<4x352xf32>, vector<8x352xf32> -> vector<8x352xf32>
    %166 = arith.addf %161, %165 : vector<8x352xf32>
    %c0_144 = arith.constant 0 : index
    %c0_145 = arith.constant 0 : index
    %c93 = arith.constant 93 : index
    %167 = vector.load %arg1[%c0_144, %c0_145, %c93] : memref<1x4x512xf32, #tpu.memory_space<vmem>>, vector<1x4x352xf32>
    %168 = vector.shape_cast %167 : vector<1x4x352xf32> to vector<4x352xf32>
    %c0_146 = arith.constant 0 : index
    %c132 = arith.constant 132 : index
    %169 = vector.load %arg2[%c0_146, %c132] : memref<8x196xf32, #tpu.memory_space<vmem>>, vector<8x4xf32>
    %cst_147 = arith.constant dense<0.000000e+00> : vector<8x352xf32>
    %170 = tpu.matmul %169, %168, %cst_147 {dimension_numbers = #tpu.dot_dimension_numbers<[1], [0], [0], [1], [0, 0, 1, 1], [], []>} : vector<8x4xf32>, vector<4x352xf32>, vector<8x352xf32> -> vector<8x352xf32>
    %171 = arith.addf %166, %170 : vector<8x352xf32>
    %c0_148 = arith.constant 0 : index
    %c0_149 = arith.constant 0 : index
    %c94 = arith.constant 94 : index
    %172 = vector.load %arg1[%c0_148, %c0_149, %c94] : memref<1x4x512xf32, #tpu.memory_space<vmem>>, vector<1x4x352xf32>
    %173 = vector.shape_cast %172 : vector<1x4x352xf32> to vector<4x352xf32>
    %c0_150 = arith.constant 0 : index
    %c136 = arith.constant 136 : index
    %174 = vector.load %arg2[%c0_150, %c136] : memref<8x196xf32, #tpu.memory_space<vmem>>, vector<8x4xf32>
    %cst_151 = arith.constant dense<0.000000e+00> : vector<8x352xf32>
    %175 = tpu.matmul %174, %173, %cst_151 {dimension_numbers = #tpu.dot_dimension_numbers<[1], [0], [0], [1], [0, 0, 1, 1], [], []>} : vector<8x4xf32>, vector<4x352xf32>, vector<8x352xf32> -> vector<8x352xf32>
    %176 = arith.addf %171, %175 : vector<8x352xf32>
    %c0_152 = arith.constant 0 : index
    %c0_153 = arith.constant 0 : index
    %c110 = arith.constant 110 : index
    %177 = vector.load %arg1[%c0_152, %c0_153, %c110] : memref<1x4x512xf32, #tpu.memory_space<vmem>>, vector<1x4x352xf32>
    %178 = vector.shape_cast %177 : vector<1x4x352xf32> to vector<4x352xf32>
    %c0_154 = arith.constant 0 : index
    %c140 = arith.constant 140 : index
    %179 = vector.load %arg2[%c0_154, %c140] : memref<8x196xf32, #tpu.memory_space<vmem>>, vector<8x4xf32>
    %cst_155 = arith.constant dense<0.000000e+00> : vector<8x352xf32>
    %180 = tpu.matmul %179, %178, %cst_155 {dimension_numbers = #tpu.dot_dimension_numbers<[1], [0], [0], [1], [0, 0, 1, 1], [], []>} : vector<8x4xf32>, vector<4x352xf32>, vector<8x352xf32> -> vector<8x352xf32>
    %181 = arith.addf %176, %180 : vector<8x352xf32>
    %c0_156 = arith.constant 0 : index
    %c0_157 = arith.constant 0 : index
    %c111 = arith.constant 111 : index
    %182 = vector.load %arg1[%c0_156, %c0_157, %c111] : memref<1x4x512xf32, #tpu.memory_space<vmem>>, vector<1x4x352xf32>
    %183 = vector.shape_cast %182 : vector<1x4x352xf32> to vector<4x352xf32>
    %c0_158 = arith.constant 0 : index
    %c144 = arith.constant 144 : index
    %184 = vector.load %arg2[%c0_158, %c144] : memref<8x196xf32, #tpu.memory_space<vmem>>, vector<8x4xf32>
    %cst_159 = arith.constant dense<0.000000e+00> : vector<8x352xf32>
    %185 = tpu.matmul %184, %183, %cst_159 {dimension_numbers = #tpu.dot_dimension_numbers<[1], [0], [0], [1], [0, 0, 1, 1], [], []>} : vector<8x4xf32>, vector<4x352xf32>, vector<8x352xf32> -> vector<8x352xf32>
    %186 = arith.addf %181, %185 : vector<8x352xf32>
    %c0_160 = arith.constant 0 : index
    %c0_161 = arith.constant 0 : index
    %c112_162 = arith.constant 112 : index
    %187 = vector.load %arg1[%c0_160, %c0_161, %c112_162] : memref<1x4x512xf32, #tpu.memory_space<vmem>>, vector<1x4x352xf32>
    %188 = vector.shape_cast %187 : vector<1x4x352xf32> to vector<4x352xf32>
    %c0_163 = arith.constant 0 : index
    %c148 = arith.constant 148 : index
    %189 = vector.load %arg2[%c0_163, %c148] : memref<8x196xf32, #tpu.memory_space<vmem>>, vector<8x4xf32>
    %cst_164 = arith.constant dense<0.000000e+00> : vector<8x352xf32>
    %190 = tpu.matmul %189, %188, %cst_164 {dimension_numbers = #tpu.dot_dimension_numbers<[1], [0], [0], [1], [0, 0, 1, 1], [], []>} : vector<8x4xf32>, vector<4x352xf32>, vector<8x352xf32> -> vector<8x352xf32>
    %191 = arith.addf %186, %190 : vector<8x352xf32>
    %c0_165 = arith.constant 0 : index
    %c0_166 = arith.constant 0 : index
    %c113 = arith.constant 113 : index
    %192 = vector.load %arg1[%c0_165, %c0_166, %c113] : memref<1x4x512xf32, #tpu.memory_space<vmem>>, vector<1x4x352xf32>
    %193 = vector.shape_cast %192 : vector<1x4x352xf32> to vector<4x352xf32>
    %c0_167 = arith.constant 0 : index
    %c152 = arith.constant 152 : index
    %194 = vector.load %arg2[%c0_167, %c152] : memref<8x196xf32, #tpu.memory_space<vmem>>, vector<8x4xf32>
    %cst_168 = arith.constant dense<0.000000e+00> : vector<8x352xf32>
    %195 = tpu.matmul %194, %193, %cst_168 {dimension_numbers = #tpu.dot_dimension_numbers<[1], [0], [0], [1], [0, 0, 1, 1], [], []>} : vector<8x4xf32>, vector<4x352xf32>, vector<8x352xf32> -> vector<8x352xf32>
    %196 = arith.addf %191, %195 : vector<8x352xf32>
    %c0_169 = arith.constant 0 : index
    %c0_170 = arith.constant 0 : index
    %c114 = arith.constant 114 : index
    %197 = vector.load %arg1[%c0_169, %c0_170, %c114] : memref<1x4x512xf32, #tpu.memory_space<vmem>>, vector<1x4x352xf32>
    %198 = vector.shape_cast %197 : vector<1x4x352xf32> to vector<4x352xf32>
    %c0_171 = arith.constant 0 : index
    %c156 = arith.constant 156 : index
    %199 = vector.load %arg2[%c0_171, %c156] : memref<8x196xf32, #tpu.memory_space<vmem>>, vector<8x4xf32>
    %cst_172 = arith.constant dense<0.000000e+00> : vector<8x352xf32>
    %200 = tpu.matmul %199, %198, %cst_172 {dimension_numbers = #tpu.dot_dimension_numbers<[1], [0], [0], [1], [0, 0, 1, 1], [], []>} : vector<8x4xf32>, vector<4x352xf32>, vector<8x352xf32> -> vector<8x352xf32>
    %201 = arith.addf %196, %200 : vector<8x352xf32>
    %c0_173 = arith.constant 0 : index
    %c0_174 = arith.constant 0 : index
    %c115 = arith.constant 115 : index
    %202 = vector.load %arg1[%c0_173, %c0_174, %c115] : memref<1x4x512xf32, #tpu.memory_space<vmem>>, vector<1x4x352xf32>
    %203 = vector.shape_cast %202 : vector<1x4x352xf32> to vector<4x352xf32>
    %c0_175 = arith.constant 0 : index
    %c160 = arith.constant 160 : index
    %204 = vector.load %arg2[%c0_175, %c160] : memref<8x196xf32, #tpu.memory_space<vmem>>, vector<8x4xf32>
    %cst_176 = arith.constant dense<0.000000e+00> : vector<8x352xf32>
    %205 = tpu.matmul %204, %203, %cst_176 {dimension_numbers = #tpu.dot_dimension_numbers<[1], [0], [0], [1], [0, 0, 1, 1], [], []>} : vector<8x4xf32>, vector<4x352xf32>, vector<8x352xf32> -> vector<8x352xf32>
    %206 = arith.addf %201, %205 : vector<8x352xf32>
    %c0_177 = arith.constant 0 : index
    %c0_178 = arith.constant 0 : index
    %c116_179 = arith.constant 116 : index
    %207 = vector.load %arg1[%c0_177, %c0_178, %c116_179] : memref<1x4x512xf32, #tpu.memory_space<vmem>>, vector<1x4x352xf32>
    %208 = vector.shape_cast %207 : vector<1x4x352xf32> to vector<4x352xf32>
    %c0_180 = arith.constant 0 : index
    %c164 = arith.constant 164 : index
    %209 = vector.load %arg2[%c0_180, %c164] : memref<8x196xf32, #tpu.memory_space<vmem>>, vector<8x4xf32>
    %cst_181 = arith.constant dense<0.000000e+00> : vector<8x352xf32>
    %210 = tpu.matmul %209, %208, %cst_181 {dimension_numbers = #tpu.dot_dimension_numbers<[1], [0], [0], [1], [0, 0, 1, 1], [], []>} : vector<8x4xf32>, vector<4x352xf32>, vector<8x352xf32> -> vector<8x352xf32>
    %211 = arith.addf %206, %210 : vector<8x352xf32>
    %c0_182 = arith.constant 0 : index
    %c0_183 = arith.constant 0 : index
    %c132_184 = arith.constant 132 : index
    %212 = vector.load %arg1[%c0_182, %c0_183, %c132_184] : memref<1x4x512xf32, #tpu.memory_space<vmem>>, vector<1x4x352xf32>
    %213 = vector.shape_cast %212 : vector<1x4x352xf32> to vector<4x352xf32>
    %c0_185 = arith.constant 0 : index
    %c168 = arith.constant 168 : index
    %214 = vector.load %arg2[%c0_185, %c168] : memref<8x196xf32, #tpu.memory_space<vmem>>, vector<8x4xf32>
    %cst_186 = arith.constant dense<0.000000e+00> : vector<8x352xf32>
    %215 = tpu.matmul %214, %213, %cst_186 {dimension_numbers = #tpu.dot_dimension_numbers<[1], [0], [0], [1], [0, 0, 1, 1], [], []>} : vector<8x4xf32>, vector<4x352xf32>, vector<8x352xf32> -> vector<8x352xf32>
    %216 = arith.addf %211, %215 : vector<8x352xf32>
    %c0_187 = arith.constant 0 : index
    %c0_188 = arith.constant 0 : index
    %c133 = arith.constant 133 : index
    %217 = vector.load %arg1[%c0_187, %c0_188, %c133] : memref<1x4x512xf32, #tpu.memory_space<vmem>>, vector<1x4x352xf32>
    %218 = vector.shape_cast %217 : vector<1x4x352xf32> to vector<4x352xf32>
    %c0_189 = arith.constant 0 : index
    %c172 = arith.constant 172 : index
    %219 = vector.load %arg2[%c0_189, %c172] : memref<8x196xf32, #tpu.memory_space<vmem>>, vector<8x4xf32>
    %cst_190 = arith.constant dense<0.000000e+00> : vector<8x352xf32>
    %220 = tpu.matmul %219, %218, %cst_190 {dimension_numbers = #tpu.dot_dimension_numbers<[1], [0], [0], [1], [0, 0, 1, 1], [], []>} : vector<8x4xf32>, vector<4x352xf32>, vector<8x352xf32> -> vector<8x352xf32>
    %221 = arith.addf %216, %220 : vector<8x352xf32>
    %c0_191 = arith.constant 0 : index
    %c0_192 = arith.constant 0 : index
    %c134 = arith.constant 134 : index
    %222 = vector.load %arg1[%c0_191, %c0_192, %c134] : memref<1x4x512xf32, #tpu.memory_space<vmem>>, vector<1x4x352xf32>
    %223 = vector.shape_cast %222 : vector<1x4x352xf32> to vector<4x352xf32>
    %c0_193 = arith.constant 0 : index
    %c176 = arith.constant 176 : index
    %224 = vector.load %arg2[%c0_193, %c176] : memref<8x196xf32, #tpu.memory_space<vmem>>, vector<8x4xf32>
    %cst_194 = arith.constant dense<0.000000e+00> : vector<8x352xf32>
    %225 = tpu.matmul %224, %223, %cst_194 {dimension_numbers = #tpu.dot_dimension_numbers<[1], [0], [0], [1], [0, 0, 1, 1], [], []>} : vector<8x4xf32>, vector<4x352xf32>, vector<8x352xf32> -> vector<8x352xf32>
    %226 = arith.addf %221, %225 : vector<8x352xf32>
    %c0_195 = arith.constant 0 : index
    %c0_196 = arith.constant 0 : index
    %c135 = arith.constant 135 : index
    %227 = vector.load %arg1[%c0_195, %c0_196, %c135] : memref<1x4x512xf32, #tpu.memory_space<vmem>>, vector<1x4x352xf32>
    %228 = vector.shape_cast %227 : vector<1x4x352xf32> to vector<4x352xf32>
    %c0_197 = arith.constant 0 : index
    %c180 = arith.constant 180 : index
    %229 = vector.load %arg2[%c0_197, %c180] : memref<8x196xf32, #tpu.memory_space<vmem>>, vector<8x4xf32>
    %cst_198 = arith.constant dense<0.000000e+00> : vector<8x352xf32>
    %230 = tpu.matmul %229, %228, %cst_198 {dimension_numbers = #tpu.dot_dimension_numbers<[1], [0], [0], [1], [0, 0, 1, 1], [], []>} : vector<8x4xf32>, vector<4x352xf32>, vector<8x352xf32> -> vector<8x352xf32>
    %231 = arith.addf %226, %230 : vector<8x352xf32>
    %c0_199 = arith.constant 0 : index
    %c0_200 = arith.constant 0 : index
    %c136_201 = arith.constant 136 : index
    %232 = vector.load %arg1[%c0_199, %c0_200, %c136_201] : memref<1x4x512xf32, #tpu.memory_space<vmem>>, vector<1x4x352xf32>
    %233 = vector.shape_cast %232 : vector<1x4x352xf32> to vector<4x352xf32>
    %c0_202 = arith.constant 0 : index
    %c184 = arith.constant 184 : index
    %234 = vector.load %arg2[%c0_202, %c184] : memref<8x196xf32, #tpu.memory_space<vmem>>, vector<8x4xf32>
    %cst_203 = arith.constant dense<0.000000e+00> : vector<8x352xf32>
    %235 = tpu.matmul %234, %233, %cst_203 {dimension_numbers = #tpu.dot_dimension_numbers<[1], [0], [0], [1], [0, 0, 1, 1], [], []>} : vector<8x4xf32>, vector<4x352xf32>, vector<8x352xf32> -> vector<8x352xf32>
    %236 = arith.addf %231, %235 : vector<8x352xf32>
    %c0_204 = arith.constant 0 : index
    %c0_205 = arith.constant 0 : index
    %c137 = arith.constant 137 : index
    %237 = vector.load %arg1[%c0_204, %c0_205, %c137] : memref<1x4x512xf32, #tpu.memory_space<vmem>>, vector<1x4x352xf32>
    %238 = vector.shape_cast %237 : vector<1x4x352xf32> to vector<4x352xf32>
    %c0_206 = arith.constant 0 : index
    %c188 = arith.constant 188 : index
    %239 = vector.load %arg2[%c0_206, %c188] : memref<8x196xf32, #tpu.memory_space<vmem>>, vector<8x4xf32>
    %cst_207 = arith.constant dense<0.000000e+00> : vector<8x352xf32>
    %240 = tpu.matmul %239, %238, %cst_207 {dimension_numbers = #tpu.dot_dimension_numbers<[1], [0], [0], [1], [0, 0, 1, 1], [], []>} : vector<8x4xf32>, vector<4x352xf32>, vector<8x352xf32> -> vector<8x352xf32>
    %241 = arith.addf %236, %240 : vector<8x352xf32>
    %c0_208 = arith.constant 0 : index
    %c0_209 = arith.constant 0 : index
    %c138 = arith.constant 138 : index
    %242 = vector.load %arg1[%c0_208, %c0_209, %c138] : memref<1x4x512xf32, #tpu.memory_space<vmem>>, vector<1x4x352xf32>
    %243 = vector.shape_cast %242 : vector<1x4x352xf32> to vector<4x352xf32>
    %c0_210 = arith.constant 0 : index
    %c192 = arith.constant 192 : index
    %244 = vector.load %arg2[%c0_210, %c192] : memref<8x196xf32, #tpu.memory_space<vmem>>, vector<8x4xf32>
    %cst_211 = arith.constant dense<0.000000e+00> : vector<8x352xf32>
    %245 = tpu.matmul %244, %243, %cst_211 {dimension_numbers = #tpu.dot_dimension_numbers<[1], [0], [0], [1], [0, 0, 1, 1], [], []>} : vector<8x4xf32>, vector<4x352xf32>, vector<8x352xf32> -> vector<8x352xf32>
    %246 = arith.addf %241, %245 : vector<8x352xf32>
    %247 = vector.broadcast %0 : vector<8x1xf32> to vector<8x352xf32>
    %248 = arith.addf %246, %247 : vector<8x352xf32>
    %249 = math.tanh %248 : vector<8x352xf32>
    %c0_212 = arith.constant 0 : index
    %c0_213 = arith.constant 0 : index
    %c0_214 = arith.constant 0 : index
    %250 = vector.load %arg4[%c0_212, %c0_213, %c0_214] : memref<1x8x352xf32, #tpu.memory_space<vmem>>, vector<1x8x352xf32>
    %251 = vector.shape_cast %250 : vector<1x8x352xf32> to vector<8x352xf32>
    %252 = vector.shape_cast %249 : vector<8x352xf32> to vector<1x8x352xf32>
    tpu.vector_store %arg4[%c0_212, %c0_213, %c0_214], %252 {strides = array<i32>} : memref<1x8x352xf32, #tpu.memory_space<vmem>>, vector<1x8x352xf32>,
    return
  }
  func.func @transform_0(%arg0: i32) -> (i32, i32, i32) {
    %c0_i32 = arith.constant 0 : i32
    %c0_i32_0 = arith.constant 0 : i32
    %c0_i32_1 = arith.constant 0 : i32
    return %arg0, %c0_i32, %c0_i32_0 : i32, i32, i32
  }
  func.func @transform_1(%arg0: i32) -> (i32, i32) {
    %c0_i32 = arith.constant 0 : i32
    %c0_i32_0 = arith.constant 0 : i32
    %c0_i32_1 = arith.constant 0 : i32
    return %c0_i32, %c0_i32_0 : i32, i32
  }
  func.func @transform_2(%arg0: i32) -> (i32, i32) {
    %c0_i32 = arith.constant 0 : i32
    %c0_i32_0 = arith.constant 0 : i32
    %c0_i32_1 = arith.constant 0 : i32
    return %c0_i32, %c0_i32_0 : i32, i32
  }
  func.func @transform_3(%arg0: i32) -> (i32, i32, i32) {
    %c0_i32 = arith.constant 0 : i32
    %c0_i32_0 = arith.constant 0 : i32
    %c0_i32_1 = arith.constant 0 : i32
    return %arg0, %c0_i32, %c0_i32_0 : i32, i32, i32
  }
}

</mosaic_0001>

<bundles_post_ra>
// kernel: tpu_custom_call.1
= control target key start
LH: loop header
LB: loop body
LE: loop exit
PB: predicated region body
PF: predicated region fallthrough
CT: control target
= control target key end

     0   :  { %8 = vsyncpa [#allocation3], 0  ;;  %s11219_s0 = inlined_call_operand.hbm [shape: f32[2,4,512], index: 0, kind: input, shape index: {}]   ;;  %s11220_s1 = inlined_call_operand.hbm [shape: f32[8,196], index: 1, kind: input, shape index: {}]   ;;  %s11221_s2 = inlined_call_operand.vmem [shape: f32[8,1], index: 2, kind: input, shape index: {}]   ;;  %s11222_s3 = inlined_call_operand.hbm [shape: f32[2,8,352], index: 3, kind: output, shape index: {}]  }
   0x1   :  { %10 = vsyncpa [#allocation3 + $0x1], 0 }
   0x2   :  { %11 = vsyncpa [#allocation6], 0 }
   0x3   :  { %12 = vsyncpa [#allocation4], 0 }
   0x4   :  { %14 = vsyncpa [#allocation4 + $0x1], 0  ;;  %s9783_s12 = smov 0   ;;  %s9785_s13 = smov 0  }
   0x5   :  { %s9787_s14 = smov 0   ;;  %s9789_s15 = smov 0  }
   0x6 LB: > { %s9804_s16 = sadd.s32 4294967295, %s9691_s15   ;;  %s8726_s17 = sadd.s32 4294967294, %s9691_s15   ;;  %s9691_s15 = sphi %s9789_s15, %s11313_s15   ;;  %s9687_s14 = sphi %s9787_s14, %s11312_s14   ;;  %s9683_s13 = sphi %s9785_s13, %s11311_s13   ;;  %s9679_s12 = sphi %s9783_s12, %s11310_s12  }
   0x7   : > { %p40_p0 = scmp.ne.s32.totalorder %s9683_s13, %s9679_s12  ;;  %p11223_p1 = scmp.eq.s32.totalorder %s9804_s16, 0 }
   0x8   : > { %p112_p3 = scmp.eq.s32.totalorder %s8726_s17, 1  ;;  %p8727_p5 = scmp.ge.s32.totalorder %s9691_s15, 1 }
   0x9   : > { %p9813_p4 = por %p11223_p1, %p40_p0  ;;  %p119_p7 = scmp.lt.s32.totalorder %s9691_s15, 3 }
   0xa   : > { %p9818_p6 = por %p112_p3, %p40_p0  ;;  %s9693_s21 = smov [#allocation5]  }
   0xb   : > { %s11260_s18 = scalar_select %p9813_p4, 1, 0 }
   0xc   : > { %s11261_s19 = scalar_select %p9818_p6, 1, 0 }
   0xd   : > { %p9823_p8 = pnand %p8727_p5, %p119_p7  ;;  %s132_s22 = sshll.u32 %s9693_s21, 4  ;;  %s133_s22 = int_to_ptr.vmem [resolvable:$true] %s132_s22 }
   0xe   : > { %s9831_s23 = sadd.s32 1, %s9691_s15   ;;  %s27_s27 = sadd.s32 1, %s9687_s14 }
   0xf   : > { %s11262_s20 = scalar_select %p9823_p8, 1, 0 }
  0x10   : > { %p9434_p10 = pneg %p9823_p8  ;;  %s24_s25 = ssub.s32 %s9691_s15, %s9831_s23 }
  0x11   : > { %p9841_p12 = scmp.eq.s32.totalorder %s24_s25, 0  ;;  %s9563_s30 = scalar_lea.hbm %s11220_s1, 256 }
  0x12   : > { %p9835_p11 = pnand %p9434_p10, %p11223_p1  ;;  %p9564_p0 = scmp.ne.s32.totalorder %s11220_s1, %s9563_s30 }
  0x13   : > { %s11264_s26 = scalar_select %p9841_p12, 1, 0 }
  0x14   : > { %p9565_p3 = pneg %p9835_p11  ;;  %p9570_p10 = scmp.lt.u32.totalorder %s9563_s30, %s11220_s1 }
  0x16   : > { %p9566_p5 = pnand %p9565_p3, %p9564_p0 }
  0x18   : > { %p9567_p7 = pneg %p9566_p5 }
  0x1a   : > { %p9572_p9 = pnand %p9570_p10, %p9567_p7 }
  0x1c   : > { %9575 = shalt.err (!%p9572_p9)
}
  0x1d   : > { %s9576_s8 = scalar_lea.vmem %s133_s22, 256  ;;  %p9584_p6 = scmp.lt.s32.totalorder %s133_s22, %s133_s22 }
  0x1e   : > { %p9577_p1 = scmp.ne.s32.totalorder %s133_s22, %s9576_s8  ;;  %p9585_p4 = scmp.lt.s32.totalorder %s9576_s8, %s9576_s8 }
  0x20   : > { %p9579_p2 = pnand %p9577_p1, %p9565_p3  ;;  %p9586_p8 = por %p9585_p4, %p9584_p6 }
  0x22   : > { %p9580_p13 = pneg %p9579_p2 }
  0x24   : > { %p9587_p12 = pnand %p9586_p8, %p9580_p13 }
  0x26   : > { %9590 = shalt.err (!%p9587_p12)
}
  0x27   : > { %9437 = dma.hbm_to_vmem [thread:$0]  (!%p9835_p11), %s11220_s1, 256, %s133_s22, [#allocation6]  }
  0x28   : > { %p11265_p1 = scmp.ne.s32.totalorder %s11264_s26, 0  ;;  %p35_p2 = scmp.eq.s32.totalorder %s9691_s15, 0 }
  0x29   : > { %p11266_p4 = scmp.ne.s32.totalorder %s9687_s14, %s9683_s13  ;;  %p11267_p6 = scmp.eq.s32.totalorder %s9804_s16, 1 }
  0x2a   : > { %s9867_s11 = scalar_select %p11265_p1, %s9687_s14, %s27_s27  }
  0x2b   : > { %p9875_p8 = por %p11267_p6, %p11266_p4  ;;  %p9447_p9 = scmp.lt.s32.totalorder %s9691_s15, 2 }
  0x2c   : > { %s146_s21 = sand.u32 1, %s9687_s14   ;;  %p11269_p12 = pmov %p11266_p4 }
  0x2d   : > { %s8730_s24 = sshll.u32 %s146_s21, 4  ;;  %s8984_s25 = sshll.u32 %s9691_s15, 8 }
  0x2e   : > { %p36_p13 = por %p35_p2, %p11269_p12  ;;  %s9888_s22 = scalar_lea.hbm %s11219_s0, %s8984_s25 }
  0x2f   : > { %s150_s26 = scalar_lea.vmem [#allocation2], %s8730_s24  ;;  %s147_s4 = scalar_lea.sflag [#allocation3], %s146_s21 }
  0x30   : > { %s158_s27 = sshll.u32 %s150_s26, 4  ;;  %p9890_p11 = pnand %p9447_p9, %p36_p13  ;;  %s9894_s27 = int_to_ptr.vmem [resolvable:$true] %s158_s27 }
  0x31   : > { %s9591_s5 = scalar_lea.hbm %s9888_s22, 256  ;;  %s9596_s8 = scalar_lea.hbm %s11219_s0, 512 }
  0x32   : > { %p9592_p0 = scmp.ne.s32.totalorder %s9888_s22, %s9591_s5  ;;  %p9593_p3 = pneg %p9890_p11 }
  0x33   : > { %p9597_p10 = scmp.lt.u32.totalorder %s9888_s22, %s11219_s0  ;;  %p9598_p1 = scmp.lt.u32.totalorder %s9596_s8, %s9591_s5 }
  0x34   : > { %p9594_p5 = pnand %p9593_p3, %p9592_p0  ;;  %p9600_p4 = scmp.lt.u32.totalorder %s9591_s5, %s9888_s22 }
  0x35   : > { %p9599_p2 = por %p9598_p1, %p9597_p10 }
  0x36   : > { %p9595_p7 = pneg %p9594_p5 }
  0x37   : > { %p9601_p6 = por %p9600_p4, %p9599_p2 }
  0x39   : > { %p9602_p9 = pnand %p9601_p6, %p9595_p7 }
  0x3b   : > { %9605 = shalt.err (!%p9602_p9)
}
  0x3c   : > { %s9606_s21 = scalar_lea.vmem %s9894_s27, 256  ;;  %s9694_s24 = smov [#allocation2]  }
  0x3d   : > { %p9607_p12 = scmp.ne.s32.totalorder %s9894_s27, %s9606_s21  ;;  %s9611_s25 = sshll.u32 %s9694_s24, 4  ;;  %s9612_s25 = int_to_ptr.vmem [resolvable:$false] %s9611_s25 }
  0x3e   : > { %s9613_s28 = scalar_lea.vmem %s9612_s25, 512  ;;  %p9614_p5 = scmp.lt.s32.totalorder %s9894_s27, %s9612_s25 }
  0x3f   : > { %p9609_p13 = pnand %p9607_p12, %p9593_p3  ;;  %p9615_p10 = scmp.lt.s32.totalorder %s9613_s28, %s9606_s21 }
  0x41   : > { %p9610_p0 = pneg %p9609_p13  ;;  %p9616_p1 = por %p9615_p10, %p9614_p5 }
  0x43   : > { %p9617_p2 = pnand %p9616_p1, %p9610_p0 }
  0x45   : > { %9620 = shalt.err (!%p9617_p2)
}
  0x46   : > { %9441 = dma.hbm_to_vmem [thread:$0]  (!%p9890_p11), %s9888_s22, 256, %s9894_s27, %s147_s4  }
  0x47   : > { %p11271_p7 = scmp.ne.s32.totalorder %s11262_s20, 0 }
  0x48   : > { %s9924_s29 = sand.u32 (!%p11271_p7), 1, %s9683_s13   ;;  %p11272_p3 = scmp.ne.s32.totalorder (!%p11271_p7), %s11260_s18, 0 }
  0x49   : > { %167 = sbr.rel (%p11271_p7) target bundleno = 881 (0x371), region = 32  ;;  %s8734_s26 = sshll.u32 (!%p11271_p7), %s9924_s29, 4 }
  0x4a   : > { %s170_s5 = scalar_lea.sflag (!%p11271_p7), [#allocation3], %s9924_s29  ;;  %s9928_s6 = scalar_lea.vmem (!%p11271_p7), [#allocation2], %s8734_s26 }
  0x50   : > { %9666 = dma.done.wait (%p11272_p3), %s170_s5, 256  }
  0x51   : > { %9668 = vsyncadd (%p11272_p3), %s170_s5, 4294967040  ;;  %p11273_p11 = scmp.eq.s32.totalorder %s9804_s16, 0 }
  0x53   : > { %9670 = dma.done.wait (%p11273_p11), [#allocation6], 256   ;;  %p11274_p4 = pmov %p11273_p11 }
  0x54   : > { %v9695_v0 = vmov 0.0   ;;  %vm9696_vm0 = vmmov 0   ;;  %v9943_v1 = vld [vmem:[%s9928_s6 + $0x8] sm:$0xf]  ;;  %v9946_v2 = vld [vmem:[%s9928_s6] sm:$0xff]  ;;  %s9697_s18 = smov 127  }
  0x55   : > { %9672 = vsyncadd (%p11274_p4), [#allocation6], 4294967040  ;;  %9083 = vmatprep.subr.mxu1 %v9695_v0  ;;  %293 = vmatprep.mubr.f32.mxu0 %v9695_v0  ;;  %v9952_v3 = vcombine.high %v9946_v2, %v9946_v2  ;;  %v9954_v4 = vld [vmem:[#allocation5] sm:$0xff]  ;;  %s9698_s20 = smov 124   ;;  %v520_v5 = vld [vmem:[%s9928_s6 + $0x8] sm:$0xf] }
  0x56   : > { %9085 = vmatprep.mubr.msk.f32.mxu1 %vm9696_vm0, %v9695_v0  ;;  %214 = vrot.lane.b32.xlu0 %v9943_v1, %s9697_s18  ;;  %s9699_s22 = smov 126   ;;  %s9700_s27 = smov 120   ;;  %v690_v6 = vld [vmem:[%s9928_s6 + $0x8] sm:$0xf]  ;;  %vm222_vm1 = vcmask 1043456   ;;  %vm219_vm2 = vcmask 31744  }
  0x57   : > { %210 = vrot.lane.b32.xlu1 %v9946_v2, %s9697_s18  ;;  %s9701_s30 = smov 125   ;;  %s11241_s4 = smov 116   ;;  %v860_v7 = vld [vmem:[%s9928_s6 + $0x8] sm:$0xf]  ;;  %vm216_vm3 = vcmask 1039360   ;;  %vm534_vm4 = vcmask 1031168  }
  0x58   : > { %s11240_s7 = smov 112   ;;  %v1030_v8 = vld [vmem:[%s9928_s6 + $0x8] sm:$0xf]  ;;  %s11231_s8 = smov 123   ;;  %vm704_vm5 = vcmask 1022976   ;;  %vm11254_vm6 = vcmask 1014784  }
  0x59   : > { %s11239_s9 = smov 108   ;;  %v1200_v9 = vld [vmem:[%s9928_s6 + $0x8] sm:$0xf]  ;;  %s11226_s10 = smov 122   ;;  %vm11253_vm7 = vcmask 1006592   ;;  %vm11252_vm8 = vcmask 998400  }
  0x5a   : > { %212 = vrot.lane.b32.xlu0 %v9952_v3, %s9697_s18  ;;  %s11238_s21 = smov 104   ;;  %v1370_v10 = vld [vmem:[%s9928_s6 + $0x8] sm:$0xf]  ;;  %s9708_s24 = smov 106   ;;  %vm1384_vm9 = vcmask 867328   ;;  %vm1554_vm10 = vcmask 859136  }
  0x5b   : > { %205 = vrot.lane.b32.xlu1 %v9954_v4, %s9698_s20  ;;  %s11237_s25 = smov 100   ;;  %v1540_v11 = vld [vmem:[%s9928_s6 + $0x8] sm:$0xf]  ;;  %s9710_s28 = smov 105   ;;  %vm1724_vm11 = vcmask 850944   ;;  %vm1894_vm12 = vcmask 842752  }
  0x5c   : > { %s11236_s26 = smov 96   ;;  %v1710_v12 = vld [vmem:[%s9928_s6 + $0x8] sm:$0xf]  ;;  %s11235_s5 = smov 92   ;;  %vm2064_vm13 = vcmask 834560   ;;  %vm2234_vm14 = vcmask 826368  }
  0x5d   : > { %v1880_v13 = vld [vmem:[%s9928_s6 + $0x8] sm:$0xf]  ;;  %s9713_s18 = smov 103   ;;  %vm2404_vm15 = vcmask 818176  }
  0x5e   : > { %530 = vrot.lane.b32.xlu0 %v9952_v3, %s9699_s22  ;;  %v2050_v14 = vld [vmem:[%s9928_s6 + $0x8] sm:$0xf] }
  0x5f   : > { %532 = vrot.lane.b32.xlu1 %v520_v5, %s9699_s22  ;;  %v2220_v15 = vld [vmem:[%s9928_s6 + $0x8] sm:$0xf] }
  0x60   : > { %v2390_v16 = vld [vmem:[%s9928_s6 + $0x8] sm:$0xf] }
  0x61   : > { %v10035_v17 = vld [vmem:[%s9928_s6 + $0x8] sm:$0xff] }
  0x62   : > { %528 = vrot.lane.b32.xlu0 %v9946_v2, %s9699_s22  ;;  %s11234_s22 = smov 88  }
  0x63   : > { %523 = vrot.lane.b32.xlu1 %v9954_v4, %s9700_s27 }
  0x66   : > { %700 = vrot.lane.b32.xlu0 %v9952_v3, %s9701_s30 }
  0x67   : > { %702 = vrot.lane.b32.xlu1 %v690_v6, %s9701_s30 }
  0x6a   : > { %698 = vrot.lane.b32.xlu0 %v9946_v2, %s9701_s30  ;;  %s9715_s30 = smov 102  }
  0x6b   : > { %693 = vrot.lane.b32.xlu1 %v9954_v4, %s11241_s4  ;;  %s11244_s4 = smov 59  }
  0x6e   : > { %870 = vrot.lane.b32.xlu0 %v9952_v3, %s9698_s20 }
  0x6f   : > { %872 = vrot.lane.b32.xlu1 %v860_v7, %s9698_s20 }
  0x72   : > { %868 = vrot.lane.b32.xlu0 %v9946_v2, %s9698_s20 }
  0x73   : > { %863 = vrot.lane.b32.xlu1 %v9954_v4, %s11240_s7  ;;  %s9736_s7 = smov 36  }
  0x76   : > { %1040 = vrot.lane.b32.xlu0 %v9952_v3, %s11231_s8 }
  0x77   : > { %1042 = vrot.lane.b32.xlu1 %v1030_v8, %s11231_s8 }
  0x7a   : > { %1038 = vrot.lane.b32.xlu0 %v9946_v2, %s11231_s8  ;;  %s9725_s8 = smov 81  }
  0x7b   : > { %1033 = vrot.lane.b32.xlu1 %v9954_v4, %s11239_s9  ;;  %s9734_s9 = smov 61  }
  0x7e   : > { %1210 = vrot.lane.b32.xlu0 %v9952_v3, %s11226_s10 }
  0x7f   : > { %1212 = vrot.lane.b32.xlu1 %v1200_v9, %s11226_s10 }
  0x82   : > { %1208 = vrot.lane.b32.xlu0 %v9946_v2, %s11226_s10  ;;  %s9718_s10 = smov 80  }
  0x83   : > { %1203 = vrot.lane.b32.xlu1 %v9954_v4, %s11238_s21 }
  0x86   : > { %1380 = vrot.lane.b32.xlu0 %v9952_v3, %s9708_s24 }
  0x87   : > { %1382 = vrot.lane.b32.xlu1 %v1370_v10, %s9708_s24 }
  0x8a   : > { %1378 = vrot.lane.b32.xlu0 %v9946_v2, %s9708_s24  ;;  %s9716_s24 = smov 84  }
  0x8b   : > { %1373 = vrot.lane.b32.xlu1 %v9954_v4, %s11237_s25 }
  0x8e   : > { %1550 = vrot.lane.b32.xlu0 %v9952_v3, %s9710_s28 }
  0x8f   : > { %1552 = vrot.lane.b32.xlu1 %v1540_v11, %s9710_s28 }
  0x92   : > { %1548 = vrot.lane.b32.xlu0 %v9946_v2, %s9710_s28  ;;  %s9717_s28 = smov 101  }
  0x93   : > { %1543 = vrot.lane.b32.xlu1 %v9954_v4, %s11236_s26  ;;  %s9729_s26 = smov 52  }
  0x96   : > { %1720 = vrot.lane.b32.xlu0 %v9952_v3, %s11238_s21 }
  0x97   : > { %1722 = vrot.lane.b32.xlu1 %v1710_v12, %s11238_s21 }
  0x9a   : > { %1718 = vrot.lane.b32.xlu0 %v9946_v2, %s11238_s21  ;;  %s11243_s21 = smov 62  }
  0x9b   : > { %1713 = vrot.lane.b32.xlu1 %v9954_v4, %s11235_s5  ;;  %s9728_s5 = smov 79  }
  0x9e   : > { %1890 = vrot.lane.b32.xlu0 %v9952_v3, %s9713_s18 }
  0x9f   : > { %1892 = vrot.lane.b32.xlu1 %v1880_v13, %s9713_s18 }
  0xa2   : > { %1888 = vrot.lane.b32.xlu0 %v9946_v2, %s9713_s18  ;;  %s11228_s18 = smov 76  }
  0xa3   : > { %1883 = vrot.lane.b32.xlu1 %v9954_v4, %s11234_s22  ;;  %s11245_s22 = smov 56  }
  0xa6   : > { %2060 = vrot.lane.b32.xlu0 %v9952_v3, %s9715_s30 }
  0xa7   : > { %2062 = vrot.lane.b32.xlu1 %v2050_v14, %s9715_s30 }
  0xaa   : > { %2058 = vrot.lane.b32.xlu0 %v9946_v2, %s9715_s30  ;;  %s11229_s30 = smov 72  }
  0xab   : > { %2053 = vrot.lane.b32.xlu1 %v9954_v4, %s9716_s24 }
  0xae   : > { %2230 = vrot.lane.b32.xlu0 %v9952_v3, %s9717_s28 }
  0xaf   : > { %2232 = vrot.lane.b32.xlu1 %v2220_v15, %s9717_s28 }
  0xb2   : > { %2228 = vrot.lane.b32.xlu0 %v9946_v2, %s9717_s28  ;;  %s9721_s28 = smov 83  }
  0xb3   : > { %2223 = vrot.lane.b32.xlu1 %v9954_v4, %s9718_s10 }
  0xb6   : > { %2400 = vrot.lane.b32.xlu0 %v9952_v3, %s11237_s25 }
  0xb7   : > { %2402 = vrot.lane.b32.xlu1 %v2390_v16, %s11237_s25 }
  0xba   : > { %2398 = vrot.lane.b32.xlu0 %v9946_v2, %s11237_s25  ;;  %s9730_s25 = smov 78  }
  0xbb   : > { %2393 = vrot.lane.b32.xlu1 %v9954_v4, %s11228_s18  ;;  %s11230_s18 = smov 68  }
  0xbe   : > { %2571 = vrot.lane.b32.xlu0 %v9952_v3, %s9716_s24 }
  0xbf   : > { %2573 = vrot.lane.b32.xlu1 %v10035_v17, %s9716_s24 }
  0xc2   : > { %2569 = vrot.lane.b32.xlu0 %v9946_v2, %s9716_s24 }
  0xc3   : > { %2563 = vrot.lane.b32.xlu1 %v9954_v4, %s11229_s30  ;;  %s9723_s30 = smov 82  }
  0xc6   : > { %2745 = vrot.lane.b32.xlu0 %v9952_v3, %s9721_s28 }
  0xc7   : > { %2747 = vrot.lane.b32.xlu1 %v10035_v17, %s9721_s28 }
  0xc8   : > { %v215_v18 = vpop.permute.xlu0 %214 }
  0xc9   : > { %v211_v19 = vpop.permute.xlu1 %210  ;;  %9084 = vmatpush3.msk.msra.mxu1 %vm222_vm1, %v215_v18 }
  0xca   : > { %2743 = vrot.lane.b32.xlu0 %v9946_v2, %s9721_s28  ;;  %9088 = vmatprep.subr.mxu1 %v9695_v0 }
  0xcb   : > { %2737 = vrot.lane.b32.xlu1 %v9954_v4, %s11230_s18  ;;  %s11233_s18 = smov 64  }
  0xcc   : > { %v213_v21 = vpop.permute.xlu0 %212 }
  0xcd   : > { %v206_v20 = vpop.permute.xlu1 %205  ;;  %v218_v22 = vsel %vm216_vm3, %v213_v21, %v215_v18  ;;  %v217_v23 = vsel %vm216_vm3, %v211_v19, %v213_v21  ;;  %vm2577_vm3 = vcmask 687104  }
  0xce   : > { %9086 = vmatmul.mubr.msk.f32.vlgmr.msra.gmra.mrb[0].mxu1 %vm219_vm2, %v206_v20  ;;  %2919 = vrot.lane.b32.xlu0 %v9952_v3, %s9723_s30 }
  0xcf   : > { %2921 = vrot.lane.b32.xlu1 %v10035_v17, %s9723_s30  ;;  %8736 = vmatprep.subr.msk.mxu0 %vm222_vm1, %v218_v22 }
  0xd0   : > { %9089 = vmatpush3.msk.msra.mxu1 %vm222_vm1, %v9943_v1  ;;  %8737 = vmatpush1.msk.msra.mxu0 %vm222_vm1, %v217_v23  ;;  %v531_v25 = vpop.permute.xlu0 %530 }
  0xd1   : > { %9090 = vmatprep.mubr.msk.f32.mxu1 %vm9696_vm0, %v9695_v0  ;;  %v533_v24 = vpop.permute.xlu1 %532  ;;  %8738 = vmatmul.mubr.msk.f32.vlgmr.msra.gmra.mrb[0].mxu0 %vm219_vm2, %v206_v20 }
  0xd2   : > { %8741 = vmatprep.subr.msk.mxu0 %vm222_vm1, %v9952_v3  ;;  %9091 = vmatmul.mubr.msk.f32.vlgmr.msra.gmra.mrb[2].mxu1 %vm219_vm2, %v9954_v4  ;;  %v536_v26 = vsel %vm534_vm4, %v531_v25, %v533_v24 }
  0xd3   : > { %8742 = vmatpush1.msk.msra.mxu0 %vm222_vm1, %v9946_v2  ;;  %9093 = vmatprep.subr.mxu1 %v9695_v0 }
  0xd4   : > { %2911 = vrot.lane.b32.xlu1 %v9954_v4, %s11233_s18  ;;  %9094 = vmatpush3.msk.msra.mxu1 %vm222_vm1, %v533_v24  ;;  %v529_v28 = vpop.permute.xlu0 %528  ;;  %s11242_s18 = smov 60  }
  0xd5   : > { %2917 = vrot.lane.b32.xlu0 %v9946_v2, %s9723_s30  ;;  %v524_v27 = vpop.permute.xlu1 %523  ;;  %8746 = vmatprep.subr.msk.mxu0 %vm222_vm1, %v536_v26  ;;  %v535_v31 = vsel %vm534_vm4, %v529_v28, %v531_v25  ;;  %vm2751_vm4 = vcmask 678912  }
  0xd6   : > { %9095 = vmatprep.mubr.msk.f32.mxu1 %vm9696_vm0, %v9695_v0  ;;  %442 = vmatprep.mubr.f32.mxu0 %v9695_v0 }
  0xd7   : > { %9096 = vmatmul.mubr.msk.f32.vlgmr.msra.gmra.mrb[4].mxu1 %vm219_vm2, %v524_v27  ;;  %9098 = vmatprep.subr.mxu1 %v9695_v0 }
  0xd8   : > { %3095 = vrot.lane.b32.xlu1 %v10035_v17, %s9725_s8  ;;  %v701_v30 = vpop.permute.xlu0 %700  ;;  %9100 = vmatprep.mubr.msk.f32.mxu1 %vm9696_vm0, %v9695_v0 }
  0xd9   : > { %3093 = vrot.lane.b32.xlu0 %v9952_v3, %s9725_s8  ;;  %v703_v29 = vpop.permute.xlu1 %702  ;;  %8743 = vmatmul.mubr.msk.f32.vlgmr.msra.gmra.mrb[0].mxu0 %vm219_vm2, %v9954_v4 }
  0xda   : > { %9099 = vmatpush3.msk.msra.mxu1 %vm222_vm1, %v703_v29  ;;  %v706_v32 = vsel %vm704_vm5, %v701_v30, %v703_v29  ;;  %8747 = vmatpush1.msk.msra.mxu0 %vm222_vm1, %v535_v31 }
  0xdb   : > { %609 = vmatprep.mubr.f32.mxu0 %v9695_v0  ;;  %8751 = vmatprep.subr.msk.mxu0 %vm222_vm1, %v706_v32 }
  0xdc   : > { %3085 = vrot.lane.b32.xlu1 %v9954_v4, %s11242_s18  ;;  %v699_v34 = vpop.permute.xlu0 %698  ;;  %9103 = vmatprep.subr.mxu1 %v9695_v0 }
  0xdd   : > { %3091 = vrot.lane.b32.xlu0 %v9946_v2, %s9725_s8  ;;  %v694_v33 = vpop.permute.xlu1 %693  ;;  %v705_v37 = vsel %vm704_vm5, %v699_v34, %v701_v30  ;;  %vm2925_vm5 = vcmask 670720  }
  0xde   : > { %9101 = vmatmul.mubr.msk.f32.vlgmr.msra.gmra.mrb[6].mxu1 %vm219_vm2, %v694_v33 }
  0xdf   : > { %9105 = vmatprep.mubr.msk.f32.mxu1 %vm9696_vm0, %v9695_v0 }
  0xe0   : > { %3269 = vrot.lane.b32.xlu1 %v10035_v17, %s9718_s10  ;;  %v871_v36 = vpop.permute.xlu0 %870 }
  0xe1   : > { %3267 = vrot.lane.b32.xlu0 %v9952_v3, %s9718_s10  ;;  %v873_v35 = vpop.permute.xlu1 %872  ;;  %8748 = vmatmul.mubr.msk.f32.vlgmr.msra.gmra.mrb[0].mxu0 %vm219_vm2, %v524_v27 }
  0xe2   : > { %9104 = vmatpush3.msk.msra.mxu1 %vm222_vm1, %v873_v35  ;;  %v876_v38 = vsel %vm11254_vm6, %v871_v36, %v873_v35  ;;  %8752 = vmatpush1.msk.msra.mxu0 %vm222_vm1, %v705_v37 }
  0xe3   : > { %779 = vmatprep.mubr.f32.mxu0 %v9695_v0  ;;  %8756 = vmatprep.subr.msk.mxu0 %vm222_vm1, %v876_v38 }
  0xe4   : > { %3259 = vrot.lane.b32.xlu1 %v9954_v4, %s11245_s22  ;;  %v869_v40 = vpop.permute.xlu0 %868  ;;  %9108 = vmatprep.subr.mxu1 %v9695_v0 }
  0xe5   : > { %3265 = vrot.lane.b32.xlu0 %v9946_v2, %s9718_s10  ;;  %v864_v39 = vpop.permute.xlu1 %863  ;;  %v875_v43 = vsel %vm11254_vm6, %v869_v40, %v871_v36  ;;  %vm11256_vm6 = vcmask 465920  }
  0xe6   : > { %9106 = vmatmul.mubr.msk.f32.vlgmr.msra.gmra.mrb[8].mxu1 %vm219_vm2, %v864_v39 }
  0xe7   : > { %9110 = vmatprep.mubr.msk.f32.mxu1 %vm9696_vm0, %v9695_v0 }
  0xe8   : > { %3443 = vrot.lane.b32.xlu1 %v10035_v17, %s9728_s5  ;;  %v1041_v42 = vpop.permute.xlu0 %1040 }
  0xe9   : > { %3441 = vrot.lane.b32.xlu0 %v9952_v3, %s9728_s5  ;;  %v1043_v41 = vpop.permute.xlu1 %1042  ;;  %8753 = vmatmul.mubr.msk.f32.vlgmr.msra.gmra.mrb[0].mxu0 %vm219_vm2, %v694_v33 }
  0xea   : > { %9109 = vmatpush3.msk.msra.mxu1 %vm222_vm1, %v1043_v41  ;;  %v1046_v44 = vsel %vm11253_vm7, %v1041_v42, %v1043_v41  ;;  %8757 = vmatpush1.msk.msra.mxu0 %vm222_vm1, %v875_v43 }
  0xeb   : > { %949 = vmatprep.mubr.f32.mxu0 %v9695_v0  ;;  %8761 = vmatprep.subr.msk.mxu0 %vm222_vm1, %v1046_v44 }
  0xec   : > { %3433 = vrot.lane.b32.xlu1 %v9954_v4, %s9729_s26  ;;  %v1039_v46 = vpop.permute.xlu0 %1038  ;;  %9113 = vmatprep.subr.mxu1 %v9695_v0  ;;  %s9731_s26 = smov 48  }
  0xed   : > { %3439 = vrot.lane.b32.xlu0 %v9946_v2, %s9728_s5  ;;  %v1034_v45 = vpop.permute.xlu1 %1033  ;;  %v1045_v49 = vsel %vm11253_vm7, %v1039_v46, %v1041_v42  ;;  %v10321_v46 = vld [vmem:[%s9928_s6] sm:$0xff]  ;;  %vm11255_vm7 = vcmask 474112  }
  0xee   : > { %9111 = vmatmul.mubr.msk.f32.vlgmr.msra.gmra.mrb[10].mxu1 %vm219_vm2, %v1034_v45 }
  0xef   : > { %9115 = vmatprep.mubr.msk.f32.mxu1 %vm9696_vm0, %v9695_v0 }
  0xf0   : > { %3617 = vrot.lane.b32.xlu1 %v10035_v17, %s9730_s25  ;;  %v1211_v48 = vpop.permute.xlu0 %1210 }
  0xf1   : > { %3615 = vrot.lane.b32.xlu0 %v9952_v3, %s9730_s25  ;;  %v1213_v47 = vpop.permute.xlu1 %1212  ;;  %8758 = vmatmul.mubr.msk.f32.vlgmr.msra.gmra.mrb[0].mxu0 %vm219_vm2, %v864_v39 }
  0xf2   : > { %9114 = vmatpush3.msk.msra.mxu1 %vm222_vm1, %v1213_v47  ;;  %v1216_v50 = vsel %vm11252_vm8, %v1211_v48, %v1213_v47  ;;  %8762 = vmatpush1.msk.msra.mxu0 %vm222_vm1, %v1045_v49 }
  0xf3   : > { %1119 = vmatprep.mubr.f32.mxu0 %v9695_v0  ;;  %8766 = vmatprep.subr.msk.mxu0 %vm222_vm1, %v1216_v50  ;;  %v5345_v50 = vld [vmem:[#allocation5] sm:$0xff] }
  0xf4   : > { %3607 = vrot.lane.b32.xlu1 %v9954_v4, %s9731_s26  ;;  %v1209_v52 = vpop.permute.xlu0 %1208  ;;  %9118 = vmatprep.subr.mxu1 %v9695_v0  ;;  %s9733_s26 = smov 44  }
  0xf5   : > { %3613 = vrot.lane.b32.xlu0 %v9946_v2, %s9730_s25  ;;  %v1204_v51 = vpop.permute.xlu1 %1203  ;;  %v1215_v55 = vsel %vm11252_vm8, %v1209_v52, %v1211_v48  ;;  %v10334_v48 = vcombine.high %v10321_v46, %v10321_v46  ;;  %v10352_v52 = vcombine.high %v10035_v17, %v10035_v17  ;;  %vm4317_vm8 = vcmask 482304  }
  0xf6   : > { %9116 = vmatmul.mubr.msk.f32.vlgmr.msra.gmra.mrb[12].mxu1 %vm219_vm2, %v1204_v51 }
  0xf7   : > { %9120 = vmatprep.mubr.msk.f32.mxu1 %vm9696_vm0, %v9695_v0 }
  0xf8   : > { %3791 = vrot.lane.b32.xlu1 %v10035_v17, %s11243_s21  ;;  %v1381_v54 = vpop.permute.xlu0 %1380 }
  0xf9   : > { %3789 = vrot.lane.b32.xlu0 %v9952_v3, %s11243_s21  ;;  %v1383_v53 = vpop.permute.xlu1 %1382  ;;  %8763 = vmatmul.mubr.msk.f32.vlgmr.msra.gmra.mrb[0].mxu0 %vm219_vm2, %v1034_v45 }
  0xfa   : > { %9119 = vmatpush3.msk.msra.mxu1 %vm222_vm1, %v1383_v53  ;;  %v1386_v56 = vsel %vm1384_vm9, %v1381_v54, %v1383_v53  ;;  %8767 = vmatpush1.msk.msra.mxu0 %vm222_vm1, %v1215_v55 }
  0xfb   : > { %1289 = vmatprep.mubr.f32.mxu0 %v9695_v0  ;;  %8771 = vmatprep.subr.msk.mxu0 %vm222_vm1, %v1386_v56 }
  0xfc   : > { %3781 = vrot.lane.b32.xlu1 %v9954_v4, %s9733_s26  ;;  %v1379_v58 = vpop.permute.xlu0 %1378  ;;  %9123 = vmatprep.subr.mxu1 %v9695_v0  ;;  %s11246_s26 = smov 40  }
  0xfd   : > { %3787 = vrot.lane.b32.xlu0 %v9946_v2, %s11243_s21  ;;  %v1374_v57 = vpop.permute.xlu1 %1373  ;;  %v1385_v61 = vsel %vm1384_vm9, %v1379_v58, %v1381_v54  ;;  %s9739_s21 = smov 58   ;;  %vm3099_vm9 = vcmask 662528  }
  0xfe   : > { %9121 = vmatmul.mubr.msk.f32.vlgmr.msra.gmra.mrb[14].mxu1 %vm219_vm2, %v1374_v57 }
  0xff   : > { %9125 = vmatprep.mubr.msk.f32.mxu1 %vm9696_vm0, %v9695_v0 }
 0x100   : > { %3965 = vrot.lane.b32.xlu1 %v10035_v17, %s9734_s9  ;;  %v1551_v60 = vpop.permute.xlu0 %1550 }
 0x101   : > { %3963 = vrot.lane.b32.xlu0 %v9952_v3, %s9734_s9  ;;  %v1553_v59 = vpop.permute.xlu1 %1552  ;;  %8768 = vmatmul.mubr.msk.f32.vlgmr.msra.gmra.mrb[0].mxu0 %vm219_vm2, %v1204_v51 }
 0x102   : > { %9124 = vmatpush3.msk.msra.mxu1 %vm222_vm1, %v1553_v59  ;;  %v1556_v62 = vsel %vm1554_vm10, %v1551_v60, %v1553_v59  ;;  %8772 = vmatpush1.msk.msra.mxu0 %vm222_vm1, %v1385_v61 }
 0x103   : > { %1459 = vmatprep.mubr.f32.mxu0 %v9695_v0  ;;  %8776 = vmatprep.subr.msk.mxu0 %vm222_vm1, %v1556_v62 }
 0x104   : > { %3955 = vrot.lane.b32.xlu1 %v9954_v4, %s11246_s26  ;;  %v1549_v1 = vpop.permute.xlu0 %1548  ;;  %9128 = vmatprep.subr.mxu1 %v9695_v0 }
 0x105   : > { %3961 = vrot.lane.b32.xlu0 %v9946_v2, %s9734_s9  ;;  %v1544_v63 = vpop.permute.xlu1 %1543  ;;  %v1555_v7 = vsel %vm1554_vm10, %v1549_v1, %v1551_v60  ;;  %vm3273_vm10 = vcmask 654336  }
 0x106   : > { %9126 = vmatmul.mubr.msk.f32.vlgmr.msra.gmra.mrb[16].mxu1 %vm219_vm2, %v1544_v63 }
 0x107   : > { %9130 = vmatprep.mubr.msk.f32.mxu1 %vm9696_vm0, %v9695_v0 }
 0x108   : > { %4139 = vrot.lane.b32.xlu1 %v10035_v17, %s11242_s18  ;;  %v1721_v6 = vpop.permute.xlu0 %1720 }
 0x109   : > { %4137 = vrot.lane.b32.xlu0 %v9952_v3, %s11242_s18  ;;  %v1723_v5 = vpop.permute.xlu1 %1722  ;;  %8773 = vmatmul.mubr.msk.f32.vlgmr.msra.gmra.mrb[0].mxu0 %vm219_vm2, %v1374_v57 }
 0x10a   : > { %9129 = vmatpush3.msk.msra.mxu1 %vm222_vm1, %v1723_v5  ;;  %v1726_v8 = vsel %vm1724_vm11, %v1721_v6, %v1723_v5  ;;  %8777 = vmatpush1.msk.msra.mxu0 %vm222_vm1, %v1555_v7 }
 0x10b   : > { %1629 = vmatprep.mubr.f32.mxu0 %v9695_v0  ;;  %8781 = vmatprep.subr.msk.mxu0 %vm222_vm1, %v1726_v8 }
 0x10c   : > { %4129 = vrot.lane.b32.xlu1 %v9954_v4, %s9736_s7  ;;  %v1719_v10 = vpop.permute.xlu0 %1718  ;;  %9133 = vmatprep.subr.mxu1 %v9695_v0 }
 0x10d   : > { %4135 = vrot.lane.b32.xlu0 %v9946_v2, %s11242_s18  ;;  %v1714_v9 = vpop.permute.xlu1 %1713  ;;  %v1725_v13 = vsel %vm1724_vm11, %v1719_v10, %v1721_v6  ;;  %s9738_s18 = smov 32   ;;  %vm3447_vm11 = vcmask 646144  }
 0x10e   : > { %9131 = vmatmul.mubr.msk.f32.vlgmr.msra.gmra.mrb[18].mxu1 %vm219_vm2, %v1714_v9 }
 0x10f   : > { %9135 = vmatprep.mubr.msk.f32.mxu1 %vm9696_vm0, %v9695_v0 }
 0x110   : > { %4313 = vrot.lane.b32.xlu1 %v10035_v17, %s11244_s4  ;;  %v1891_v12 = vpop.permute.xlu0 %1890 }
 0x111   : > { %4311 = vrot.lane.b32.xlu0 %v9952_v3, %s11244_s4  ;;  %v1893_v11 = vpop.permute.xlu1 %1892  ;;  %8778 = vmatmul.mubr.msk.f32.vlgmr.msra.gmra.mrb[0].mxu0 %vm219_vm2, %v1544_v63 }
 0x112   : > { %9134 = vmatpush3.msk.msra.mxu1 %vm222_vm1, %v1893_v11  ;;  %v1896_v14 = vsel %vm1894_vm12, %v1891_v12, %v1893_v11  ;;  %8782 = vmatpush1.msk.msra.mxu0 %vm222_vm1, %v1725_v13  ;;  %v10420_v13 = vld [vmem:[#allocation5 + $0x8] sm:$0xff] }
 0x113   : > { %1799 = vmatprep.mubr.f32.mxu0 %v9695_v0  ;;  %8786 = vmatprep.subr.msk.mxu0 %vm222_vm1, %v1896_v14 }
 0x114   : > { %4303 = vrot.lane.b32.xlu1 %v9954_v4, %s9738_s18  ;;  %v1889_v16 = vpop.permute.xlu0 %1888  ;;  %9138 = vmatprep.subr.mxu1 %v9695_v0  ;;  %s9740_s18 = smov 28  }
 0x115   : > { %4309 = vrot.lane.b32.xlu0 %v9946_v2, %s11244_s4  ;;  %v1884_v15 = vpop.permute.xlu1 %1883  ;;  %v1895_v20 = vsel %vm1894_vm12, %v1889_v16, %v1891_v12  ;;  %s9741_s4 = smov 57   ;;  %vm3621_vm12 = vcmask 637952  }
 0x116   : > { %9136 = vmatmul.mubr.msk.f32.vlgmr.msra.gmra.mrb[20].mxu1 %vm219_vm2, %v1884_v15 }
 0x117   : > { %9140 = vmatprep.mubr.msk.f32.mxu1 %vm9696_vm0, %v9695_v0 }
 0x118   : > { %4487 = vrot.lane.b32.xlu1 %v10035_v17, %s9739_s21  ;;  %v2061_v19 = vpop.permute.xlu0 %2060 }
 0x119   : > { %4485 = vrot.lane.b32.xlu0 %v9952_v3, %s9739_s21  ;;  %v2063_v18 = vpop.permute.xlu1 %2062  ;;  %8783 = vmatmul.mubr.msk.f32.vlgmr.msra.gmra.mrb[0].mxu0 %vm219_vm2, %v1714_v9 }
 0x11a   : > { %9139 = vmatpush3.msk.msra.mxu1 %vm222_vm1, %v2063_v18  ;;  %v2066_v21 = vsel %vm2064_vm13, %v2061_v19, %v2063_v18  ;;  %8787 = vmatpush1.msk.msra.mxu0 %vm222_vm1, %v1895_v20 }
 0x11b   : > { %1969 = vmatprep.mubr.f32.mxu0 %v9695_v0  ;;  %8791 = vmatprep.subr.msk.mxu0 %vm222_vm1, %v2066_v21 }
 0x11c   : > { %4477 = vrot.lane.b32.xlu1 %v9954_v4, %s9740_s18  ;;  %v2059_v23 = vpop.permute.xlu0 %2058  ;;  %9143 = vmatprep.subr.mxu1 %v9695_v0  ;;  %s9742_s18 = smov 24  }
 0x11d   : > { %4483 = vrot.lane.b32.xlu0 %v9946_v2, %s9739_s21  ;;  %v2054_v22 = vpop.permute.xlu1 %2053  ;;  %v2065_v26 = vsel %vm2064_vm13, %v2059_v23, %v2061_v19  ;;  %vm3795_vm13 = vcmask 506880  }
 0x11e   : > { %9141 = vmatmul.mubr.msk.f32.vlgmr.msra.gmra.mrb[22].mxu1 %vm219_vm2, %v2054_v22 }
 0x11f   : > { %9145 = vmatprep.mubr.msk.f32.mxu1 %vm9696_vm0, %v9695_v0 }
 0x120   : > { %4661 = vrot.lane.b32.xlu1 %v10035_v17, %s9741_s4  ;;  %v2231_v25 = vpop.permute.xlu0 %2230 }
 0x121   : > { %4659 = vrot.lane.b32.xlu0 %v9952_v3, %s9741_s4  ;;  %v2233_v24 = vpop.permute.xlu1 %2232  ;;  %8788 = vmatmul.mubr.msk.f32.vlgmr.msra.gmra.mrb[0].mxu0 %vm219_vm2, %v1884_v15 }
 0x122   : > { %9144 = vmatpush3.msk.msra.mxu1 %vm222_vm1, %v2233_v24  ;;  %v2236_v27 = vsel %vm2234_vm14, %v2231_v25, %v2233_v24  ;;  %8792 = vmatpush1.msk.msra.mxu0 %vm222_vm1, %v2065_v26 }
 0x123   : > { %2139 = vmatprep.mubr.f32.mxu0 %v9695_v0  ;;  %8796 = vmatprep.subr.msk.mxu0 %vm222_vm1, %v2236_v27 }
 0x124   : > { %4651 = vrot.lane.b32.xlu1 %v9954_v4, %s9742_s18  ;;  %v2229_v29 = vpop.permute.xlu0 %2228  ;;  %9148 = vmatprep.subr.mxu1 %v9695_v0  ;;  %s9743_s18 = smov 20  }
 0x125   : > { %4657 = vrot.lane.b32.xlu0 %v9946_v2, %s9741_s4  ;;  %v2224_v28 = vpop.permute.xlu1 %2223  ;;  %v2235_v32 = vsel %vm2234_vm14, %v2229_v29, %v2231_v25  ;;  %vm3969_vm14 = vcmask 498688  }
 0x126   : > { %9146 = vmatmul.mubr.msk.f32.vlgmr.msra.gmra.mrb[24].mxu1 %vm219_vm2, %v2224_v28 }
 0x127   : > { %9150 = vmatprep.mubr.msk.f32.mxu1 %vm9696_vm0, %v9695_v0 }
 0x128   : > { %4835 = vrot.lane.b32.xlu1 %v10035_v17, %s11245_s22  ;;  %v2401_v31 = vpop.permute.xlu0 %2400 }
 0x129   : > { %4833 = vrot.lane.b32.xlu0 %v9952_v3, %s11245_s22  ;;  %v2403_v30 = vpop.permute.xlu1 %2402  ;;  %8793 = vmatmul.mubr.msk.f32.vlgmr.msra.gmra.mrb[0].mxu0 %vm219_vm2, %v2054_v22 }
 0x12a   : > { %9149 = vmatpush3.msk.msra.mxu1 %vm222_vm1, %v2403_v30  ;;  %v2406_v33 = vsel %vm2404_vm15, %v2401_v31, %v2403_v30  ;;  %8797 = vmatpush1.msk.msra.mxu0 %vm222_vm1, %v2235_v32  ;;  %v10477_v30 = vld [vmem:[%s9928_s6 + $0x8] sm:$0xff] }
 0x12b   : > { %2309 = vmatprep.mubr.f32.mxu0 %v9695_v0  ;;  %8801 = vmatprep.subr.msk.mxu0 %vm222_vm1, %v2406_v33 }
 0x12c   : > { %4825 = vrot.lane.b32.xlu1 %v9954_v4, %s9743_s18  ;;  %v2399_v35 = vpop.permute.xlu0 %2398  ;;  %9153 = vmatprep.subr.mxu1 %v9695_v0  ;;  %s11247_s18 = smov 16  }
 0x12d   : > { %4831 = vrot.lane.b32.xlu0 %v9946_v2, %s11245_s22  ;;  %v2394_v34 = vpop.permute.xlu1 %2393  ;;  %v2405_v38 = vsel %vm2404_vm15, %v2399_v35, %v2401_v31  ;;  %s11251_s22 = smov 39   ;;  %vm4143_vm15 = vcmask 490496  }
 0x12e   : > { %9151 = vmatmul.mubr.msk.f32.vlgmr.msra.gmra.mrb[26].mxu1 %vm219_vm2, %v2394_v34 }
 0x12f   : > { %9155 = vmatprep.mubr.msk.f32.mxu1 %vm9696_vm0, %v9695_v0 }
 0x130   : > { %5009 = vrot.lane.b32.xlu1 %v10035_v17, %s11246_s26  ;;  %v2572_v37 = vpop.permute.xlu0 %2571 }
 0x131   : > { %5007 = vrot.lane.b32.xlu0 %v9952_v3, %s11246_s26  ;;  %v10295_v36 = vpop.permute.xlu1 %2573  ;;  %8798 = vmatmul.mubr.msk.f32.vlgmr.msra.gmra.mrb[0].mxu0 %vm219_vm2, %v2224_v28 }
 0x132   : > { %v2579_v39 = vsel %vm2577_vm3, %v2572_v37, %v10295_v36  ;;  %8802 = vmatpush1.msk.msra.mxu0 %vm222_vm1, %v2405_v38  ;;  %2479 = vmatprep.mubr.f32.mxu0 %v9695_v0 }
 0x133   : > { %8806 = vmatprep.subr.msk.mxu0 %vm222_vm1, %v2579_v39 }
 0x134   : > { %4999 = vrot.lane.b32.xlu1 %v9954_v4, %s11247_s18  ;;  %v2570_v41 = vpop.permute.xlu0 %2569  ;;  %s9747_s18 = smov 38  }
 0x135   : > { %5005 = vrot.lane.b32.xlu0 %v9946_v2, %s11246_s26  ;;  %v10308_v40 = vpop.permute.xlu1 %2563  ;;  %v2578_v44 = vsel %vm2577_vm3, %v2570_v41, %v2572_v37  ;;  %s11249_s26 = smov 12  }
 0x138   : > { %5183 = vrot.lane.b32.xlu1 %v10035_v17, %s11251_s22  ;;  %v2746_v43 = vpop.permute.xlu0 %2745 }
 0x139   : > { %5181 = vrot.lane.b32.xlu0 %v9952_v3, %s11251_s22  ;;  %v10314_v42 = vpop.permute.xlu1 %2747  ;;  %8803 = vmatmul.mubr.msk.f32.vlgmr.msra.gmra.mrb[0].mxu0 %vm219_vm2, %v2394_v34 }
 0x13a   : > { %v2753_v45 = vsel %vm2751_vm4, %v2746_v43, %v10314_v42  ;;  %8807 = vmatpush1.msk.msra.mxu0 %vm222_vm1, %v2578_v44  ;;  %2653 = vmatprep.mubr.f32.mxu0 %v9695_v0 }
 0x13b   : > { %8811 = vmatprep.subr.msk.mxu0 %vm222_vm1, %v2753_v45 }
 0x13c   : > { %5173 = vrot.lane.b32.xlu1 %v9954_v4, %s11249_s26  ;;  %v2744_v47 = vpop.permute.xlu0 %2743  ;;  %s9748_s26 = smov 8  }
 0x13d   : > { %5179 = vrot.lane.b32.xlu0 %v9946_v2, %s11251_s22  ;;  %v10330_v3 = vpop.permute.xlu1 %2737  ;;  %v2752_v2 = vsel %vm2751_vm4, %v2744_v47, %v2746_v43  ;;  %s9749_s22 = smov 37  }
 0x140   : > { %5357 = vrot.lane.b32.xlu1 %v10035_v17, %s9747_s18  ;;  %v2920_v49 = vpop.permute.xlu0 %2919 }
 0x141   : > { %5355 = vrot.lane.b32.xlu0 %v10334_v48, %s9747_s18  ;;  %v10340_v4 = vpop.permute.xlu1 %2921  ;;  %8808 = vmatmul.mubr.msk.f32.vlgmr.msra.gmra.mrb[0].mxu0 %vm219_vm2, %v10308_v40 }
 0x142   : > { %v2927_v51 = vsel %vm2925_vm5, %v2920_v49, %v10340_v4  ;;  %8812 = vmatpush1.msk.msra.mxu0 %vm222_vm1, %v2752_v2  ;;  %2827 = vmatprep.mubr.f32.mxu0 %v9695_v0 }
 0x143   : > { %8816 = vmatprep.subr.msk.mxu0 %vm222_vm1, %v2927_v51 }
 0x144   : > { %5347 = vrot.lane.b32.xlu1 %v5345_v50, %s9748_s26  ;;  %s9750_s26 = smov 4  }
 0x145   : > { %5353 = vrot.lane.b32.xlu0 %v10321_v46, %s9747_s18 }
 0x146   : > { %v10356_v53 = vpop.permute.xlu1 %2911 }
 0x147   : > { %v2918_v54 = vpop.permute.xlu0 %2917 }
 0x148   : > { %5529 = vrot.lane.b32.xlu1 %v10334_v48, %s9749_s22  ;;  %v2926_v55 = vsel %vm2925_vm5, %v2918_v54, %v2920_v49 }
 0x149   : > { %2575 = vrot.lane.b32.xlu0 %v10352_v52, %s9716_s24  ;;  %8813 = vmatmul.mubr.msk.f32.vlgmr.msra.gmra.mrb[0].mxu0 %vm219_vm2, %v10330_v3 }
 0x14a   : > { %v10363_v56 = vpop.permute.xlu1 %3095  ;;  %8817 = vmatpush1.msk.msra.mxu0 %vm222_vm1, %v2926_v55  ;;  %3001 = vmatprep.mubr.f32.mxu0 %v9695_v0 }
 0x14b   : > { %v3094_v57 = vpop.permute.xlu0 %3093 }
 0x14c   : > { %5527 = vrot.lane.b32.xlu1 %v10321_v46, %s9749_s22  ;;  %v3101_v58 = vsel %vm3099_vm9, %v3094_v57, %v10363_v56 }
 0x14d   : > { %5531 = vrot.lane.b32.xlu0 %v10035_v17, %s9749_s22  ;;  %8821 = vmatprep.subr.msk.mxu0 %vm222_vm1, %v3101_v58 }
 0x14e   : > { %v10376_v59 = vpop.permute.xlu1 %3085 }
 0x14f   : > { %v3092_v60 = vpop.permute.xlu0 %3091 }
 0x150   : > { %2749 = vrot.lane.b32.xlu1 %v10352_v52, %s9721_s28  ;;  %v3100_v61 = vsel %vm3099_vm9, %v3092_v60, %v3094_v57  ;;  %s11277_s28 = smov 59  }
 0x151   : > { %5521 = vrot.lane.b32.xlu0 %v5345_v50, %s9750_s26  ;;  %8818 = vmatmul.mubr.msk.f32.vlgmr.msra.gmra.mrb[0].mxu0 %vm219_vm2, %v10356_v53  ;;  %s11278_s26 = smov 60  }
 0x152   : > { %v10381_v62 = vpop.permute.xlu1 %3269  ;;  %8822 = vmatpush1.msk.msra.mxu0 %vm222_vm1, %v3100_v61  ;;  %3175 = vmatprep.mubr.f32.mxu0 %v9695_v0 }
 0x153   : > { %v3268_v63 = vpop.permute.xlu0 %3267 }
 0x154   : > { %5700 = vrot.lane.b32.xlu1 %v10334_v48, %s9736_s7  ;;  %v3275_v1 = vsel %vm3273_vm10, %v3268_v63, %v10381_v62 }
 0x155   : > { %2923 = vrot.lane.b32.xlu0 %v10352_v52, %s9723_s30  ;;  %8826 = vmatprep.subr.msk.mxu0 %vm222_vm1, %v3275_v1  ;;  %s9751_s30 = smov 35  }
 0x156   : > { %v10394_v5 = vpop.permute.xlu1 %3259 }
 0x157   : > { %v3266_v6 = vpop.permute.xlu0 %3265 }
 0x158   : > { %5698 = vrot.lane.b32.xlu1 %v10321_v46, %s9736_s7  ;;  %v3274_v7 = vsel %vm3273_vm10, %v3266_v6, %v3268_v63 }
 0x159   : > { %5702 = vrot.lane.b32.xlu0 %v10035_v17, %s9736_s7  ;;  %8823 = vmatmul.mubr.msk.f32.vlgmr.msra.gmra.mrb[0].mxu0 %vm219_vm2, %v10376_v59 }
 0x15a   : > { %v10401_v8 = vpop.permute.xlu1 %3443  ;;  %8827 = vmatpush1.msk.msra.mxu0 %vm222_vm1, %v3274_v7  ;;  %3349 = vmatprep.mubr.f32.mxu0 %v9695_v0 }
 0x15b   : > { %v3442_v9 = vpop.permute.xlu0 %3441 }
 0x15c   : > { %3271 = vrot.lane.b32.xlu1 %v10352_v52, %s9718_s10  ;;  %v3449_v10 = vsel %vm3447_vm11, %v3442_v9, %v10401_v8 }
 0x15d   : > { %3097 = vrot.lane.b32.xlu0 %v10352_v52, %s9725_s8  ;;  %8831 = vmatprep.subr.msk.mxu0 %vm222_vm1, %v3449_v10  ;;  %s9752_s8 = smov 34  }
 0x15e   : > { %v10414_v11 = vpop.permute.xlu1 %3433 }
 0x15f   : > { %v3440_v12 = vpop.permute.xlu0 %3439 }
 0x160   : > { %5877 = vrot.lane.b32.xlu1 %v10035_v17, %s9751_s30  ;;  %v3448_v14 = vsel %vm3447_vm11, %v3440_v12, %v3442_v9 }
 0x161   : > { %5875 = vrot.lane.b32.xlu0 %v10334_v48, %s9751_s30  ;;  %8828 = vmatmul.mubr.msk.f32.vlgmr.msra.gmra.mrb[0].mxu0 %vm219_vm2, %v10394_v5 }
 0x162   : > { %v10423_v15 = vpop.permute.xlu1 %3617  ;;  %8832 = vmatpush1.msk.msra.mxu0 %vm222_vm1, %v3448_v14  ;;  %3523 = vmatprep.mubr.f32.mxu0 %v9695_v0 }
 0x163   : > { %v3616_v16 = vpop.permute.xlu0 %3615 }
 0x164   : > { %5867 = vrot.lane.b32.xlu1 %v10420_v13, %s9698_s20  ;;  %v3623_v18 = vsel %vm3621_vm12, %v3616_v16, %v10423_v15 }
 0x165   : > { %5873 = vrot.lane.b32.xlu0 %v10321_v46, %s9751_s30  ;;  %8836 = vmatprep.subr.msk.mxu0 %vm222_vm1, %v3623_v18 }
 0x166   : > { %v10436_v19 = vpop.permute.xlu1 %3607 }
 0x167   : > { %v3614_v20 = vpop.permute.xlu0 %3613 }
 0x168   : > { %3619 = vrot.lane.b32.xlu1 %v10352_v52, %s9730_s25  ;;  %v3622_v21 = vsel %vm3621_vm12, %v3614_v20, %v3616_v16  ;;  %s11275_s25 = smov 62  }
 0x169   : > { %3445 = vrot.lane.b32.xlu0 %v10352_v52, %s9728_s5  ;;  %8833 = vmatmul.mubr.msk.f32.vlgmr.msra.gmra.mrb[0].mxu0 %vm219_vm2, %v10414_v11  ;;  %s9753_s5 = smov 18  }
 0x16a   : > { %v10443_v22 = vpop.permute.xlu1 %3791  ;;  %8837 = vmatpush1.msk.msra.mxu0 %vm222_vm1, %v3622_v21  ;;  %3697 = vmatprep.mubr.f32.mxu0 %v9695_v0 }
 0x16b   : > { %v3790_v23 = vpop.permute.xlu0 %3789 }
 0x16c   : > { %6051 = vrot.lane.b32.xlu1 %v10035_v17, %s9752_s8  ;;  %v3797_v24 = vsel %vm3795_vm13, %v3790_v23, %v10443_v22 }
 0x16d   : > { %6049 = vrot.lane.b32.xlu0 %v10334_v48, %s9752_s8  ;;  %8841 = vmatprep.subr.msk.mxu0 %vm222_vm1, %v3797_v24 }
 0x16e   : > { %v10456_v25 = vpop.permute.xlu1 %3781 }
 0x16f   : > { %v3788_v26 = vpop.permute.xlu0 %3787 }
 0x170   : > { %6041 = vrot.lane.b32.xlu1 %v10420_v13, %s9700_s27  ;;  %v3796_v17 = vsel %vm3795_vm13, %v3788_v26, %v3790_v23 }
 0x171   : > { %6047 = vrot.lane.b32.xlu0 %v10321_v46, %s9752_s8  ;;  %8838 = vmatmul.mubr.msk.f32.vlgmr.msra.gmra.mrb[0].mxu0 %vm219_vm2, %v10436_v19 }
 0x172   : > { %v10463_v27 = vpop.permute.xlu1 %3965  ;;  %8842 = vmatpush1.msk.msra.mxu0 %vm222_vm1, %v3796_v17  ;;  %3871 = vmatprep.mubr.f32.mxu0 %v9695_v0 }
 0x173   : > { %v3964_v28 = vpop.permute.xlu0 %3963 }
 0x174   : > { %3967 = vrot.lane.b32.xlu1 %v10352_v52, %s9734_s9  ;;  %v3971_v29 = vsel %vm3969_vm14, %v3964_v28, %v10463_v27  ;;  %s11276_s9 = smov 116  }
 0x175   : > { %3793 = vrot.lane.b32.xlu0 %v10352_v52, %s11275_s25  ;;  %8846 = vmatprep.subr.msk.mxu0 %vm222_vm1, %v3971_v29  ;;  %s9754_s25 = smov 17  }
 0x176   : > { %v10479_v31 = vpop.permute.xlu1 %3955 }
 0x177   : > { %v3962_v32 = vpop.permute.xlu0 %3961 }
 0x178   : > { %6225 = vrot.lane.b32.xlu1 %v10477_v30, %s9753_s5  ;;  %v3970_v33 = vsel %vm3969_vm14, %v3962_v32, %v3964_v28 }
 0x179   : > { %6223 = vrot.lane.b32.xlu0 %v10334_v48, %s9753_s5  ;;  %8843 = vmatmul.mubr.msk.f32.vlgmr.msra.gmra.mrb[0].mxu0 %vm219_vm2, %v10456_v25 }
 0x17a   : > { %v10486_v34 = vpop.permute.xlu1 %4139  ;;  %8847 = vmatpush1.msk.msra.mxu0 %vm222_vm1, %v3970_v33  ;;  %4045 = vmatprep.mubr.f32.mxu0 %v9695_v0 }
 0x17b   : > { %v4138_v35 = vpop.permute.xlu0 %4137 }
 0x17c   : > { %6215 = vrot.lane.b32.xlu1 %v10420_v13, %s11276_s9  ;;  %v4145_v37 = vsel %vm4143_vm15, %v4138_v35, %v10486_v34  ;;  %s11279_s9 = smov 112  }
 0x17d   : > { %6221 = vrot.lane.b32.xlu0 %v10321_v46, %s9753_s5  ;;  %8851 = vmatprep.subr.msk.mxu0 %vm222_vm1, %v4145_v37 }
 0x17e   : > { %v10499_v38 = vpop.permute.xlu1 %4129 }
 0x17f   : > { %v4136_v39 = vpop.permute.xlu0 %4135 }
 0x180   : > { %4315 = vrot.lane.b32.xlu1 %v10352_v52, %s11277_s28  ;;  %v4144_v41 = vsel %vm4143_vm15, %v4136_v39, %v4138_v35  ;;  %s11280_s28 = smov 16  }
 0x181   : > { %4141 = vrot.lane.b32.xlu0 %v10352_v52, %s11278_s26  ;;  %8848 = vmatmul.mubr.msk.f32.vlgmr.msra.gmra.mrb[0].mxu0 %vm219_vm2, %v10479_v31  ;;  %s11283_s26 = smov 56  }
 0x182   : > { %v10506_v43 = vpop.permute.xlu1 %4313  ;;  %8852 = vmatpush1.msk.msra.mxu0 %vm222_vm1, %v4144_v41  ;;  %4219 = vmatprep.mubr.f32.mxu0 %v9695_v0 }
 0x183   : > { %v4312_v44 = vpop.permute.xlu0 %4311 }
 0x184   : > { %6399 = vrot.lane.b32.xlu1 %v10477_v30, %s9754_s25  ;;  %v4319_v45 = vsel %vm4317_vm8, %v4312_v44, %v10506_v43 }
 0x185   : > { %6397 = vrot.lane.b32.xlu0 %v10334_v48, %s9754_s25  ;;  %8856 = vmatprep.subr.msk.mxu0 %vm222_vm1, %v4319_v45 }
 0x186   : > { %v10519_v47 = vpop.permute.xlu1 %4303 }
 0x187   : > { %v4310_v49 = vpop.permute.xlu0 %4309 }
 0x188   : > { %6389 = vrot.lane.b32.xlu1 %v10420_v13, %s11279_s9  ;;  %v4318_v50 = vsel %vm4317_vm8, %v4310_v49, %v4312_v44  ;;  %s9755_s9 = smov 15  }
 0x189   : > { %6395 = vrot.lane.b32.xlu0 %v10321_v46, %s9754_s25  ;;  %8853 = vmatmul.mubr.msk.f32.vlgmr.msra.gmra.mrb[0].mxu0 %vm219_vm2, %v10499_v38 }
 0x18a   : > { %v10526_v2 = vpop.permute.xlu1 %4487  ;;  %8857 = vmatpush1.msk.msra.mxu0 %vm222_vm1, %v4318_v50  ;;  %4393 = vmatprep.mubr.f32.mxu0 %v9695_v0 }
 0x18b   : > { %v4486_v51 = vpop.permute.xlu0 %4485 }
 0x18c   : > { %4663 = vrot.lane.b32.xlu1 %v10352_v52, %s9741_s4  ;;  %v4493_v54 = vsel %vm11255_vm7, %v4486_v51, %v10526_v2  ;;  %s11281_s4 = smov 108  }
 0x18d   : > { %4489 = vrot.lane.b32.xlu0 %v10352_v52, %s9739_s21  ;;  %8861 = vmatprep.subr.msk.mxu0 %vm222_vm1, %v4493_v54  ;;  %s11282_s21 = smov 40  }
 0x18e   : > { %v10539_v55 = vpop.permute.xlu1 %4477 }
 0x18f   : > { %v4484_v57 = vpop.permute.xlu0 %4483 }
 0x190   : > { %6573 = vrot.lane.b32.xlu1 %v10477_v30, %s11280_s28  ;;  %v4492_v58 = vsel %vm11255_vm7, %v4484_v57, %v4486_v51  ;;  %vm11257_vm7 = vcmask 457728  }
 0x191   : > { %6571 = vrot.lane.b32.xlu0 %v10334_v48, %s11280_s28  ;;  %8858 = vmatmul.mubr.msk.f32.vlgmr.msra.gmra.mrb[0].mxu0 %vm219_vm2, %v10519_v47 }
 0x192   : > { %v10546_v60 = vpop.permute.xlu1 %4661  ;;  %8862 = vmatpush1.msk.msra.mxu0 %vm222_vm1, %v4492_v58  ;;  %4567 = vmatprep.mubr.f32.mxu0 %v9695_v0 }
 0x193   : > { %v4660_v61 = vpop.permute.xlu0 %4659 }
 0x194   : > { %6563 = vrot.lane.b32.xlu1 %v10420_v13, %s11281_s4  ;;  %v4667_v63 = vsel %vm11256_vm6, %v4660_v61, %v10546_v60  ;;  %s11284_s4 = smov 104  }
 0x195   : > { %6569 = vrot.lane.b32.xlu0 %v10321_v46, %s11280_s28  ;;  %8866 = vmatprep.subr.msk.mxu0 %vm222_vm1, %v4667_v63 }
 0x196   : > { %v10559_v1 = vpop.permute.xlu1 %4651 }
 0x197   : > { %v4658_v6 = vpop.permute.xlu0 %4657 }
 0x198   : > { %5011 = vrot.lane.b32.xlu1 %v10352_v52, %s11282_s21  ;;  %v4666_v7 = vsel %vm11256_vm6, %v4658_v6, %v4660_v61  ;;  %vm11258_vm6 = vcmask 326656   ;;  %s11285_s21 = smov 39  }
 0x199   : > { %4837 = vrot.lane.b32.xlu0 %v10352_v52, %s11283_s26  ;;  %8863 = vmatmul.mubr.msk.f32.vlgmr.msra.gmra.mrb[0].mxu0 %vm219_vm2, %v10539_v55  ;;  %s9756_s26 = smov 14  }
 0x19a   : > { %v10566_v9 = vpop.permute.xlu1 %4835  ;;  %8867 = vmatpush1.msk.msra.mxu0 %vm222_vm1, %v4666_v7  ;;  %4741 = vmatprep.mubr.f32.mxu0 %v9695_v0 }
 0x19b   : > { %v4834_v10 = vpop.permute.xlu0 %4833 }
 0x19c   : > { %6747 = vrot.lane.b32.xlu1 %v10477_v30, %s9755_s9  ;;  %v4841_v12 = vsel %vm11257_vm7, %v4834_v10, %v10566_v9 }
 0x19d   : > { %6745 = vrot.lane.b32.xlu0 %v10334_v48, %s9755_s9  ;;  %8871 = vmatprep.subr.msk.mxu0 %vm222_vm1, %v4841_v12 }
 0x19e   : > { %v10579_v14 = vpop.permute.xlu1 %4825 }
 0x19f   : > { %v4832_v16 = vpop.permute.xlu0 %4831 }
 0x1a0   : > { %6737 = vrot.lane.b32.xlu1 %v10420_v13, %s11284_s4  ;;  %v4840_v20 = vsel %vm11257_vm7, %v4832_v16, %v4834_v10  ;;  %vm5187_vm7 = vcmask 318464   ;;  %s11297_s4 = smov 68  }
 0x1a1   : > { %6743 = vrot.lane.b32.xlu0 %v10321_v46, %s9755_s9  ;;  %v366_v18 = vpop.f32.mrb[0].mxu1  ;;  %8868 = vmatmul.mubr.msk.f32.vlgmr.msra.gmra.mrb[0].mxu0 %vm219_vm2, %v10559_v1 }
 0x1a2   : > { %v10586_v21 = vpop.permute.xlu1 %5009  ;;  %v9087_v23 = vpop.f32.mrb[1].mxu1  ;;  %8872 = vmatpush1.msk.msra.mxu0 %vm222_vm1, %v4840_v20  ;;  %4915 = vmatprep.mubr.f32.mxu0 %v9695_v0 }
 0x1a3   : > { %v5008_v24 = vpop.permute.xlu0 %5007 }
 0x1a4   : > { %5359 = vrot.lane.b32.xlu1 %v10352_v52, %s9747_s18  ;;  %v5015_v26 = vsel %vm11258_vm6, %v5008_v24, %v10586_v21  ;;  %s11286_s18 = smov 100  }
 0x1a5   : > { %5185 = vrot.lane.b32.xlu0 %v10352_v52, %s11285_s21  ;;  %8876 = vmatprep.subr.msk.mxu0 %vm222_vm1, %v5015_v26  ;;  %v515_v17 = vpop.f32.mrb[2].mxu1 }
 0x1a6   : > { %v10599_v28 = vpop.permute.xlu1 %4999  ;;  %v516_v29 = vadd.f32 %v515_v17, %v366_v18  ;;  %v9092_v33 = vpop.f32.mrb[3].mxu1 }
 0x1a7   : > { %v5006_v32 = vpop.permute.xlu0 %5005 }
 0x1a8   : > { %6921 = vrot.lane.b32.xlu1 %v10477_v30, %s9756_s26  ;;  %v5014_v35 = vsel %vm11258_vm6, %v5006_v32, %v5008_v24  ;;  %vm11259_vm6 = vcmask 310272  }
 0x1a9   : > { %6919 = vrot.lane.b32.xlu0 %v10334_v48, %s9756_s26  ;;  %8873 = vmatmul.mubr.msk.f32.vlgmr.msra.gmra.mrb[0].mxu0 %vm219_vm2, %v10579_v14 }
 0x1aa   : > { %v682_v37 = vpop.f32.mrb[4].mxu1  ;;  %v10606_v39 = vpop.permute.xlu1 %5183  ;;  %8877 = vmatpush1.msk.msra.mxu0 %vm222_vm1, %v5014_v35  ;;  %5089 = vmatprep.mubr.f32.mxu0 %v9695_v0 }
 0x1ab   : > { %v688_v41 = vadd.f32 %v682_v37, %v516_v29  ;;  %v5182_v44 = vpop.permute.xlu0 %5181  ;;  %v9097_v45 = vpop.f32.mrb[5].mxu1 }
 0x1ac   : > { %6911 = vrot.lane.b32.xlu1 %v10420_v13, %s11286_s18  ;;  %v5189_v49 = vsel %vm5187_vm7, %v5182_v44, %v10606_v39  ;;  %s9424_s18 = smul.u32 24, %s9924_s29 }
 0x1ad   : > { %6917 = vrot.lane.b32.xlu0 %v10321_v46, %s9756_s26  ;;  %8881 = vmatprep.subr.msk.mxu0 %vm222_vm1, %v5189_v49 }
 0x1ae   : > { %v10619_v50 = vpop.permute.xlu1 %5173 }
 0x1af   : > { %v5180_v51 = vpop.permute.xlu0 %5179 }
 0x1b0   : > { %5704 = vrot.lane.b32.xlu1 %v10352_v52, %s9736_s7  ;;  %v5188_v57 = vsel %vm5187_vm7, %v5180_v51, %v5182_v44  ;;  %s9757_s7 = smov 13  }
 0x1b1   : > { %5533 = vrot.lane.b32.xlu0 %v10352_v52, %s9749_s22  ;;  %v852_v54 = vpop.f32.mrb[6].mxu1  ;;  %8878 = vmatmul.mubr.msk.f32.vlgmr.msra.gmra.mrb[0].mxu0 %vm219_vm2, %v10599_v28  ;;  %s11287_s22 = smov 96  }
 0x1b2   : > { %v858_v58 = vadd.f32 %v852_v54, %v688_v41  ;;  %v10626_v61 = vpop.permute.xlu1 %5357  ;;  %v9102_v63 = vpop.f32.mrb[7].mxu1  ;;  %8882 = vmatpush1.msk.msra.mxu0 %vm222_vm1, %v5188_v57  ;;  %5263 = vmatprep.mubr.f32.mxu0 %v9695_v0 }
 0x1b3   : > { %v5356_v6 = vpop.permute.xlu0 %5355 }
 0x1b4   : > { %7095 = vrot.lane.b32.xlu1 %v10477_v30, %s9757_s7  ;;  %v5363_v7 = vsel %vm11259_vm6, %v5356_v6, %v10626_v61 }
 0x1b5   : > { %7093 = vrot.lane.b32.xlu0 %v10334_v48, %s9757_s7  ;;  %8886 = vmatprep.subr.msk.mxu0 %vm222_vm1, %v5363_v7 }
 0x1b6   : > { %v10639_v10 = vpop.permute.xlu1 %5347 }
 0x1b7   : > { %v5354_v12 = vpop.permute.xlu0 %5353 }
 0x1b8   : > { %7085 = vrot.lane.b32.xlu1 %v10420_v13, %s11287_s22  ;;  %v5362_v18 = vsel %vm11259_vm6, %v5354_v12, %v5356_v6  ;;  %vm5535_vm6 = vcmask 302080   ;;  %s199_s22 = scalar_lea.vmem [#allocation7], %s9424_s18 }
 0x1b9   : > { %7091 = vrot.lane.b32.xlu0 %v10321_v46, %s9757_s7  ;;  %v1022_v16 = vpop.f32.mrb[8].mxu1  ;;  %8883 = vmatmul.mubr.msk.f32.vlgmr.msra.gmra.mrb[0].mxu0 %vm219_vm2, %v10619_v50 }
 0x1ba   : > { %v1028_v20 = vadd.f32 %v1022_v16, %v858_v58  ;;  %v5530_v23 = vpop.permute.xlu1 %5529  ;;  %v9107_v24 = vpop.f32.mrb[9].mxu1  ;;  %8887 = vmatpush1.msk.msra.mxu0 %vm222_vm1, %v5362_v18  ;;  %5437 = vmatprep.mubr.f32.mxu0 %v9695_v0 }
 0x1bb   : > { %v2576_v26 = vpop.permute.xlu0 %2575 }
 0x1bc   : > { %v2580_v17 = vsel %vm2577_vm3, %v10295_v36, %v2576_v26  ;;  %6053 = vrot.lane.b32.xlu1 %v10352_v52, %s9752_s8  ;;  %s11288_s8 = smov 12   ;;  %vm5706_vm3 = vcmask 293888  }
 0x1bd   : > { %5879 = vrot.lane.b32.xlu0 %v10352_v52, %s9751_s30  ;;  %9154 = vmatpush3.msk.msra.mxu1 %vm222_vm1, %v2580_v17  ;;  %s11289_s30 = smov 92  }
 0x1be   : > { %9156 = vmatmul.mubr.msk.f32.vlgmr.msra.gmra.mrb[28].mxu1 %vm219_vm2, %v10308_v40  ;;  %v5528_v29 = vpop.permute.xlu1 %5527  ;;  %9158 = vmatprep.subr.mxu1 %v9695_v0 }
 0x1bf   : > { %v10660_v32 = vpop.permute.xlu0 %5531  ;;  %9160 = vmatprep.mubr.msk.f32.mxu1 %vm9696_vm0, %v9695_v0  ;;  %v5536_v52 = vsel %vm5535_vm6, %v5528_v29, %v5530_v23 }
 0x1c0   : > { %v5537_v36 = vsel %vm5535_vm6, %v5530_v23, %v10660_v32  ;;  %7269 = vrot.lane.b32.xlu1 %v10477_v30, %s11288_s8 }
 0x1c1   : > { %7267 = vrot.lane.b32.xlu0 %v10334_v48, %s11288_s8  ;;  %8891 = vmatprep.subr.msk.mxu0 %vm222_vm1, %v5537_v36  ;;  %v1192_v40 = vpop.f32.mrb[10].mxu1  ;;  %v10682_v48 = vcombine.high %v10477_v30, %v10477_v30  ;;  %v10695_v30 = vld [vmem:[%s9928_s6 + $0x4] sm:$0xff] }
 0x1c2   : > { %v1198_v33 = vadd.f32 %v1192_v40, %v1028_v20  ;;  %v2750_v35 = vpop.permute.xlu1 %2749  ;;  %8888 = vmatmul.mubr.msk.f32.vlgmr.msra.gmra.mrb[0].mxu0 %vm219_vm2, %v10639_v10  ;;  %v9112_v37 = vpop.f32.mrb[11].mxu1  ;;  %v10707_v51 = vcombine.high %v10695_v30, %v10695_v30 }
 0x1c3   : > { %v2754_v41 = vsel %vm2751_vm4, %v10314_v42, %v2750_v35  ;;  %8892 = vmatpush1.msk.msra.mxu0 %vm222_vm1, %v5536_v52  ;;  %v10677_v44 = vpop.permute.xlu0 %5521  ;;  %5611 = vmatprep.mubr.f32.mxu0 %v9695_v0  ;;  %vm5881_vm4 = vcmask 285696  }
 0x1c4   : > { %7259 = vrot.lane.b32.xlu1 %v10420_v13, %s11289_s30  ;;  %9159 = vmatpush3.msk.msra.mxu1 %vm222_vm1, %v2754_v41 }
 0x1c5   : > { %7265 = vrot.lane.b32.xlu0 %v10321_v46, %s11288_s8  ;;  %9161 = vmatmul.mubr.msk.f32.vlgmr.msra.gmra.mrb[30].mxu1 %vm219_vm2, %v10330_v3  ;;  %v7430_v3 = vld [vmem:[%s9928_s6 + $0xc] sm:$0xf] }
 0x1c6   : > { %v5701_v42 = vpop.permute.xlu1 %5700  ;;  %9163 = vmatprep.subr.mxu1 %v9695_v0  ;;  %9165 = vmatprep.mubr.msk.f32.mxu1 %vm9696_vm0, %v9695_v0 }
 0x1c7   : > { %v2924_v45 = vpop.permute.xlu0 %2923 }
 0x1c8   : > { %v2928_v49 = vsel %vm2925_vm5, %v10340_v4, %v2924_v45  ;;  %6401 = vrot.lane.b32.xlu1 %v10682_v48, %s9754_s25  ;;  %vm6055_vm5 = vcmask 277504   ;;  %s11293_s25 = smov 76  }
 0x1c9   : > { %6227 = vrot.lane.b32.xlu0 %v10682_v48, %s9753_s5  ;;  %9164 = vmatpush3.msk.msra.mxu1 %vm222_vm1, %v2928_v49  ;;  %v1362_v46 = vpop.f32.mrb[12].mxu1  ;;  %s11290_s5 = smov 88  }
 0x1ca   : > { %9166 = vmatmul.mubr.msk.f32.vlgmr.msra.gmra.mrb[32].mxu1 %vm219_vm2, %v10356_v53  ;;  %v1368_v54 = vadd.f32 %v1362_v46, %v1198_v33  ;;  %v5699_v4 = vpop.permute.xlu1 %5698  ;;  %8893 = vmatmul.mubr.msk.f32.vlgmr.msra.gmra.mrb[0].mxu0 %vm219_vm2, %v10677_v44  ;;  %v9117_v57 = vpop.f32.mrb[13].mxu1 }
 0x1cb   : > { %v5707_v58 = vsel %vm5706_vm3, %v5699_v4, %v5701_v42  ;;  %v10714_v63 = vpop.permute.xlu0 %5702  ;;  %9168 = vmatprep.subr.mxu1 %v9695_v0  ;;  %9170 = vmatprep.mubr.msk.f32.mxu1 %vm9696_vm0, %v9695_v0 }
 0x1cc   : > { %v5708_v6 = vsel %vm5706_vm3, %v5701_v42, %v10714_v63  ;;  %7442 = vrot.lane.b32.xlu1 %v7430_v3, %s9698_s20  ;;  %5783 = vmatprep.mubr.f32.mxu0 %v9695_v0 }
 0x1cd   : > { %7440 = vrot.lane.b32.xlu0 %v10707_v51, %s9698_s20  ;;  %8896 = vmatprep.subr.msk.mxu0 %vm222_vm1, %v5708_v6 }
 0x1ce   : > { %8897 = vmatpush1.msk.msra.mxu0 %vm222_vm1, %v5707_v58  ;;  %v3272_v53 = vpop.permute.xlu1 %3271 }
 0x1cf   : > { %v3098_v7 = vpop.permute.xlu0 %3097  ;;  %v3276_v18 = vsel %vm3273_vm10, %v10381_v62, %v3272_v53  ;;  %vm6403_vm10 = vcmask 138240  }
 0x1d0   : > { %v3102_v12 = vsel %vm3099_vm9, %v10363_v56, %v3098_v7  ;;  %7433 = vrot.lane.b32.xlu1 %v10420_v13, %s11290_s5  ;;  %vm6229_vm9 = vcmask 146432  }
 0x1d1   : > { %7438 = vrot.lane.b32.xlu0 %v10695_v30, %s9698_s20  ;;  %9169 = vmatpush3.msk.msra.mxu1 %vm222_vm1, %v3102_v12  ;;  %v1532_v16 = vpop.f32.mrb[14].mxu1  ;;  %s11291_s20 = smov 123  }
 0x1d2   : > { %9171 = vmatmul.mubr.msk.f32.vlgmr.msra.gmra.mrb[34].mxu1 %vm219_vm2, %v10376_v59  ;;  %9173 = vmatprep.subr.mxu1 %v9695_v0  ;;  %v1538_v56 = vadd.f32 %v1532_v16, %v1368_v54  ;;  %v10739_v20 = vpop.permute.xlu1 %5877  ;;  %v9122_v23 = vpop.f32.mrb[15].mxu1  ;;  %v7599_v59 = vld [vmem:[%s9928_s6 + $0xc] sm:$0xf] }
 0x1d3   : > { %9174 = vmatpush3.msk.msra.mxu1 %vm222_vm1, %v3276_v18  ;;  %8898 = vmatmul.mubr.msk.f32.vlgmr.msra.gmra.mrb[0].mxu0 %vm219_vm2, %v10420_v13  ;;  %v5876_v24 = vpop.permute.xlu0 %5875 }
 0x1d4   : > { %v5883_v26 = vsel %vm5881_vm4, %v5876_v24, %v10739_v20  ;;  %6749 = vrot.lane.b32.xlu1 %v10682_v48, %s9755_s9  ;;  %9175 = vmatprep.mubr.msk.f32.mxu1 %vm9696_vm0, %v9695_v0  ;;  %s9760_s9 = smov 118  }
 0x1d5   : > { %6575 = vrot.lane.b32.xlu0 %v10682_v48, %s11280_s28  ;;  %8901 = vmatprep.subr.msk.mxu0 %vm222_vm1, %v5883_v26  ;;  %s9759_s28 = smov 119  }
 0x1d6   : > { %9176 = vmatmul.mubr.msk.f32.vlgmr.msra.gmra.mrb[36].mxu1 %vm219_vm2, %v10394_v5  ;;  %v10756_v62 = vpop.permute.xlu1 %5867  ;;  %5957 = vmatprep.mubr.f32.mxu0 %v9695_v0 }
 0x1d7   : > { %v5874_v17 = vpop.permute.xlu0 %5873  ;;  %9178 = vmatprep.subr.mxu1 %v9695_v0  ;;  %9180 = vmatprep.mubr.msk.f32.mxu1 %vm9696_vm0, %v9695_v0 }
 0x1d8   : > { %v5882_v29 = vsel %vm5881_vm4, %v5874_v17, %v5876_v24  ;;  %7611 = vrot.lane.b32.xlu1 %v7599_v59, %s11291_s20 }
 0x1d9   : > { %7609 = vrot.lane.b32.xlu0 %v10707_v51, %s11291_s20  ;;  %8902 = vmatpush1.msk.msra.mxu0 %vm222_vm1, %v5882_v29  ;;  %v1702_v5 = vpop.f32.mrb[16].mxu1 }
 0x1da   : > { %v1708_v36 = vadd.f32 %v1702_v5, %v1538_v56  ;;  %v3620_v40 = vpop.permute.xlu1 %3619  ;;  %v9127_v52 = vpop.f32.mrb[17].mxu1 }
 0x1db   : > { %8903 = vmatmul.mubr.msk.f32.vlgmr.msra.gmra.mrb[0].mxu0 %vm219_vm2, %v10756_v62  ;;  %v3446_v33 = vpop.permute.xlu0 %3445  ;;  %v3624_v37 = vsel %vm3621_vm12, %v10423_v15, %v3620_v40  ;;  %v7768_v15 = vld [vmem:[%s9928_s6 + $0xc] sm:$0xf]  ;;  %vm11296_vm12 = vcmask 465920  }
 0x1dc   : > { %v3450_v35 = vsel %vm3447_vm11, %v10401_v8, %v3446_v33  ;;  %7602 = vrot.lane.b32.xlu1 %v10420_v13, %s9716_s24  ;;  %6131 = vmatprep.mubr.f32.mxu0 %v9695_v0  ;;  %s11292_s24 = smov 122   ;;  %vm6577_vm11 = vcmask 130048  }
 0x1dd   : > { %7607 = vrot.lane.b32.xlu0 %v10695_v30, %s11291_s20  ;;  %9179 = vmatpush3.msk.msra.mxu1 %vm222_vm1, %v3450_v35 }
 0x1de   : > { %9181 = vmatmul.mubr.msk.f32.vlgmr.msra.gmra.mrb[38].mxu1 %vm219_vm2, %v10414_v11  ;;  %9183 = vmatprep.subr.mxu1 %v9695_v0  ;;  %v10782_v8 = vpop.permute.xlu1 %6051 }
 0x1df   : > { %9184 = vmatpush3.msk.msra.mxu1 %vm222_vm1, %v3624_v37  ;;  %v6050_v41 = vpop.permute.xlu0 %6049  ;;  %9185 = vmatprep.mubr.msk.f32.mxu1 %vm9696_vm0, %v9695_v0  ;;  %v8277_v37 = vld [vmem:[%s9928_s6 + $0xc] sm:$0xf] }
 0x1e0   : > { %v6057_v42 = vsel %vm6055_vm5, %v6050_v41, %v10782_v8  ;;  %7097 = vrot.lane.b32.xlu1 %v10682_v48, %s9757_s7  ;;  %9188 = vmatprep.subr.mxu1 %v9695_v0  ;;  %s9425_s7 = smul.u32 384, %s9804_s16  ;;  %s8632_s16 = scalar_lea.sflag [#allocation4], %s9924_s29 }
 0x1e1   : > { %6923 = vrot.lane.b32.xlu0 %v10682_v48, %s9756_s26  ;;  %8906 = vmatprep.subr.msk.mxu0 %vm222_vm1, %v6057_v42  ;;  %v1872_v11 = vpop.f32.mrb[18].mxu1 }
 0x1e2   : > { %9186 = vmatmul.mubr.msk.f32.vlgmr.msra.gmra.mrb[40].mxu1 %vm219_vm2, %v10436_v19  ;;  %v1878_v45 = vadd.f32 %v1872_v11, %v1708_v36  ;;  %v10798_v49 = vpop.permute.xlu1 %6041  ;;  %v9132_v46 = vpop.f32.mrb[19].mxu1  ;;  %s11175_s20 = scalar_lea.hbm %s11222_s3, %s9425_s7 }
 0x1e3   : > { %v6048_v3 = vpop.permute.xlu0 %6047  ;;  %9190 = vmatprep.mubr.msk.f32.mxu1 %vm9696_vm0, %v9695_v0 }
 0x1e4   : > { %v6056_v54 = vsel %vm6055_vm5, %v6048_v3, %v6050_v41  ;;  %7780 = vrot.lane.b32.xlu1 %v7768_v15, %s11292_s24 }
 0x1e5   : > { %7778 = vrot.lane.b32.xlu0 %v10707_v51, %s11292_s24  ;;  %8907 = vmatpush1.msk.msra.mxu0 %vm222_vm1, %v6056_v54  ;;  %v8447_v54 = vld [vmem:[%s9928_s6 + $0xc] sm:$0xf] }
 0x1e6   : > { %8908 = vmatmul.mubr.msk.f32.vlgmr.msra.gmra.mrb[0].mxu0 %vm219_vm2, %v10798_v49  ;;  %v3968_v19 = vpop.permute.xlu1 %3967 }
 0x1e7   : > { %v3794_v4 = vpop.permute.xlu0 %3793  ;;  %6305 = vmatprep.mubr.f32.mxu0 %v9695_v0  ;;  %v3972_v6 = vsel %vm3969_vm14, %v10463_v27, %v3968_v19  ;;  %v7937_v27 = vld [vmem:[%s9928_s6 + $0xc] sm:$0xf]  ;;  %vm6751_vm14 = vcmask 121856  }
 0x1e8   : > { %v3798_v57 = vsel %vm3795_vm13, %v10443_v22, %v3794_v4  ;;  %7771 = vrot.lane.b32.xlu1 %v10420_v13, %s9718_s10  ;;  %s9758_s10 = smov 121   ;;  %vm11298_vm13 = vcmask 457728  }
 0x1e9   : > { %7776 = vrot.lane.b32.xlu0 %v10695_v30, %s11292_s24  ;;  %9189 = vmatpush3.msk.msra.mxu1 %vm222_vm1, %v3798_v57  ;;  %v2042_v58 = vpop.f32.mrb[20].mxu1 }
 0x1ea   : > { %9191 = vmatmul.mubr.msk.f32.vlgmr.msra.gmra.mrb[42].mxu1 %vm219_vm2, %v10456_v25  ;;  %9193 = vmatprep.subr.mxu1 %v9695_v0  ;;  %v2048_v22 = vadd.f32 %v2042_v58, %v1878_v45  ;;  %v10822_v53 = vpop.permute.xlu1 %6225  ;;  %v9137_v7 = vpop.f32.mrb[21].mxu1 }
 0x1eb   : > { %9194 = vmatpush3.msk.msra.mxu1 %vm222_vm1, %v3972_v6  ;;  %v6224_v12 = vpop.permute.xlu0 %6223  ;;  %9195 = vmatprep.mubr.msk.f32.mxu1 %vm9696_vm0, %v9695_v0 }
 0x1ec   : > { %v6231_v16 = vsel %vm6229_vm9, %v6224_v12, %v10822_v53  ;;  %7947 = vrot.lane.b32.xlu1 %v10707_v51, %s9758_s10  ;;  %9198 = vmatprep.subr.mxu1 %v9695_v0 }
 0x1ed   : > { %7271 = vrot.lane.b32.xlu0 %v10682_v48, %s11288_s8  ;;  %8911 = vmatprep.subr.msk.mxu0 %vm222_vm1, %v6231_v16  ;;  %s8646_s8 = sshll.u32 %s199_s22, 4  ;;  %s11177_s8 = int_to_ptr.vmem [resolvable:$true] %s8646_s8 }
 0x1ee   : > { %9196 = vmatmul.mubr.msk.f32.vlgmr.msra.gmra.mrb[44].mxu1 %vm219_vm2, %v10479_v31  ;;  %v10836_v25 = vpop.permute.xlu1 %6215  ;;  %s9621_s24 = scalar_lea.vmem %s11177_s8, 384 }
 0x1ef   : > { %v6222_v18 = vpop.permute.xlu0 %6221  ;;  %9200 = vmatprep.mubr.msk.f32.mxu1 %vm9696_vm0, %v9695_v0  ;;  %p9622_p6 = scmp.ne.s32.totalorder %s11177_s8, %s9621_s24 }
 0x1f0   : > { %v6230_v56 = vsel %vm6229_vm9, %v6222_v18, %v6224_v12  ;;  %7945 = vrot.lane.b32.xlu1 %v10695_v30, %s9758_s10 }
 0x1f1   : > { %7949 = vrot.lane.b32.xlu0 %v7937_v27, %s9758_s10  ;;  %8912 = vmatpush1.msk.msra.mxu0 %vm222_vm1, %v6230_v56  ;;  %v2212_v48 = vpop.f32.mrb[22].mxu1  ;;  %p9623_p9 = pnand %p9622_p6, %p9875_p8  ;;  %s9762_s10 = smov [#allocation7]  }
 0x1f2   : > { %8913 = vmatmul.mubr.msk.f32.vlgmr.msra.gmra.mrb[0].mxu0 %vm219_vm2, %v10836_v25  ;;  %v2218_v31 = vadd.f32 %v2212_v48, %v2048_v22  ;;  %v4316_v23 = vpop.permute.xlu1 %4315  ;;  %v9142_v24 = vpop.f32.mrb[23].mxu1 }
 0x1f3   : > { %v4142_v26 = vpop.permute.xlu0 %4141  ;;  %6479 = vmatprep.mubr.f32.mxu0 %v9695_v0  ;;  %v4320_v17 = vsel %vm4317_vm8, %v10506_v43, %v4316_v23  ;;  %vm11295_vm8 = vcmask 474112   ;;  %p9624_p12 = pneg %p9623_p9 }
 0x1f4   : > { %v4146_v59 = vsel %vm4143_vm15, %v10486_v34, %v4142_v26  ;;  %8117 = vrot.lane.b32.xlu1 %v10707_v51, %s9700_s27  ;;  %v8107_v34 = vld [vmem:[%s9928_s6 + $0xc] sm:$0xf]  ;;  %s11299_s6 = smov 64   ;;  %vm11300_vm15 = vcmask 326656  }
 0x1f5   : > { %7940 = vrot.lane.b32.xlu0 %v10420_v13, %s11293_s25  ;;  %9199 = vmatpush3.msk.msra.mxu1 %vm222_vm1, %v4146_v59  ;;  %s9625_s25 = sshll.u32 %s9762_s10, 4  ;;  %s9626_s25 = int_to_ptr.vmem [resolvable:$false] %s9625_s25 }
 0x1f6   : > { %9201 = vmatmul.mubr.msk.f32.vlgmr.msra.gmra.mrb[46].mxu1 %vm219_vm2, %v10499_v38  ;;  %9203 = vmatprep.subr.mxu1 %v9695_v0  ;;  %v10859_v29 = vpop.permute.xlu1 %6399  ;;  %p9628_p13 = scmp.lt.s32.totalorder %s11177_s8, %s9626_s25 }
 0x1f7   : > { %9204 = vmatpush3.msk.msra.mxu1 %vm222_vm1, %v4320_v17  ;;  %v6398_v5 = vpop.permute.xlu0 %6397  ;;  %9205 = vmatprep.mubr.msk.f32.mxu1 %vm9696_vm0, %v9695_v0 }
 0x1f8   : > { %v6405_v36 = vsel %vm6403_vm10, %v6398_v5, %v10859_v29  ;;  %8115 = vrot.lane.b32.xlu1 %v10695_v30, %s9700_s27  ;;  %9208 = vmatprep.subr.mxu1 %v9695_v0 }
 0x1f9   : > { %8119 = vrot.lane.b32.xlu0 %v8107_v34, %s9700_s27  ;;  %8916 = vmatprep.subr.msk.mxu0 %vm222_vm1, %v6405_v36  ;;  %v2382_v38 = vpop.f32.mrb[24].mxu1  ;;  %s11294_s27 = smov 72  }
 0x1fa   : > { %9206 = vmatmul.mubr.msk.f32.vlgmr.msra.gmra.mrb[48].mxu1 %vm219_vm2, %v10519_v47  ;;  %v2388_v43 = vadd.f32 %v2382_v38, %v2218_v31  ;;  %v10874_v40 = vpop.permute.xlu1 %6389  ;;  %v9147_v52 = vpop.f32.mrb[25].mxu1 }
 0x1fb   : > { %v6396_v33 = vpop.permute.xlu0 %6395  ;;  %9210 = vmatprep.mubr.msk.f32.mxu1 %vm9696_vm0, %v9695_v0 }
 0x1fc   : > { %v6404_v35 = vsel %vm6403_vm10, %v6396_v33, %v6398_v5  ;;  %8287 = vrot.lane.b32.xlu1 %v10707_v51, %s9759_s28 }
 0x1fd   : > { %8110 = vrot.lane.b32.xlu0 %v10420_v13, %s11294_s27  ;;  %8917 = vmatpush1.msk.msra.mxu0 %vm222_vm1, %v6404_v35 }
 0x1fe   : > { %8918 = vmatmul.mubr.msk.f32.vlgmr.msra.gmra.mrb[0].mxu0 %vm219_vm2, %v10874_v40  ;;  %v4664_v47 = vpop.permute.xlu1 %4663 }
 0x1ff   : > { %v4490_v41 = vpop.permute.xlu0 %4489  ;;  %6653 = vmatprep.mubr.f32.mxu0 %v9695_v0  ;;  %v4668_v15 = vsel %vm11296_vm12, %v10546_v60, %v4664_v47  ;;  %vm11301_vm12 = vcmask 310272  }
 0x200   : > { %v4494_v42 = vsel %vm11295_vm8, %v10526_v2, %v4490_v41  ;;  %8285 = vrot.lane.b32.xlu1 %v10695_v30, %s9759_s28  ;;  %vm6925_vm8 = vcmask 113664  }
 0x201   : > { %8289 = vrot.lane.b32.xlu0 %v8277_v37, %s9759_s28  ;;  %9209 = vmatpush3.msk.msra.mxu1 %vm222_vm1, %v4494_v42  ;;  %v2552_v11 = vpop.f32.mrb[26].mxu1  ;;  %s9627_s28 = scalar_lea.vmem %s9626_s25, 768 }
 0x202   : > { %9211 = vmatmul.mubr.msk.f32.vlgmr.msra.gmra.mrb[50].mxu1 %vm219_vm2, %v10539_v55  ;;  %9213 = vmatprep.subr.mxu1 %v9695_v0  ;;  %v10896_v45 = vadd.f32 %v2552_v11, %v2388_v43  ;;  %v10898_v46 = vpop.permute.xlu1 %6573  ;;  %v9152_v2 = vpop.f32.mrb[27].mxu1  ;;  %p9629_p0 = scmp.lt.s32.totalorder %s9627_s28, %s9621_s24 }
 0x203   : > { %9214 = vmatpush3.msk.msra.mxu1 %vm222_vm1, %v4668_v15  ;;  %v6572_v3 = vpop.permute.xlu0 %6571  ;;  %9215 = vmatprep.mubr.msk.f32.mxu1 %vm9696_vm0, %v9695_v0 }
 0x204   : > { %v6579_v60 = vsel %vm6577_vm11, %v6572_v3, %v10898_v46  ;;  %8457 = vrot.lane.b32.xlu1 %v10707_v51, %s9760_s9  ;;  %9218 = vmatprep.subr.mxu1 %v9695_v0  ;;  %p9630_p5 = por %p9629_p0, %p9628_p13 }
 0x205   : > { %8280 = vrot.lane.b32.xlu0 %v10420_v13, %s11297_s4  ;;  %8921 = vmatprep.subr.msk.mxu0 %vm222_vm1, %v6579_v60 }
 0x206   : > { %9216 = vmatmul.mubr.msk.f32.vlgmr.msra.gmra.mrb[52].mxu1 %vm219_vm2, %v10559_v1  ;;  %v10912_v55 = vpop.permute.xlu1 %6563  ;;  %p9631_p10 = pnand %p9630_p5, %p9624_p12 }
 0x207   : > { %v6570_v19 = vpop.permute.xlu0 %6569  ;;  %9220 = vmatprep.mubr.msk.f32.mxu1 %vm9696_vm0, %v9695_v0 }
 0x208   : > { %v6578_v4 = vsel %vm6577_vm11, %v6570_v19, %v6572_v3  ;;  %8455 = vrot.lane.b32.xlu1 %v10695_v30, %s9760_s9  ;;  %v9761_v19 = vmov 0  }
 0x209   : > { %8459 = vrot.lane.b32.xlu0 %v8447_v54, %s9760_s9  ;;  %8922 = vmatpush1.msk.msra.mxu0 %vm222_vm1, %v6578_v4 }
 0x20a   : > { %8923 = vmatmul.mubr.msk.f32.vlgmr.msra.gmra.mrb[0].mxu0 %vm219_vm2, %v10912_v55  ;;  %v5012_v51 = vpop.permute.xlu1 %5011  ;;  %9550 = vset.pattern.permute.xlu1 %v9761_v19 }
 0x20b   : > { %v4838_v57 = vpop.permute.xlu0 %4837  ;;  %6827 = vmatprep.mubr.f32.mxu0 %v9695_v0  ;;  %v5016_v30 = vsel %vm11300_vm15, %v10586_v21, %v5012_v51  ;;  %9551 = vset.pattern.permute.xlu0 %v9761_v19  ;;  %vm8291_vm15 = vcmask 973824  }
 0x20c   : > { %v4842_v1 = vsel %vm11298_vm13, %v10566_v9, %v4838_v57  ;;  %vm7951_vm13 = vcmask 990208  }
 0x20d   : > { %8450 = vrot.lane.b32.xlu0 %v10420_v13, %s11299_s6  ;;  %9219 = vmatpush3.msk.msra.mxu1 %vm222_vm1, %v4842_v1 }
 0x20e   : > { %9221 = vmatmul.mubr.msk.f32.vlgmr.msra.gmra.mrb[54].mxu1 %vm219_vm2, %v10579_v14  ;;  %9223 = vmatprep.subr.mxu1 %v9695_v0  ;;  %v10933_v58 = vpop.permute.xlu1 %6747 }
 0x20f   : > { %9224 = vmatpush3.msk.msra.mxu1 %vm222_vm1, %v5016_v30  ;;  %v6746_v6 = vpop.permute.xlu0 %6745  ;;  %9225 = vmatprep.mubr.msk.f32.mxu1 %vm9696_vm0, %v9695_v0 }
 0x210   : > { %v6753_v9 = vsel %vm6751_vm14, %v6746_v6, %v10933_v58  ;;  %9228 = vmatprep.subr.mxu1 %v9695_v0 }
 0x211   : > { %8926 = vmatprep.subr.msk.mxu0 %vm222_vm1, %v6753_v9 }
 0x212   : > { %9226 = vmatmul.mubr.msk.f32.vlgmr.msra.gmra.mrb[56].mxu1 %vm219_vm2, %v10599_v28  ;;  %v10944_v14 = vpop.permute.xlu1 %6737 }
 0x213   : > { %v6744_v21 = vpop.permute.xlu0 %6743  ;;  %9230 = vmatprep.mubr.msk.f32.mxu1 %vm9696_vm0, %v9695_v0 }
 0x214   : > { %v6752_v22 = vsel %vm6751_vm14, %v6744_v21, %v6746_v6 }
 0x215   : > { %8927 = vmatpush1.msk.msra.mxu0 %vm222_vm1, %v6752_v22 }
 0x216   : > { %8928 = vmatmul.mubr.msk.f32.vlgmr.msra.gmra.mrb[0].mxu0 %vm219_vm2, %v10944_v14  ;;  %v5360_v7 = vpop.permute.xlu1 %5359 }
 0x217   : > { %v5186_v12 = vpop.permute.xlu0 %5185  ;;  %7001 = vmatprep.mubr.f32.mxu0 %v9695_v0  ;;  %v5364_v16 = vsel %vm11301_vm12, %v10626_v61, %v5360_v7 }
 0x218   : > { %v5190_v28 = vsel %vm5187_vm7, %v10606_v39, %v5186_v12  ;;  %vm7099_vm7 = vcmask 105472  }
 0x219   : > { %9229 = vmatpush3.msk.msra.mxu1 %vm222_vm1, %v5190_v28 }
 0x21a   : > { %9231 = vmatmul.mubr.msk.f32.vlgmr.msra.gmra.mrb[58].mxu1 %vm219_vm2, %v10619_v50  ;;  %9233 = vmatprep.subr.mxu1 %v9695_v0  ;;  %v10961_v27 = vpop.permute.xlu1 %6921 }
 0x21b   : > { %9234 = vmatpush3.msk.msra.mxu1 %vm222_vm1, %v5364_v16  ;;  %v6920_v18 = vpop.permute.xlu0 %6919  ;;  %9235 = vmatprep.mubr.msk.f32.mxu1 %vm9696_vm0, %v9695_v0 }
 0x21c   : > { %v6927_v39 = vsel %vm6925_vm8, %v6920_v18, %v10961_v27  ;;  %9238 = vmatprep.subr.mxu1 %v9695_v0 }
 0x21d   : > { %8931 = vmatprep.subr.msk.mxu0 %vm222_vm1, %v6927_v39 }
 0x21e   : > { %9236 = vmatmul.mubr.msk.f32.vlgmr.msra.gmra.mrb[60].mxu1 %vm219_vm2, %v10639_v10  ;;  %v10972_v50 = vpop.permute.xlu1 %6911 }
 0x21f   : > { %v6918_v61 = vpop.permute.xlu0 %6917  ;;  %9240 = vmatprep.mubr.msk.f32.mxu1 %vm9696_vm0, %v9695_v0 }
 0x220   : > { %v6926_v56 = vsel %vm6925_vm8, %v6918_v61, %v6920_v18 }
 0x221   : > { %8932 = vmatpush1.msk.msra.mxu0 %vm222_vm1, %v6926_v56 }
 0x222   : > { %8933 = vmatmul.mubr.msk.f32.vlgmr.msra.gmra.mrb[0].mxu0 %vm219_vm2, %v10972_v50  ;;  %v5705_v48 = vpop.permute.xlu1 %5704 }
 0x223   : > { %v5534_v31 = vpop.permute.xlu0 %5533  ;;  %7175 = vmatprep.mubr.f32.mxu0 %v9695_v0  ;;  %v5709_v23 = vsel %vm5706_vm3, %v10714_v63, %v5705_v48  ;;  %vm11302_vm3 = vcmask 1014784  }
 0x224   : > { %v5538_v10 = vsel %vm5535_vm6, %v10660_v32, %v5534_v31  ;;  %vm7273_vm6 = vcmask 97280  }
 0x225   : > { %9239 = vmatpush3.msk.msra.mxu1 %vm222_vm1, %v5538_v10 }
 0x226   : > { %9241 = vmatmul.mubr.msk.f32.vlgmr.msra.gmra.mrb[62].mxu1 %vm219_vm2, %v10677_v44  ;;  %9243 = vmatprep.subr.mxu1 %v9695_v0  ;;  %v10989_v24 = vpop.permute.xlu1 %7095 }
 0x227   : > { %9244 = vmatpush3.msk.msra.mxu1 %vm222_vm1, %v5709_v23  ;;  %v7094_v26 = vpop.permute.xlu0 %7093  ;;  %9245 = vmatprep.mubr.msk.f32.mxu1 %vm9696_vm0, %v9695_v0 }
 0x228   : > { %v7101_v32 = vsel %vm7099_vm7, %v7094_v26, %v10989_v24  ;;  %9248 = vmatprep.subr.mxu1 %v9695_v0 }
 0x229   : > { %8936 = vmatprep.subr.msk.mxu0 %vm222_vm1, %v7101_v32 }
 0x22a   : > { %9246 = vmatmul.mubr.msk.f32.vlgmr.msra.gmra.mrb[64].mxu1 %vm219_vm2, %v10420_v13  ;;  %v11000_v44 = vpop.permute.xlu1 %7085 }
 0x22b   : > { %v7092_v63 = vpop.permute.xlu0 %7091  ;;  %9250 = vmatprep.mubr.msk.f32.mxu1 %vm9696_vm0, %v9695_v0 }
 0x22c   : > { %v7100_v59 = vsel %vm7099_vm7, %v7092_v63, %v7094_v26 }
 0x22d   : > { %8937 = vmatpush1.msk.msra.mxu0 %vm222_vm1, %v7100_v59 }
 0x22e   : > { %8938 = vmatmul.mubr.msk.f32.vlgmr.msra.gmra.mrb[0].mxu0 %vm219_vm2, %v11000_v44  ;;  %v6054_v17 = vpop.permute.xlu1 %6053 }
 0x22f   : > { %v5880_v34 = vpop.permute.xlu0 %5879  ;;  %7349 = vmatprep.mubr.f32.mxu0 %v9695_v0  ;;  %v6058_v5 = vsel %vm6055_vm5, %v10782_v8, %v6054_v17  ;;  %vm11304_vm5 = vcmask 1006592  }
 0x230   : > { %v5884_v13 = vsel %vm5881_vm4, %v10739_v20, %v5880_v34  ;;  %vm11303_vm4 = vmmov %vm11302_vm3 }
 0x231   : > { %9249 = vmatpush3.msk.msra.mxu1 %vm222_vm1, %v5884_v13 }
 0x232   : > { %9251 = vmatmul.mubr.msk.f32.vlgmr.msra.gmra.mrb[66].mxu1 %vm219_vm2, %v10756_v62  ;;  %9253 = vmatprep.subr.mxu1 %v9695_v0  ;;  %v11017_v36 = vpop.permute.xlu1 %7269 }
 0x233   : > { %9254 = vmatpush3.msk.msra.mxu1 %vm222_vm1, %v6058_v5  ;;  %v7268_v38 = vpop.permute.xlu0 %7267  ;;  %9255 = vmatprep.mubr.msk.f32.mxu1 %vm9696_vm0, %v9695_v0 }
 0x234   : > { %v7275_v20 = vsel %vm7273_vm6, %v7268_v38, %v11017_v36  ;;  %9258 = vmatprep.subr.mxu1 %v9695_v0 }
 0x235   : > { %8941 = vmatprep.subr.msk.mxu0 %vm222_vm1, %v7275_v20 }
 0x236   : > { %9256 = vmatmul.mubr.msk.f32.vlgmr.msra.gmra.mrb[68].mxu1 %vm219_vm2, %v10798_v49  ;;  %v11028_v62 = vpop.permute.xlu1 %7259 }
 0x237   : > { %v7266_v8 = vpop.permute.xlu0 %7265  ;;  %9260 = vmatprep.mubr.msk.f32.mxu1 %vm9696_vm0, %v9695_v0 }
 0x238   : > { %v7274_v43 = vsel %vm7273_vm6, %v7266_v8, %v7268_v38 }
 0x239   : > { %8942 = vmatpush1.msk.msra.mxu0 %vm222_vm1, %v7274_v43 }
 0x23a   : > { %8943 = vmatmul.mubr.msk.f32.vlgmr.msra.gmra.mrb[0].mxu0 %vm219_vm2, %v11028_v62  ;;  %v6402_v52 = vpop.permute.xlu1 %6401 }
 0x23b   : > { %v6228_v33 = vpop.permute.xlu0 %6227  ;;  %7518 = vmatprep.mubr.f32.mxu0 %v9695_v0  ;;  %v6406_v35 = vsel %vm6403_vm10, %v10859_v29, %v6402_v52  ;;  %vm11306_vm10 = vcmask 998400  }
 0x23c   : > { %v6232_v49 = vsel %vm6229_vm9, %v10822_v53, %v6228_v33  ;;  %vm11305_vm9 = vmmov %vm11304_vm5 }
 0x23d   : > { %9259 = vmatpush3.msk.msra.mxu1 %vm222_vm1, %v6232_v49 }
 0x23e   : > { %9261 = vmatmul.mubr.msk.f32.vlgmr.msra.gmra.mrb[70].mxu1 %vm219_vm2, %v10836_v25  ;;  %9263 = vmatprep.subr.mxu1 %v9695_v0  ;;  %v11045_v47 = vpop.permute.xlu1 %7442 }
 0x23f   : > { %9264 = vmatpush3.msk.msra.mxu1 %vm222_vm1, %v6406_v35  ;;  %v7441_v37 = vpop.permute.xlu0 %7440  ;;  %9265 = vmatprep.mubr.msk.f32.mxu1 %vm9696_vm0, %v9695_v0 }
 0x240   : > { %v7445_v53 = vsel %vm11302_vm3, %v7441_v37, %v11045_v47  ;;  %9268 = vmatprep.subr.mxu1 %v9695_v0 }
 0x241   : > { %8946 = vmatprep.subr.msk.mxu0 %vm222_vm1, %v7445_v53 }
 0x242   : > { %9266 = vmatmul.mubr.msk.f32.vlgmr.msra.gmra.mrb[72].mxu1 %vm219_vm2, %v10874_v40  ;;  %v11056_v25 = vpop.permute.xlu1 %7433 }
 0x243   : > { %v7439_v29 = vpop.permute.xlu0 %7438  ;;  %9270 = vmatprep.mubr.msk.f32.mxu1 %vm9696_vm0, %v9695_v0 }
 0x244   : > { %v7444_v41 = vsel %vm11303_vm4, %v7439_v29, %v7441_v37 }
 0x245   : > { %8947 = vmatpush1.msk.msra.mxu0 %vm222_vm1, %v7444_v41 }
 0x246   : > { %8948 = vmatmul.mubr.msk.f32.vlgmr.msra.gmra.mrb[0].mxu0 %vm219_vm2, %v11056_v25  ;;  %v6750_v42 = vpop.permute.xlu1 %6749 }
 0x247   : > { %v6576_v11 = vpop.permute.xlu0 %6575  ;;  %7687 = vmatprep.mubr.f32.mxu0 %v9695_v0  ;;  %v6754_v15 = vsel %vm6751_vm14, %v10933_v58, %v6750_v42  ;;  %vm8121_vm14 = vcmask 982016  }
 0x248   : > { %v6580_v40 = vsel %vm6577_vm11, %v10898_v46, %v6576_v11  ;;  %vm11307_vm11 = vmmov %vm11306_vm10 }
 0x249   : > { %9269 = vmatpush3.msk.msra.mxu1 %vm222_vm1, %v6580_v40 }
 0x24a   : > { %9271 = vmatmul.mubr.msk.f32.vlgmr.msra.gmra.mrb[74].mxu1 %vm219_vm2, %v10912_v55  ;;  %9273 = vmatprep.subr.mxu1 %v9695_v0  ;;  %v7612_v2 = vpop.permute.xlu1 %7611  ;;  %v200_v55 = vld [vmem:[%s11221_s2] sm:$0xff] }
 0x24b   : > { %9274 = vmatpush3.msk.msra.mxu1 %vm222_vm1, %v6754_v15  ;;  %v7610_v3 = vpop.permute.xlu0 %7609  ;;  %9275 = vmatprep.mubr.msk.f32.mxu1 %vm9696_vm0, %v9695_v0 }
 0x24c   : > { %v7614_v60 = vsel %vm11304_vm5, %v7610_v3, %v7612_v2  ;;  %9278 = vmatprep.subr.mxu1 %v9695_v0  ;;  %8618 = vperm.xlu1 %9550, %v200_v55  }
 0x24d   : > { %8951 = vmatprep.subr.msk.mxu0 %vm222_vm1, %v7614_v60 }
 0x24e   : > { %9276 = vmatmul.mubr.msk.f32.vlgmr.msra.gmra.mrb[76].mxu1 %vm219_vm2, %v10944_v14  ;;  %v7603_v46 = vpop.permute.xlu1 %7602 }
 0x24f   : > { %v7608_v54 = vpop.permute.xlu0 %7607  ;;  %9280 = vmatprep.mubr.msk.f32.mxu1 %vm9696_vm0, %v9695_v0 }
 0x250   : > { %v7613_v4 = vsel %vm11305_vm9, %v7608_v54, %v7610_v3 }
 0x251   : > { %8952 = vmatpush1.msk.msra.mxu0 %vm222_vm1, %v7613_v4 }
 0x252   : > { %8953 = vmatmul.mubr.msk.f32.vlgmr.msra.gmra.mrb[0].mxu0 %vm219_vm2, %v7603_v46  ;;  %v7098_v51 = vpop.permute.xlu1 %7097 }
 0x253   : > { %v6924_v57 = vpop.permute.xlu0 %6923  ;;  %7856 = vmatprep.mubr.f32.mxu0 %v9695_v0  ;;  %v7102_v30 = vsel %vm7099_vm7, %v10989_v24, %v7098_v51 }
 0x254   : > { %v6928_v1 = vsel %vm6925_vm8, %v10961_v27, %v6924_v57  ;;  %vm8461_vm8 = vcmask 965632  }
 0x255   : > { %9279 = vmatpush3.msk.msra.mxu1 %vm222_vm1, %v6928_v1 }
 0x256   : > { %9281 = vmatmul.mubr.msk.f32.vlgmr.msra.gmra.mrb[78].mxu1 %vm219_vm2, %v10972_v50  ;;  %9283 = vmatprep.subr.mxu1 %v9695_v0  ;;  %v7781_v58 = vpop.permute.xlu1 %7780 }
 0x257   : > { %9284 = vmatpush3.msk.msra.mxu1 %vm222_vm1, %v7102_v30  ;;  %v7779_v6 = vpop.permute.xlu0 %7778  ;;  %9285 = vmatprep.mubr.msk.f32.mxu1 %vm9696_vm0, %v9695_v0 }
 0x258   : > { %v7783_v9 = vsel %vm11306_vm10, %v7779_v6, %v7781_v58  ;;  %9288 = vmatprep.subr.mxu1 %v9695_v0 }
 0x259   : > { %8956 = vmatprep.subr.msk.mxu0 %vm222_vm1, %v7783_v9 }
 0x25a   : > { %9286 = vmatmul.mubr.msk.f32.vlgmr.msra.gmra.mrb[80].mxu1 %vm219_vm2, %v11000_v44  ;;  %v7772_v14 = vpop.permute.xlu1 %7771 }
 0x25b   : > { %v7777_v21 = vpop.permute.xlu0 %7776  ;;  %9290 = vmatprep.mubr.msk.f32.mxu1 %vm9696_vm0, %v9695_v0 }
 0x25c   : > { %v7782_v22 = vsel %vm11307_vm11, %v7777_v21, %v7779_v6 }
 0x25d   : > { %8957 = vmatpush1.msk.msra.mxu0 %vm222_vm1, %v7782_v22 }
 0x25e   : > { %8958 = vmatmul.mubr.msk.f32.vlgmr.msra.gmra.mrb[0].mxu0 %vm219_vm2, %v7772_v14  ;;  %v7948_v7 = vpop.permute.xlu1 %7947 }
 0x25f   : > { %v7272_v12 = vpop.permute.xlu0 %7271  ;;  %8026 = vmatprep.mubr.f32.mxu0 %v9695_v0 }
 0x260   : > { %v7276_v28 = vsel %vm7273_vm6, %v11017_v36, %v7272_v12 }
 0x261   : > { %9289 = vmatpush3.msk.msra.mxu1 %vm222_vm1, %v7276_v28 }
 0x262   : > { %9291 = vmatmul.mubr.msk.f32.vlgmr.msra.gmra.mrb[82].mxu1 %vm219_vm2, %v11028_v62  ;;  %9293 = vmatprep.subr.mxu1 %v9695_v0  ;;  %v7946_v16 = vpop.permute.xlu1 %7945 }
 0x263   : > { %v7952_v27 = vsel %vm7951_vm13, %v7946_v16, %v7948_v7  ;;  %9294 = vmatpush3.msk.msra.mxu1 %vm222_vm1, %v11045_v47  ;;  %v7950_v18 = vpop.permute.xlu0 %7949  ;;  %9295 = vmatprep.mubr.msk.f32.mxu1 %vm9696_vm0, %v9695_v0 }
 0x264   : > { %v7953_v39 = vsel %vm7951_vm13, %v7948_v7, %v7950_v18  ;;  %9298 = vmatprep.subr.mxu1 %v9695_v0 }
 0x265   : > { %8961 = vmatprep.subr.msk.mxu0 %vm222_vm1, %v7953_v39 }
 0x266   : > { %9296 = vmatmul.mubr.msk.f32.vlgmr.msra.gmra.mrb[84].mxu1 %vm219_vm2, %v11056_v25  ;;  %8962 = vmatpush1.msk.msra.mxu0 %vm222_vm1, %v7952_v27  ;;  %v8118_v50 = vpop.permute.xlu1 %8117 }
 0x267   : > { %9299 = vmatpush3.msk.msra.mxu1 %vm222_vm1, %v7612_v2  ;;  %v7941_v61 = vpop.permute.xlu0 %7940  ;;  %9300 = vmatprep.mubr.msk.f32.mxu1 %vm9696_vm0, %v9695_v0 }
 0x268   : > { %8963 = vmatmul.mubr.msk.f32.vlgmr.msra.gmra.mrb[0].mxu0 %vm219_vm2, %v7941_v61  ;;  %9303 = vmatprep.subr.mxu1 %v9695_v0 }
 0x269   : > { %8196 = vmatprep.mubr.f32.mxu0 %v9695_v0 }
 0x26a   : > { %9301 = vmatmul.mubr.msk.f32.vlgmr.msra.gmra.mrb[86].mxu1 %vm219_vm2, %v7603_v46  ;;  %v8116_v56 = vpop.permute.xlu1 %8115 }
 0x26b   : > { %9304 = vmatpush3.msk.msra.mxu1 %vm222_vm1, %v7781_v58  ;;  %v8122_v48 = vsel %vm8121_vm14, %v8116_v56, %v8118_v50  ;;  %v8120_v31 = vpop.permute.xlu0 %8119  ;;  %9305 = vmatprep.mubr.msk.f32.mxu1 %vm9696_vm0, %v9695_v0 }
 0x26c   : > { %v8123_v10 = vsel %vm8121_vm14, %v8118_v50, %v8120_v31  ;;  %9308 = vmatprep.subr.mxu1 %v9695_v0 }
 0x26d   : > { %8966 = vmatprep.subr.msk.mxu0 %vm222_vm1, %v8123_v10 }
 0x26e   : > { %9306 = vmatmul.mubr.msk.f32.vlgmr.msra.gmra.mrb[88].mxu1 %vm219_vm2, %v7772_v14  ;;  %8967 = vmatpush1.msk.msra.mxu0 %vm222_vm1, %v8122_v48  ;;  %v8288_v23 = vpop.permute.xlu1 %8287 }
 0x26f   : > { %9309 = vmatpush3.msk.msra.mxu1 %vm222_vm1, %v7950_v18  ;;  %v8111_v24 = vpop.permute.xlu0 %8110  ;;  %9310 = vmatprep.mubr.msk.f32.mxu1 %vm9696_vm0, %v9695_v0 }
 0x270   : > { %8968 = vmatmul.mubr.msk.f32.vlgmr.msra.gmra.mrb[0].mxu0 %vm219_vm2, %v8111_v24  ;;  %9313 = vmatprep.subr.mxu1 %v9695_v0 }
 0x271   : > { %8366 = vmatprep.mubr.f32.mxu0 %v9695_v0 }
 0x272   : > { %9311 = vmatmul.mubr.msk.f32.vlgmr.msra.gmra.mrb[90].mxu1 %vm219_vm2, %v7941_v61  ;;  %v8286_v26 = vpop.permute.xlu1 %8285 }
 0x273   : > { %9314 = vmatpush3.msk.msra.mxu1 %vm222_vm1, %v8120_v31  ;;  %v8292_v32 = vsel %vm8291_vm15, %v8286_v26, %v8288_v23  ;;  %v8290_v44 = vpop.permute.xlu0 %8289  ;;  %9315 = vmatprep.mubr.msk.f32.mxu1 %vm9696_vm0, %v9695_v0 }
 0x274   : > { %v8293_v63 = vsel %vm8291_vm15, %v8288_v23, %v8290_v44  ;;  %9318 = vmatprep.subr.mxu1 %v9695_v0 }
 0x275   : > { %8971 = vmatprep.subr.msk.mxu0 %vm222_vm1, %v8293_v63 }
 0x276   : > { %9316 = vmatmul.mubr.msk.f32.vlgmr.msra.gmra.mrb[92].mxu1 %vm219_vm2, %v8111_v24  ;;  %8972 = vmatpush1.msk.msra.mxu0 %vm222_vm1, %v8292_v32  ;;  %v8458_v59 = vpop.permute.xlu1 %8457 }
 0x277   : > { %9319 = vmatpush3.msk.msra.mxu1 %vm222_vm1, %v8290_v44  ;;  %v8281_v17 = vpop.permute.xlu0 %8280  ;;  %9320 = vmatprep.mubr.msk.f32.mxu1 %vm9696_vm0, %v9695_v0 }
 0x278   : > { %8973 = vmatmul.mubr.msk.f32.vlgmr.msra.gmra.mrb[0].mxu0 %vm219_vm2, %v8281_v17  ;;  %9323 = vmatprep.subr.mxu1 %v9695_v0 }
 0x279   : > { %8536 = vmatprep.mubr.f32.mxu0 %v9695_v0 }
 0x27a   : > { %9321 = vmatmul.mubr.msk.f32.vlgmr.msra.gmra.mrb[94].mxu1 %vm219_vm2, %v8281_v17  ;;  %v8456_v34 = vpop.permute.xlu1 %8455 }
 0x27b   : > { %v8462_v13 = vsel %vm8461_vm8, %v8456_v34, %v8458_v59  ;;  %v8460_v5 = vpop.permute.xlu0 %8459  ;;  %9325 = vmatprep.mubr.msk.f32.mxu1 %vm9696_vm0, %v9695_v0  ;;  %vm8629_vm0 = vcmask 785408  }
 0x27c   : > { %v8463_v36 = vsel %vm8461_vm8, %v8458_v59, %v8460_v5  ;;  %9324 = vmatpush3.msk.msra.mxu1 %vm222_vm1, %v8460_v5 }
 0x27d   : > { %8976 = vmatprep.subr.msk.mxu0 %vm222_vm1, %v8463_v36 }
 0x27e   : > { %8977 = vmatpush1.msk.msra.mxu0 %vm222_vm1, %v8462_v13 }
 0x27f   : > { %v8451_v38 = vpop.permute.xlu0 %8450 }
 0x280   : > { %8978 = vmatmul.mubr.msk.f32.vlgmr.msra.gmra.mrb[0].mxu0 %vm219_vm2, %v8451_v38  ;;  %9326 = vmatmul.mubr.msk.f32.vlgmr.msra.gmra.mrb[96].mxu1 %vm219_vm2, %v8451_v38 }
 0x291   : > { %v2726_v20 = vpop.f32.mrb[28].mxu1 }
 0x292   : > { %v2732_v62 = vadd.f32 %v2726_v20, %v10896_v45  ;;  %v9157_v8 = vpop.f32.mrb[29].mxu1 }
 0x298   : > { %v2900_v43 = vpop.f32.mrb[30].mxu1 }
 0x299   : > { %v2906_v52 = vadd.f32 %v2900_v43, %v2732_v62  ;;  %v9162_v33 = vpop.f32.mrb[31].mxu1 }
 0x29d   : > { %v3074_v0 = vpop.f32.mrb[32].mxu1 }
 0x29e   : > { %v3080_v49 = vadd.f32 %v3074_v0, %v2906_v52  ;;  %v9167_v35 = vpop.f32.mrb[33].mxu1 }
 0x2a5   : > { %v3248_v47 = vpop.f32.mrb[34].mxu1 }
 0x2a6   : > { %v3254_v37 = vadd.f32 %v3248_v47, %v3080_v49  ;;  %v9172_v53 = vpop.f32.mrb[35].mxu1 }
 0x2a9   : > { %v3422_v25 = vpop.f32.mrb[36].mxu1 }
 0x2aa   : > { %v3428_v29 = vadd.f32 %v3422_v25, %v3254_v37  ;;  %v9177_v41 = vpop.f32.mrb[37].mxu1 }
 0x2b1   : > { %v3596_v42 = vpop.f32.mrb[38].mxu1 }
 0x2b2   : > { %v3602_v11 = vadd.f32 %v3596_v42, %v3428_v29  ;;  %v9182_v40 = vpop.f32.mrb[39].mxu1 }
 0x2b5   : > { %v3770_v15 = vpop.f32.mrb[40].mxu1 }
 0x2b6   : > { %v3776_v2 = vadd.f32 %v3770_v15, %v3602_v11  ;;  %v9187_v3 = vpop.f32.mrb[41].mxu1 }
 0x2bd   : > { %v3944_v45 = vpop.f32.mrb[42].mxu1 }
 0x2be   : > { %v3950_v60 = vadd.f32 %v3944_v45, %v3776_v2  ;;  %v9192_v46 = vpop.f32.mrb[43].mxu1 }
 0x2c1   : > { %v4118_v55 = vpop.f32.mrb[44].mxu1 }
 0x2c2   : > { %v4124_v54 = vadd.f32 %v4118_v55, %v3950_v60  ;;  %v9197_v19 = vpop.f32.mrb[45].mxu1 }
 0x2c9   : > { %v4292_v4 = vpop.f32.mrb[46].mxu1 }
 0x2ca   : > { %v4298_v51 = vadd.f32 %v4292_v4, %v4124_v54  ;;  %v9202_v57 = vpop.f32.mrb[47].mxu1 }
 0x2cd   : > { %v4466_v1 = vpop.f32.mrb[48].mxu1 }
 0x2ce   : > { %v4472_v30 = vadd.f32 %v4466_v1, %v4298_v51  ;;  %v9207_v58 = vpop.f32.mrb[49].mxu1 }
 0x2d5   : > { %v4640_v6 = vpop.f32.mrb[50].mxu1 }
 0x2d6   : > { %v4646_v9 = vadd.f32 %v4640_v6, %v4472_v30  ;;  %v9212_v14 = vpop.f32.mrb[51].mxu1 }
 0x2d9   : > { %v4814_v21 = vpop.f32.mrb[52].mxu1 }
 0x2da   : > { %v4820_v22 = vadd.f32 %v4814_v21, %v4646_v9  ;;  %v9217_v7 = vpop.f32.mrb[53].mxu1 }
 0x2db   : > { %v8619_v7 = vpop.permute.xlu1 %8618 }
 0x2e1   : > { %v4988_v12 = vpop.f32.mrb[54].mxu1 }
 0x2e2   : > { %v4994_v28 = vadd.f32 %v4988_v12, %v4820_v22  ;;  %v9222_v16 = vpop.f32.mrb[55].mxu1 }
 0x2e5   : > { %v5162_v27 = vpop.f32.mrb[56].mxu1 }
 0x2e6   : > { %v5168_v18 = vadd.f32 %v5162_v27, %v4994_v28  ;;  %v9227_v39 = vpop.f32.mrb[57].mxu1 }
 0x2ed   : > { %v5336_v50 = vpop.f32.mrb[58].mxu1 }
 0x2ee   : > { %v5342_v61 = vadd.f32 %v5336_v50, %v5168_v18  ;;  %v9232_v56 = vpop.f32.mrb[59].mxu1 }
 0x2f1   : > { %v5510_v48 = vpop.f32.mrb[60].mxu1 }
 0x2f2   : > { %v5516_v31 = vadd.f32 %v5510_v48, %v5342_v61  ;;  %v9237_v10 = vpop.f32.mrb[61].mxu1 }
 0x2f9   : > { %v5684_v23 = vpop.f32.mrb[62].mxu1 }
 0x2fa   : > { %v5690_v24 = vadd.f32 %v5684_v23, %v5516_v31  ;;  %v9242_v26 = vpop.f32.mrb[63].mxu1 }
 0x2fd   : > { %v5856_v32 = vpop.f32.mrb[64].mxu1 }
 0x2fe   : > { %v5862_v44 = vadd.f32 %v5856_v32, %v5690_v24  ;;  %v9247_v63 = vpop.f32.mrb[65].mxu1 }
 0x305   : > { %v6030_v59 = vpop.f32.mrb[66].mxu1 }
 0x306   : > { %v6036_v17 = vadd.f32 %v6030_v59, %v5862_v44  ;;  %v9252_v34 = vpop.f32.mrb[67].mxu1 }
 0x309   : > { %v6204_v13 = vpop.f32.mrb[68].mxu1 }
 0x30a   : > { %v6210_v5 = vadd.f32 %v6204_v13, %v6036_v17  ;;  %v9257_v36 = vpop.f32.mrb[69].mxu1 }
 0x311   : > { %v6378_v38 = vpop.f32.mrb[70].mxu1 }
 0x312   : > { %v6384_v20 = vadd.f32 %v6378_v38, %v6210_v5  ;;  %v9262_v62 = vpop.f32.mrb[71].mxu1 }
 0x315   : > { %v6552_v8 = vpop.f32.mrb[72].mxu1 }
 0x316   : > { %v6558_v43 = vadd.f32 %v6552_v8, %v6384_v20  ;;  %v9267_v52 = vpop.f32.mrb[73].mxu1 }
 0x31d   : > { %v6726_v33 = vpop.f32.mrb[74].mxu1 }
 0x31e   : > { %v6732_v0 = vadd.f32 %v6726_v33, %v6558_v43  ;;  %v9272_v49 = vpop.f32.mrb[75].mxu1 }
 0x321   : > { %v6900_v35 = vpop.f32.mrb[76].mxu1 }
 0x322   : > { %v6906_v47 = vadd.f32 %v6900_v35, %v6732_v0  ;;  %v9277_v37 = vpop.f32.mrb[77].mxu1 }
 0x329   : > { %v7074_v53 = vpop.f32.mrb[78].mxu1 }
 0x32a   : > { %v7080_v25 = vadd.f32 %v7074_v53, %v6906_v47  ;;  %v9282_v29 = vpop.f32.mrb[79].mxu1 }
 0x32d   : > { %v7248_v41 = vpop.f32.mrb[80].mxu1 }
 0x32e   : > { %v7254_v42 = vadd.f32 %v7248_v41, %v7080_v25  ;;  %v9287_v11 = vpop.f32.mrb[81].mxu1 }
 0x335   : > { %v7422_v40 = vpop.f32.mrb[82].mxu1 }
 0x336   : > { %v7428_v15 = vadd.f32 %v7422_v40, %v7254_v42  ;;  %v9292_v2 = vpop.f32.mrb[83].mxu1 }
 0x339   : > { %v7591_v3 = vpop.f32.mrb[84].mxu1 }
 0x33a   : > { %v7597_v45 = vadd.f32 %v7591_v3, %v7428_v15  ;;  %v9297_v60 = vpop.f32.mrb[85].mxu1 }
 0x33d   : > { %v7760_v46 = vpop.f32.mrb[86].mxu1 }
 0x33e   : > { %v7766_v55 = vadd.f32 %v7760_v46, %v7597_v45  ;;  %v9302_v54 = vpop.f32.mrb[87].mxu1 }
 0x341   : > { %v7929_v19 = vpop.f32.mrb[88].mxu1 }
 0x342   : > { %v7935_v4 = vadd.f32 %v7929_v19, %v7766_v55  ;;  %v9307_v51 = vpop.f32.mrb[89].mxu1 }
 0x345   : > { %v8099_v57 = vpop.f32.mrb[90].mxu1 }
 0x346   : > { %v8105_v1 = vadd.f32 %v8099_v57, %v7935_v4  ;;  %v9312_v30 = vpop.f32.mrb[91].mxu1 }
 0x349   : > { %v8269_v58 = vpop.f32.mrb[92].mxu1 }
 0x34a   : > { %v8275_v6 = vadd.f32 %v8269_v58, %v8105_v1  ;;  %v9317_v9 = vpop.f32.mrb[93].mxu1 }
 0x34d   : > { %v8439_v14 = vpop.f32.mrb[94].mxu1 }
 0x34e   : > { %v8445_v21 = vadd.f32 %v8439_v14, %v8275_v6  ;;  %v9322_v22 = vpop.f32.mrb[95].mxu1 }
 0x353   : > { %v8538_v12 = vpop.f32.mrb[0].mxu0  ;;  %v8609_v28 = vpop.f32.mrb[96].mxu1 }
 0x354   : > { %v8615_v16 = vadd.f32 %v8609_v28, %v8445_v21  ;;  %v8621_v27 = vadd.f32 %v8619_v7, %v8538_v12  ;;  %v8540_v18 = vpop.f32.mrb[1].mxu0  ;;  %v9327_v39 = vpop.f32.mrb[97].mxu1 }
 0x355   : > { %v8622_v50 = vadd.f32 %v8619_v7, %v8540_v18 }
 0x356   : > { %v8623_v61 = vadd.f32 %v8619_v7, %v8615_v16  ;;  %9557 = vtanh.f32 %v8621_v27 }
 0x357   : > { %9559 = vtanh.f32 %v8622_v50 }
 0x358   : > { %9561 = vtanh.f32 %v8623_v61 }
 0x360   : > { %v9558_v56 = vpop.eup %9557 }
 0x361   : > { %v9560_v48 = vpop.eup %9559  ;;  %8627 = vst [vmem:[%s199_s22] sm:$0xff] %v9558_v56 }
 0x362   : > { %v9562_v31 = vpop.eup %9561  ;;  %8628 = vst [vmem:[%s199_s22 + $0x8] sm:$0xff] %v9560_v48 }
 0x363   : > { %8630 = vst.msk [vmem:[%s199_s22 + $0x10] sm:$0xff] %vm8629_vm0, %v9562_v31 }
 0x364   : > { %9634 = shalt.err (!%p9631_p10)
}
 0x365   : > { %s9635_s29 = scalar_lea.hbm %s11175_s20, 384  ;;  %s9639_s4 = scalar_lea.hbm %s11222_s3, 768 }
 0x366   : > { %p9636_p1 = scmp.ne.s32.totalorder %s11175_s20, %s9635_s29  ;;  %p9640_p3 = scmp.lt.u32.totalorder %s11175_s20, %s11222_s3 }
 0x367   : > { %p9641_p11 = scmp.lt.u32.totalorder %s9639_s4, %s9635_s29  ;;  %p9643_p6 = scmp.lt.u32.totalorder %s9635_s29, %s11175_s20 }
 0x368   : > { %p9637_p2 = pnand %p9636_p1, %p9875_p8 }
 0x369   : > { %p9642_p4 = por %p9641_p11, %p9640_p3 }
 0x36a   : > { %p9638_p7 = pneg %p9637_p2 }
 0x36b   : > { %p9644_p9 = por %p9643_p6, %p9642_p4 }
 0x36d   : > { %p9645_p12 = pnand %p9644_p9, %p9638_p7 }
 0x36f   : > { %9648 = shalt.err (!%p9645_p12)
}
 0x370   : > { %9432 = dma.vmem_to_hbm [thread:$0]  (%p9875_p8), %s11177_s8, 384, %s11175_s20, %s8632_s16  }
 0x371 PF: > { %s8658_s26 = sand.u32 1, %s9679_s12   ;;  %p11308_p13 = scmp.ne.s32.totalorder %s11261_s19, 0 }
 0x372   : > { %p11309_p0 = scmp.ge.s32.totalorder %s9691_s15, 2  ;;  %s8659_s18 = scalar_lea.sflag [#allocation4], %s8658_s26 }
 0x374   : > { %p9443_p5 = pnand %p11309_p0, %p11308_p13 }
 0x376   : > { %9674 = dma.done.wait (!%p9443_p5), %s8659_s18, 384  }
 0x377   : > { %9676 = vsyncadd (!%p9443_p5), %s8659_s18, 4294966912  ;;  %p17_p10 = scmp.ge.s32.totalorder %s9831_s23, 4   ;;  %s11310_s12 = smov %s9683_s13 }
 0x378   : > { %s11311_s13 = smov %s9687_s14  ;;  %s11312_s14 = smov %s9867_s11 }
 0x379   : > { %s11313_s15 = smov %s9831_s23  ;;  %19 = sbr.rel (!%p17_p10) target bundleno = 6 (0x6), region = 81 }
 0x380   :  { %8664 = vsyncpa [#allocation3], 1 }
 0x381   :  { %8666 = vsyncpa [#allocation3 + $0x1], 1 }
 0x382   :  { %8667 = vsyncpa [#allocation6], 1 }
 0x383   :  { %8668 = vsyncpa [#allocation4], 1 }
 0x384   :  { %8670 = vsyncpa [#allocation4 + $0x1], 1 }

</bundles_post_ra>
